<compile_context>
chip_gen: v6e
topology: v6e:2x2x1
jax: 0.10.0
libtpu: 0.0.40
codegen_flags: <defaults>
</compile_context>

<pallas_src>
import jax
import jax.numpy as jnp
from jax.experimental import pallas as pl
from jax.experimental.pallas import tpu as pltpu


def _make_kernel(seq_len: int, hidden: int, type_vocab: int, eps: float):
    S, H, T = seq_len, hidden, type_vocab

    def kernel(input_ids_s, pos_ids_s, graph_rel_s,        # scalar-prefetch ids (SMEM)
               word_hbm, label_hbm,                        # big tables, HBM-resident
               token_type_ref, pos_ref, type_ref,          # small VMEM blocks
               gamma_ref, beta_ref,                        # LayerNorm params (VMEM)
               out_ref,                                    # (1, S, H) output block
               wbuf, pbuf, lbuf, sem):                     # scratch + DMA semaphores
        b = pl.program_id(0)

        # ---- issue per-row DMA gathers (2x word table, 1x label table) -------
        # S is a small compile-time constant here, so a static unrolled loop keeps
        # the VMEM destination row static; only the HBM source row is dynamic.
        # TODO(synk): for large S, switch to pl.loop + chunked multi-row DMAs.
        for i in range(S):
            wi = input_ids_s[b, i]
            pi = pos_ids_s[b, i]
            gi = graph_rel_s[b, i]
            pltpu.make_async_copy(word_hbm.at[pl.ds(wi, 1), :],
                                  wbuf.at[pl.ds(i, 1), :], sem.at[0, i]).start()
            pltpu.make_async_copy(word_hbm.at[pl.ds(pi, 1), :],
                                  pbuf.at[pl.ds(i, 1), :], sem.at[1, i]).start()
            pltpu.make_async_copy(label_hbm.at[pl.ds(gi, 1), :],
                                  lbuf.at[pl.ds(i, 1), :], sem.at[2, i]).start()

        # ---- VPU work that overlaps with the DMAs ----------------------------
        pos_e = pos_ref[...].astype(jnp.float32)                     # (S, H)
        tt = token_type_ref[...].reshape(S, 1)                       # (S, 1) int32
        # token_type table is tiny (T rows): VPU selects, never the MXU.
        type_e = jnp.broadcast_to(type_ref[0, :].astype(jnp.float32), (S, H))
        for t in range(1, T):
            row = type_ref[t, :].astype(jnp.float32)
            type_e = jnp.where(tt == t, row[None, :], type_e)
        base = pos_e + type_e

        # ---- wait for all gathers --------------------------------------------
        for i in range(S):
            pltpu.make_async_copy(word_hbm.at[pl.ds(0, 1), :],
                                  wbuf.at[pl.ds(i, 1), :], sem.at[0, i]).wait()
            pltpu.make_async_copy(word_hbm.at[pl.ds(0, 1), :],
                                  pbuf.at[pl.ds(i, 1), :], sem.at[1, i]).wait()
            pltpu.make_async_copy(label_hbm.at[pl.ds(0, 1), :],
                                  lbuf.at[pl.ds(i, 1), :], sem.at[2, i]).wait()

        x = (base
             + wbuf[...].astype(jnp.float32)
             + pbuf[...].astype(jnp.float32)
             + lbuf[...].astype(jnp.float32))                         # (S, H) f32

        # LayerNorm over hidden (biased variance, eps inside sqrt — PyTorch semantics)
        mean = jnp.mean(x, axis=-1, keepdims=True)
        xc = x - mean
        var = jnp.mean(xc * xc, axis=-1, keepdims=True)
        y = xc * jax.lax.rsqrt(var + eps) * gamma_ref[...] + beta_ref[...]

        # TODO(synk): nn.Dropout is identity in eval mode; training-mode dropout not implemented.
        out_ref[...] = y.reshape(1, S, H).astype(out_ref.dtype)

    return kernel


def bert_graph_embeddings(input_ids, pos_ids, graph_rel, token_type_ids,
                          word_tab, label_tab, pos_tab, type_tab,
                          gamma, beta, eps=1e-12):
    B, S = input_ids.shape
    Vw, H = word_tab.shape
    Vl = label_tab.shape[0]
    P = pos_tab.shape[0]
    T = type_tab.shape[0]
    assert S <= P, "sequence length exceeds max_position_embeddings"

    # Clamp ids so a bad id cannot trigger an out-of-bounds DMA (PyTorch would raise).
    clampi = lambda a, v: jnp.clip(a.astype(jnp.int32), 0, v - 1)
    input_ids_c = clampi(input_ids, Vw)
    pos_ids_c = clampi(pos_ids, Vw)
    graph_rel_c = clampi(graph_rel, Vl)
    token_type3 = clampi(token_type_ids, T).reshape(B, 1, S)

    pos_slice = pos_tab[:S]                          # only the rows actually read
    gamma2 = gamma.reshape(1, H).astype(jnp.float32)
    beta2 = beta.reshape(1, H).astype(jnp.float32)

    kernel = _make_kernel(S, H, T, float(eps))

    grid_spec = pltpu.PrefetchScalarGridSpec(
        num_scalar_prefetch=3,                       # input_ids, pos_ids, graph_rel -> SMEM
        grid=(B,),
        in_specs=[
            pl.BlockSpec(memory_space=pl.ANY),                         # word table  (HBM)
            pl.BlockSpec(memory_space=pl.ANY),                         # label table (HBM)
            pl.BlockSpec((1, 1, S), lambda b, ii, pi, gi: (b, 0, 0)),  # token_type ids
            pl.BlockSpec((S, H), lambda b, ii, pi, gi: (0, 0)),        # position rows [:S]
            pl.BlockSpec((T, H), lambda b, ii, pi, gi: (0, 0)),        # token-type table
            pl.BlockSpec((1, H), lambda b, ii, pi, gi: (0, 0)),        # LayerNorm gamma
            pl.BlockSpec((1, H), lambda b, ii, pi, gi: (0, 0)),        # LayerNorm beta
        ],
        out_specs=pl.BlockSpec((1, S, H), lambda b, ii, pi, gi: (b, 0, 0)),
        scratch_shapes=[
            pltpu.VMEM((S, H), word_tab.dtype),      # gathered word rows (input_ids)
            pltpu.VMEM((S, H), word_tab.dtype),      # gathered word rows (pos_ids)
            pltpu.VMEM((S, H), label_tab.dtype),     # gathered label rows (graph_rel)
            pltpu.SemaphoreType.DMA((3, S)),
        ],
    )

    return pl.pallas_call(
        kernel,
        out_shape=jax.ShapeDtypeStruct((B, S, H), jnp.float32),
        grid_spec=grid_spec,
        compiler_params=pltpu.CompilerParams(dimension_semantics=("parallel",)),
    )(input_ids_c, pos_ids_c, graph_rel_c,
      word_tab, label_tab,
      token_type3, pos_slice, type_tab, gamma2, beta2)


def _reference(input_ids, pos_ids, graph_rel, token_type_ids,
               word_tab, label_tab, pos_tab, type_tab, gamma, beta, eps):
    B, S = input_ids.shape
    x = (word_tab[input_ids] + word_tab[pos_ids]
         + pos_tab[jnp.arange(S)][None, :, :]
         + type_tab[token_type_ids]
         + label_tab[graph_rel])
    mean = jnp.mean(x, axis=-1, keepdims=True)
    var = jnp.mean((x - mean) ** 2, axis=-1, keepdims=True)
    return (x - mean) / jnp.sqrt(var + eps) * gamma + beta


if __name__ == "__main__":
    # Small config consistent with BertGraphEmbeddings (H a multiple of 128 for
    # lane-dense stores, S a multiple of 8).
    B, S, H = 2, 16, 128
    vocab_size = 512
    label_size = 32
    max_position_embeddings = 64
    type_vocab_size = 2
    layer_norm_eps = 1e-12

    key = jax.random.PRNGKey(0)
    kw, kl, kp, kt, ki, kpi, kg, ktt = jax.random.split(key, 8)

    # BERT-style N(0, 0.02) init; padding_idx=0 rows zeroed (as nn.Embedding does).
    word_tab = 0.02 * jax.random.normal(kw, (vocab_size, H), jnp.float32)
    word_tab = word_tab.at[0].set(0.0)
    label_tab = 0.02 * jax.random.normal(kl, (label_size, H), jnp.float32)
    label_tab = label_tab.at[0].set(0.0)
    pos_tab = 0.02 * jax.random.normal(kp, (max_position_embeddings, H), jnp.float32)
    type_tab = 0.02 * jax.random.normal(kt, (type_vocab_size, H), jnp.float32)
    gamma = jnp.ones((H,), jnp.float32)
    beta = jnp.zeros((H,), jnp.float32)

    # Example inputs
    input_ids = jax.random.randint(ki, (B, S), 0, vocab_size, jnp.int32)
    pos_ids = jax.random.randint(kpi, (B, S), 0, vocab_size, jnp.int32)   # POS-tag ids (word table)
    graph_rel = jax.random.randint(kg, (B, S), 0, label_size, jnp.int32)
    token_type_ids = jax.random.randint(ktt, (B, S), 0, type_vocab_size, jnp.int32)

    out = bert_graph_embeddings(input_ids, pos_ids, graph_rel, token_type_ids,
                                word_tab, label_tab, pos_tab, type_tab,
                                gamma, beta, eps=layer_norm_eps)
    out = jax.block_until_ready(out)

    ref = _reference(input_ids, pos_ids, graph_rel, token_type_ids,
                     word_tab, label_tab, pos_tab, type_tab, gamma, beta, layer_norm_eps)
    assert out.shape == (B, S, H)
    assert jnp.allclose(out, ref, atol=1e-5, rtol=1e-5)

    print("KERNEL_OK")
</pallas_src>

<mosaic_0001>
module attributes {stable_mosaic.version = 11 : i64} {
  func.func @kernel(%arg0: i32, %arg1: memref<2x16xi32, #tpu.memory_space<smem>>, %arg2: memref<2x16xi32, #tpu.memory_space<smem>>, %arg3: memref<2x16xi32, #tpu.memory_space<smem>>, %arg4: memref<512x128xf32, #tpu.memory_space<any>>, %arg5: memref<32x128xf32, #tpu.memory_space<any>>, %arg6: memref<1x1x16xi32, #tpu.memory_space<vmem>>, %arg7: memref<16x128xf32, #tpu.memory_space<vmem>>, %arg8: memref<2x128xf32, #tpu.memory_space<vmem>>, %arg9: memref<1x128xf32, #tpu.memory_space<vmem>>, %arg10: memref<1x128xf32, #tpu.memory_space<vmem>>, %arg11: memref<1x16x128xf32, #tpu.memory_space<vmem>>, %arg12: memref<16x128xf32, #tpu.memory_space<vmem>>, %arg13: memref<16x128xf32, #tpu.memory_space<vmem>>, %arg14: memref<16x128xf32, #tpu.memory_space<vmem>>, %arg15: memref<3x16x!tpu.dma_semaphore, #tpu.memory_space<semaphore_mem>>) attributes {dimension_semantics = [#tpu.dimension_semantics<parallel>], iteration_bounds = array<i64: 2>, scalar_prefetch = 3 : i64, scratch_operands = 4 : i64, tpu.core_type = #tpu.core_type<tc>, window_params = [{}, {}, {transform_indices = @transform_2, window_bounds = array<i64: 1, 1, 16>}, {pipeline_mode = #tpu.pipeline_mode<synchronous>, transform_indices = @transform_3, window_bounds = array<i64: 16, 128>}, {pipeline_mode = #tpu.pipeline_mode<synchronous>, transform_indices = @transform_4, window_bounds = array<i64: 2, 128>}, {pipeline_mode = #tpu.pipeline_mode<synchronous>, transform_indices = @transform_5, window_bounds = array<i64: 1, 128>}, {pipeline_mode = #tpu.pipeline_mode<synchronous>, transform_indices = @transform_6, window_bounds = array<i64: 1, 128>}, {transform_indices = @transform_7, window_bounds = array<i64: 1, 16, 128>}]} {
    %0 = arith.index_cast %arg0 : i32 to index
    %c0 = arith.constant 0 : index
    %1 = memref.load %arg1[%0, %c0] : memref<2x16xi32, #tpu.memory_space<smem>>
    %2 = arith.index_cast %arg0 : i32 to index
    %c0_0 = arith.constant 0 : index
    %3 = memref.load %arg2[%2, %c0_0] : memref<2x16xi32, #tpu.memory_space<smem>>
    %4 = arith.index_cast %arg0 : i32 to index
    %c0_1 = arith.constant 0 : index
    %5 = memref.load %arg3[%4, %c0_1] : memref<2x16xi32, #tpu.memory_space<smem>>
    %c0_i32 = arith.constant 0 : i32
    %c0_i32_2 = arith.constant 0 : i32
    %c0_i32_3 = arith.constant 0 : i32
    %6 = tpu.memref_slice %arg4[%1, %c0_i32_3] : memref<512x128xf32, #tpu.memory_space<any>> -> memref<1x128xf32, #tpu.memory_space<any>>
    %c0_i32_4 = arith.constant 0 : i32
    %c0_i32_5 = arith.constant 0 : i32
    %7 = tpu.memref_slice %arg12[%c0_i32_4, %c0_i32_5] : memref<16x128xf32, #tpu.memory_space<vmem>> -> memref<1x128xf32, #tpu.memory_space<vmem>>
    %8 = tpu.memref_slice %arg15[%c0_i32, %c0_i32_2] : memref<3x16x!tpu.dma_semaphore, #tpu.memory_space<semaphore_mem>> -> memref<1x1x!tpu.dma_semaphore, #tpu.memory_space<semaphore_mem>>
    %9 = tpu.memref_squeeze %8 : memref<1x1x!tpu.dma_semaphore, #tpu.memory_space<semaphore_mem>> -> memref<!tpu.dma_semaphore, #tpu.memory_space<semaphore_mem>>
    tpu.enqueue_dma source(%6 : memref<1x128xf32, #tpu.memory_space<any>>) target(%7 : memref<1x128xf32, #tpu.memory_space<vmem>>) target_semaphore(%9 : memref<!tpu.dma_semaphore, #tpu.memory_space<semaphore_mem>>)
    %c1_i32 = arith.constant 1 : i32
    %c0_i32_6 = arith.constant 0 : i32
    %c0_i32_7 = arith.constant 0 : i32
    %10 = tpu.memref_slice %arg4[%3, %c0_i32_7] : memref<512x128xf32, #tpu.memory_space<any>> -> memref<1x128xf32, #tpu.memory_space<any>>
    %c0_i32_8 = arith.constant 0 : i32
    %c0_i32_9 = arith.constant 0 : i32
    %11 = tpu.memref_slice %arg13[%c0_i32_8, %c0_i32_9] : memref<16x128xf32, #tpu.memory_space<vmem>> -> memref<1x128xf32, #tpu.memory_space<vmem>>
    %12 = tpu.memref_slice %arg15[%c1_i32, %c0_i32_6] : memref<3x16x!tpu.dma_semaphore, #tpu.memory_space<semaphore_mem>> -> memref<1x1x!tpu.dma_semaphore, #tpu.memory_space<semaphore_mem>>
    %13 = tpu.memref_squeeze %12 : memref<1x1x!tpu.dma_semaphore, #tpu.memory_space<semaphore_mem>> -> memref<!tpu.dma_semaphore, #tpu.memory_space<semaphore_mem>>
    tpu.enqueue_dma source(%10 : memref<1x128xf32, #tpu.memory_space<any>>) target(%11 : memref<1x128xf32, #tpu.memory_space<vmem>>) target_semaphore(%13 : memref<!tpu.dma_semaphore, #tpu.memory_space<semaphore_mem>>)
    %c2_i32 = arith.constant 2 : i32
    %c0_i32_10 = arith.constant 0 : i32
    %c0_i32_11 = arith.constant 0 : i32
    %14 = tpu.memref_slice %arg5[%5, %c0_i32_11] : memref<32x128xf32, #tpu.memory_space<any>> -> memref<1x128xf32, #tpu.memory_space<any>>
    %c0_i32_12 = arith.constant 0 : i32
    %c0_i32_13 = arith.constant 0 : i32
    %15 = tpu.memref_slice %arg14[%c0_i32_12, %c0_i32_13] : memref<16x128xf32, #tpu.memory_space<vmem>> -> memref<1x128xf32, #tpu.memory_space<vmem>>
    %16 = tpu.memref_slice %arg15[%c2_i32, %c0_i32_10] : memref<3x16x!tpu.dma_semaphore, #tpu.memory_space<semaphore_mem>> -> memref<1x1x!tpu.dma_semaphore, #tpu.memory_space<semaphore_mem>>
    %17 = tpu.memref_squeeze %16 : memref<1x1x!tpu.dma_semaphore, #tpu.memory_space<semaphore_mem>> -> memref<!tpu.dma_semaphore, #tpu.memory_space<semaphore_mem>>
    tpu.enqueue_dma source(%14 : memref<1x128xf32, #tpu.memory_space<any>>) target(%15 : memref<1x128xf32, #tpu.memory_space<vmem>>) target_semaphore(%17 : memref<!tpu.dma_semaphore, #tpu.memory_space<semaphore_mem>>)
    %18 = arith.index_cast %arg0 : i32 to index
    %c1 = arith.constant 1 : index
    %19 = memref.load %arg1[%18, %c1] : memref<2x16xi32, #tpu.memory_space<smem>>
    %20 = arith.index_cast %arg0 : i32 to index
    %c1_14 = arith.constant 1 : index
    %21 = memref.load %arg2[%20, %c1_14] : memref<2x16xi32, #tpu.memory_space<smem>>
    %22 = arith.index_cast %arg0 : i32 to index
    %c1_15 = arith.constant 1 : index
    %23 = memref.load %arg3[%22, %c1_15] : memref<2x16xi32, #tpu.memory_space<smem>>
    %c0_i32_16 = arith.constant 0 : i32
    %c1_i32_17 = arith.constant 1 : i32
    %c0_i32_18 = arith.constant 0 : i32
    %24 = tpu.memref_slice %arg4[%19, %c0_i32_18] : memref<512x128xf32, #tpu.memory_space<any>> -> memref<1x128xf32, #tpu.memory_space<any>>
    %c1_i32_19 = arith.constant 1 : i32
    %c0_i32_20 = arith.constant 0 : i32
    %25 = tpu.memref_slice %arg12[%c1_i32_19, %c0_i32_20] : memref<16x128xf32, #tpu.memory_space<vmem>> -> memref<1x128xf32, #tpu.memory_space<vmem>>
    %26 = tpu.memref_slice %arg15[%c0_i32_16, %c1_i32_17] : memref<3x16x!tpu.dma_semaphore, #tpu.memory_space<semaphore_mem>> -> memref<1x1x!tpu.dma_semaphore, #tpu.memory_space<semaphore_mem>>
    %27 = tpu.memref_squeeze %26 : memref<1x1x!tpu.dma_semaphore, #tpu.memory_space<semaphore_mem>> -> memref<!tpu.dma_semaphore, #tpu.memory_space<semaphore_mem>>
    tpu.enqueue_dma source(%24 : memref<1x128xf32, #tpu.memory_space<any>>) target(%25 : memref<1x128xf32, #tpu.memory_space<vmem>>) target_semaphore(%27 : memref<!tpu.dma_semaphore, #tpu.memory_space<semaphore_mem>>)
    %c1_i32_21 = arith.constant 1 : i32
    %c1_i32_22 = arith.constant 1 : i32
    %c0_i32_23 = arith.constant 0 : i32
    %28 = tpu.memref_slice %arg4[%21, %c0_i32_23] : memref<512x128xf32, #tpu.memory_space<any>> -> memref<1x128xf32, #tpu.memory_space<any>>
    %c1_i32_24 = arith.constant 1 : i32
    %c0_i32_25 = arith.constant 0 : i32
    %29 = tpu.memref_slice %arg13[%c1_i32_24, %c0_i32_25] : memref<16x128xf32, #tpu.memory_space<vmem>> -> memref<1x128xf32, #tpu.memory_space<vmem>>
    %30 = tpu.memref_slice %arg15[%c1_i32_21, %c1_i32_22] : memref<3x16x!tpu.dma_semaphore, #tpu.memory_space<semaphore_mem>> -> memref<1x1x!tpu.dma_semaphore, #tpu.memory_space<semaphore_mem>>
    %31 = tpu.memref_squeeze %30 : memref<1x1x!tpu.dma_semaphore, #tpu.memory_space<semaphore_mem>> -> memref<!tpu.dma_semaphore, #tpu.memory_space<semaphore_mem>>
    tpu.enqueue_dma source(%28 : memref<1x128xf32, #tpu.memory_space<any>>) target(%29 : memref<1x128xf32, #tpu.memory_space<vmem>>) target_semaphore(%31 : memref<!tpu.dma_semaphore, #tpu.memory_space<semaphore_mem>>)
    %c2_i32_26 = arith.constant 2 : i32
    %c1_i32_27 = arith.constant 1 : i32
    %c0_i32_28 = arith.constant 0 : i32
    %32 = tpu.memref_slice %arg5[%23, %c0_i32_28] : memref<32x128xf32, #tpu.memory_space<any>> -> memref<1x128xf32, #tpu.memory_space<any>>
    %c1_i32_29 = arith.constant 1 : i32
    %c0_i32_30 = arith.constant 0 : i32
    %33 = tpu.memref_slice %arg14[%c1_i32_29, %c0_i32_30] : memref<16x128xf32, #tpu.memory_space<vmem>> -> memref<1x128xf32, #tpu.memory_space<vmem>>
    %34 = tpu.memref_slice %arg15[%c2_i32_26, %c1_i32_27] : memref<3x16x!tpu.dma_semaphore, #tpu.memory_space<semaphore_mem>> -> memref<1x1x!tpu.dma_semaphore, #tpu.memory_space<semaphore_mem>>
    %35 = tpu.memref_squeeze %34 : memref<1x1x!tpu.dma_semaphore, #tpu.memory_space<semaphore_mem>> -> memref<!tpu.dma_semaphore, #tpu.memory_space<semaphore_mem>>
    tpu.enqueue_dma source(%32 : memref<1x128xf32, #tpu.memory_space<any>>) target(%33 : memref<1x128xf32, #tpu.memory_space<vmem>>) target_semaphore(%35 : memref<!tpu.dma_semaphore, #tpu.memory_space<semaphore_mem>>)
    %36 = arith.index_cast %arg0 : i32 to index
    %c2 = arith.constant 2 : index
    %37 = memref.load %arg1[%36, %c2] : memref<2x16xi32, #tpu.memory_space<smem>>
    %38 = arith.index_cast %arg0 : i32 to index
    %c2_31 = arith.constant 2 : index
    %39 = memref.load %arg2[%38, %c2_31] : memref<2x16xi32, #tpu.memory_space<smem>>
    %40 = arith.index_cast %arg0 : i32 to index
    %c2_32 = arith.constant 2 : index
    %41 = memref.load %arg3[%40, %c2_32] : memref<2x16xi32, #tpu.memory_space<smem>>
    %c0_i32_33 = arith.constant 0 : i32
    %c2_i32_34 = arith.constant 2 : i32
    %c0_i32_35 = arith.constant 0 : i32
    %42 = tpu.memref_slice %arg4[%37, %c0_i32_35] : memref<512x128xf32, #tpu.memory_space<any>> -> memref<1x128xf32, #tpu.memory_space<any>>
    %c2_i32_36 = arith.constant 2 : i32
    %c0_i32_37 = arith.constant 0 : i32
    %43 = tpu.memref_slice %arg12[%c2_i32_36, %c0_i32_37] : memref<16x128xf32, #tpu.memory_space<vmem>> -> memref<1x128xf32, #tpu.memory_space<vmem>>
    %44 = tpu.memref_slice %arg15[%c0_i32_33, %c2_i32_34] : memref<3x16x!tpu.dma_semaphore, #tpu.memory_space<semaphore_mem>> -> memref<1x1x!tpu.dma_semaphore, #tpu.memory_space<semaphore_mem>>
    %45 = tpu.memref_squeeze %44 : memref<1x1x!tpu.dma_semaphore, #tpu.memory_space<semaphore_mem>> -> memref<!tpu.dma_semaphore, #tpu.memory_space<semaphore_mem>>
    tpu.enqueue_dma source(%42 : memref<1x128xf32, #tpu.memory_space<any>>) target(%43 : memref<1x128xf32, #tpu.memory_space<vmem>>) target_semaphore(%45 : memref<!tpu.dma_semaphore, #tpu.memory_space<semaphore_mem>>)
    %c1_i32_38 = arith.constant 1 : i32
    %c2_i32_39 = arith.constant 2 : i32
    %c0_i32_40 = arith.constant 0 : i32
    %46 = tpu.memref_slice %arg4[%39, %c0_i32_40] : memref<512x128xf32, #tpu.memory_space<any>> -> memref<1x128xf32, #tpu.memory_space<any>>
    %c2_i32_41 = arith.constant 2 : i32
    %c0_i32_42 = arith.constant 0 : i32
    %47 = tpu.memref_slice %arg13[%c2_i32_41, %c0_i32_42] : memref<16x128xf32, #tpu.memory_space<vmem>> -> memref<1x128xf32, #tpu.memory_space<vmem>>
    %48 = tpu.memref_slice %arg15[%c1_i32_38, %c2_i32_39] : memref<3x16x!tpu.dma_semaphore, #tpu.memory_space<semaphore_mem>> -> memref<1x1x!tpu.dma_semaphore, #tpu.memory_space<semaphore_mem>>
    %49 = tpu.memref_squeeze %48 : memref<1x1x!tpu.dma_semaphore, #tpu.memory_space<semaphore_mem>> -> memref<!tpu.dma_semaphore, #tpu.memory_space<semaphore_mem>>
    tpu.enqueue_dma source(%46 : memref<1x128xf32, #tpu.memory_space<any>>) target(%47 : memref<1x128xf32, #tpu.memory_space<vmem>>) target_semaphore(%49 : memref<!tpu.dma_semaphore, #tpu.memory_space<semaphore_mem>>)
    %c2_i32_43 = arith.constant 2 : i32
    %c2_i32_44 = arith.constant 2 : i32
    %c0_i32_45 = arith.constant 0 : i32
    %50 = tpu.memref_slice %arg5[%41, %c0_i32_45] : memref<32x128xf32, #tpu.memory_space<any>> -> memref<1x128xf32, #tpu.memory_space<any>>
    %c2_i32_46 = arith.constant 2 : i32
    %c0_i32_47 = arith.constant 0 : i32
    %51 = tpu.memref_slice %arg14[%c2_i32_46, %c0_i32_47] : memref<16x128xf32, #tpu.memory_space<vmem>> -> memref<1x128xf32, #tpu.memory_space<vmem>>
    %52 = tpu.memref_slice %arg15[%c2_i32_43, %c2_i32_44] : memref<3x16x!tpu.dma_semaphore, #tpu.memory_space<semaphore_mem>> -> memref<1x1x!tpu.dma_semaphore, #tpu.memory_space<semaphore_mem>>
    %53 = tpu.memref_squeeze %52 : memref<1x1x!tpu.dma_semaphore, #tpu.memory_space<semaphore_mem>> -> memref<!tpu.dma_semaphore, #tpu.memory_space<semaphore_mem>>
    tpu.enqueue_dma source(%50 : memref<1x128xf32, #tpu.memory_space<any>>) target(%51 : memref<1x128xf32, #tpu.memory_space<vmem>>) target_semaphore(%53 : memref<!tpu.dma_semaphore, #tpu.memory_space<semaphore_mem>>)
    %54 = arith.index_cast %arg0 : i32 to index
    %c3 = arith.constant 3 : index
    %55 = memref.load %arg1[%54, %c3] : memref<2x16xi32, #tpu.memory_space<smem>>
    %56 = arith.index_cast %arg0 : i32 to index
    %c3_48 = arith.constant 3 : index
    %57 = memref.load %arg2[%56, %c3_48] : memref<2x16xi32, #tpu.memory_space<smem>>
    %58 = arith.index_cast %arg0 : i32 to index
    %c3_49 = arith.constant 3 : index
    %59 = memref.load %arg3[%58, %c3_49] : memref<2x16xi32, #tpu.memory_space<smem>>
    %c0_i32_50 = arith.constant 0 : i32
    %c3_i32 = arith.constant 3 : i32
    %c0_i32_51 = arith.constant 0 : i32
    %60 = tpu.memref_slice %arg4[%55, %c0_i32_51] : memref<512x128xf32, #tpu.memory_space<any>> -> memref<1x128xf32, #tpu.memory_space<any>>
    %c3_i32_52 = arith.constant 3 : i32
    %c0_i32_53 = arith.constant 0 : i32
    %61 = tpu.memref_slice %arg12[%c3_i32_52, %c0_i32_53] : memref<16x128xf32, #tpu.memory_space<vmem>> -> memref<1x128xf32, #tpu.memory_space<vmem>>
    %62 = tpu.memref_slice %arg15[%c0_i32_50, %c3_i32] : memref<3x16x!tpu.dma_semaphore, #tpu.memory_space<semaphore_mem>> -> memref<1x1x!tpu.dma_semaphore, #tpu.memory_space<semaphore_mem>>
    %63 = tpu.memref_squeeze %62 : memref<1x1x!tpu.dma_semaphore, #tpu.memory_space<semaphore_mem>> -> memref<!tpu.dma_semaphore, #tpu.memory_space<semaphore_mem>>
    tpu.enqueue_dma source(%60 : memref<1x128xf32, #tpu.memory_space<any>>) target(%61 : memref<1x128xf32, #tpu.memory_space<vmem>>) target_semaphore(%63 : memref<!tpu.dma_semaphore, #tpu.memory_space<semaphore_mem>>)
    %c1_i32_54 = arith.constant 1 : i32
    %c3_i32_55 = arith.constant 3 : i32
    %c0_i32_56 = arith.constant 0 : i32
    %64 = tpu.memref_slice %arg4[%57, %c0_i32_56] : memref<512x128xf32, #tpu.memory_space<any>> -> memref<1x128xf32, #tpu.memory_space<any>>
    %c3_i32_57 = arith.constant 3 : i32
    %c0_i32_58 = arith.constant 0 : i32
    %65 = tpu.memref_slice %arg13[%c3_i32_57, %c0_i32_58] : memref<16x128xf32, #tpu.memory_space<vmem>> -> memref<1x128xf32, #tpu.memory_space<vmem>>
    %66 = tpu.memref_slice %arg15[%c1_i32_54, %c3_i32_55] : memref<3x16x!tpu.dma_semaphore, #tpu.memory_space<semaphore_mem>> -> memref<1x1x!tpu.dma_semaphore, #tpu.memory_space<semaphore_mem>>
    %67 = tpu.memref_squeeze %66 : memref<1x1x!tpu.dma_semaphore, #tpu.memory_space<semaphore_mem>> -> memref<!tpu.dma_semaphore, #tpu.memory_space<semaphore_mem>>
    tpu.enqueue_dma source(%64 : memref<1x128xf32, #tpu.memory_space<any>>) target(%65 : memref<1x128xf32, #tpu.memory_space<vmem>>) target_semaphore(%67 : memref<!tpu.dma_semaphore, #tpu.memory_space<semaphore_mem>>)
    %c2_i32_59 = arith.constant 2 : i32
    %c3_i32_60 = arith.constant 3 : i32
    %c0_i32_61 = arith.constant 0 : i32
    %68 = tpu.memref_slice %arg5[%59, %c0_i32_61] : memref<32x128xf32, #tpu.memory_space<any>> -> memref<1x128xf32, #tpu.memory_space<any>>
    %c3_i32_62 = arith.constant 3 : i32
    %c0_i32_63 = arith.constant 0 : i32
    %69 = tpu.memref_slice %arg14[%c3_i32_62, %c0_i32_63] : memref<16x128xf32, #tpu.memory_space<vmem>> -> memref<1x128xf32, #tpu.memory_space<vmem>>
    %70 = tpu.memref_slice %arg15[%c2_i32_59, %c3_i32_60] : memref<3x16x!tpu.dma_semaphore, #tpu.memory_space<semaphore_mem>> -> memref<1x1x!tpu.dma_semaphore, #tpu.memory_space<semaphore_mem>>
    %71 = tpu.memref_squeeze %70 : memref<1x1x!tpu.dma_semaphore, #tpu.memory_space<semaphore_mem>> -> memref<!tpu.dma_semaphore, #tpu.memory_space<semaphore_mem>>
    tpu.enqueue_dma source(%68 : memref<1x128xf32, #tpu.memory_space<any>>) target(%69 : memref<1x128xf32, #tpu.memory_space<vmem>>) target_semaphore(%71 : memref<!tpu.dma_semaphore, #tpu.memory_space<semaphore_mem>>)
    %72 = arith.index_cast %arg0 : i32 to index
    %c4 = arith.constant 4 : index
    %73 = memref.load %arg1[%72, %c4] : memref<2x16xi32, #tpu.memory_space<smem>>
    %74 = arith.index_cast %arg0 : i32 to index
    %c4_64 = arith.constant 4 : index
    %75 = memref.load %arg2[%74, %c4_64] : memref<2x16xi32, #tpu.memory_space<smem>>
    %76 = arith.index_cast %arg0 : i32 to index
    %c4_65 = arith.constant 4 : index
    %77 = memref.load %arg3[%76, %c4_65] : memref<2x16xi32, #tpu.memory_space<smem>>
    %c0_i32_66 = arith.constant 0 : i32
    %c4_i32 = arith.constant 4 : i32
    %c0_i32_67 = arith.constant 0 : i32
    %78 = tpu.memref_slice %arg4[%73, %c0_i32_67] : memref<512x128xf32, #tpu.memory_space<any>> -> memref<1x128xf32, #tpu.memory_space<any>>
    %c4_i32_68 = arith.constant 4 : i32
    %c0_i32_69 = arith.constant 0 : i32
    %79 = tpu.memref_slice %arg12[%c4_i32_68, %c0_i32_69] : memref<16x128xf32, #tpu.memory_space<vmem>> -> memref<1x128xf32, #tpu.memory_space<vmem>>
    %80 = tpu.memref_slice %arg15[%c0_i32_66, %c4_i32] : memref<3x16x!tpu.dma_semaphore, #tpu.memory_space<semaphore_mem>> -> memref<1x1x!tpu.dma_semaphore, #tpu.memory_space<semaphore_mem>>
    %81 = tpu.memref_squeeze %80 : memref<1x1x!tpu.dma_semaphore, #tpu.memory_space<semaphore_mem>> -> memref<!tpu.dma_semaphore, #tpu.memory_space<semaphore_mem>>
    tpu.enqueue_dma source(%78 : memref<1x128xf32, #tpu.memory_space<any>>) target(%79 : memref<1x128xf32, #tpu.memory_space<vmem>>) target_semaphore(%81 : memref<!tpu.dma_semaphore, #tpu.memory_space<semaphore_mem>>)
    %c1_i32_70 = arith.constant 1 : i32
    %c4_i32_71 = arith.constant 4 : i32
    %c0_i32_72 = arith.constant 0 : i32
    %82 = tpu.memref_slice %arg4[%75, %c0_i32_72] : memref<512x128xf32, #tpu.memory_space<any>> -> memref<1x128xf32, #tpu.memory_space<any>>
    %c4_i32_73 = arith.constant 4 : i32
    %c0_i32_74 = arith.constant 0 : i32
    %83 = tpu.memref_slice %arg13[%c4_i32_73, %c0_i32_74] : memref<16x128xf32, #tpu.memory_space<vmem>> -> memref<1x128xf32, #tpu.memory_space<vmem>>
    %84 = tpu.memref_slice %arg15[%c1_i32_70, %c4_i32_71] : memref<3x16x!tpu.dma_semaphore, #tpu.memory_space<semaphore_mem>> -> memref<1x1x!tpu.dma_semaphore, #tpu.memory_space<semaphore_mem>>
    %85 = tpu.memref_squeeze %84 : memref<1x1x!tpu.dma_semaphore, #tpu.memory_space<semaphore_mem>> -> memref<!tpu.dma_semaphore, #tpu.memory_space<semaphore_mem>>
    tpu.enqueue_dma source(%82 : memref<1x128xf32, #tpu.memory_space<any>>) target(%83 : memref<1x128xf32, #tpu.memory_space<vmem>>) target_semaphore(%85 : memref<!tpu.dma_semaphore, #tpu.memory_space<semaphore_mem>>)
    %c2_i32_75 = arith.constant 2 : i32
    %c4_i32_76 = arith.constant 4 : i32
    %c0_i32_77 = arith.constant 0 : i32
    %86 = tpu.memref_slice %arg5[%77, %c0_i32_77] : memref<32x128xf32, #tpu.memory_space<any>> -> memref<1x128xf32, #tpu.memory_space<any>>
    %c4_i32_78 = arith.constant 4 : i32
    %c0_i32_79 = arith.constant 0 : i32
    %87 = tpu.memref_slice %arg14[%c4_i32_78, %c0_i32_79] : memref<16x128xf32, #tpu.memory_space<vmem>> -> memref<1x128xf32, #tpu.memory_space<vmem>>
    %88 = tpu.memref_slice %arg15[%c2_i32_75, %c4_i32_76] : memref<3x16x!tpu.dma_semaphore, #tpu.memory_space<semaphore_mem>> -> memref<1x1x!tpu.dma_semaphore, #tpu.memory_space<semaphore_mem>>
    %89 = tpu.memref_squeeze %88 : memref<1x1x!tpu.dma_semaphore, #tpu.memory_space<semaphore_mem>> -> memref<!tpu.dma_semaphore, #tpu.memory_space<semaphore_mem>>
    tpu.enqueue_dma source(%86 : memref<1x128xf32, #tpu.memory_space<any>>) target(%87 : memref<1x128xf32, #tpu.memory_space<vmem>>) target_semaphore(%89 : memref<!tpu.dma_semaphore, #tpu.memory_space<semaphore_mem>>)
    %90 = arith.index_cast %arg0 : i32 to index
    %c5 = arith.constant 5 : index
    %91 = memref.load %arg1[%90, %c5] : memref<2x16xi32, #tpu.memory_space<smem>>
    %92 = arith.index_cast %arg0 : i32 to index
    %c5_80 = arith.constant 5 : index
    %93 = memref.load %arg2[%92, %c5_80] : memref<2x16xi32, #tpu.memory_space<smem>>
    %94 = arith.index_cast %arg0 : i32 to index
    %c5_81 = arith.constant 5 : index
    %95 = memref.load %arg3[%94, %c5_81] : memref<2x16xi32, #tpu.memory_space<smem>>
    %c0_i32_82 = arith.constant 0 : i32
    %c5_i32 = arith.constant 5 : i32
    %c0_i32_83 = arith.constant 0 : i32
    %96 = tpu.memref_slice %arg4[%91, %c0_i32_83] : memref<512x128xf32, #tpu.memory_space<any>> -> memref<1x128xf32, #tpu.memory_space<any>>
    %c5_i32_84 = arith.constant 5 : i32
    %c0_i32_85 = arith.constant 0 : i32
    %97 = tpu.memref_slice %arg12[%c5_i32_84, %c0_i32_85] : memref<16x128xf32, #tpu.memory_space<vmem>> -> memref<1x128xf32, #tpu.memory_space<vmem>>
    %98 = tpu.memref_slice %arg15[%c0_i32_82, %c5_i32] : memref<3x16x!tpu.dma_semaphore, #tpu.memory_space<semaphore_mem>> -> memref<1x1x!tpu.dma_semaphore, #tpu.memory_space<semaphore_mem>>
    %99 = tpu.memref_squeeze %98 : memref<1x1x!tpu.dma_semaphore, #tpu.memory_space<semaphore_mem>> -> memref<!tpu.dma_semaphore, #tpu.memory_space<semaphore_mem>>
    tpu.enqueue_dma source(%96 : memref<1x128xf32, #tpu.memory_space<any>>) target(%97 : memref<1x128xf32, #tpu.memory_space<vmem>>) target_semaphore(%99 : memref<!tpu.dma_semaphore, #tpu.memory_space<semaphore_mem>>)
    %c1_i32_86 = arith.constant 1 : i32
    %c5_i32_87 = arith.constant 5 : i32
    %c0_i32_88 = arith.constant 0 : i32
    %100 = tpu.memref_slice %arg4[%93, %c0_i32_88] : memref<512x128xf32, #tpu.memory_space<any>> -> memref<1x128xf32, #tpu.memory_space<any>>
    %c5_i32_89 = arith.constant 5 : i32
    %c0_i32_90 = arith.constant 0 : i32
    %101 = tpu.memref_slice %arg13[%c5_i32_89, %c0_i32_90] : memref<16x128xf32, #tpu.memory_space<vmem>> -> memref<1x128xf32, #tpu.memory_space<vmem>>
    %102 = tpu.memref_slice %arg15[%c1_i32_86, %c5_i32_87] : memref<3x16x!tpu.dma_semaphore, #tpu.memory_space<semaphore_mem>> -> memref<1x1x!tpu.dma_semaphore, #tpu.memory_space<semaphore_mem>>
    %103 = tpu.memref_squeeze %102 : memref<1x1x!tpu.dma_semaphore, #tpu.memory_space<semaphore_mem>> -> memref<!tpu.dma_semaphore, #tpu.memory_space<semaphore_mem>>
    tpu.enqueue_dma source(%100 : memref<1x128xf32, #tpu.memory_space<any>>) target(%101 : memref<1x128xf32, #tpu.memory_space<vmem>>) target_semaphore(%103 : memref<!tpu.dma_semaphore, #tpu.memory_space<semaphore_mem>>)
    %c2_i32_91 = arith.constant 2 : i32
    %c5_i32_92 = arith.constant 5 : i32
    %c0_i32_93 = arith.constant 0 : i32
    %104 = tpu.memref_slice %arg5[%95, %c0_i32_93] : memref<32x128xf32, #tpu.memory_space<any>> -> memref<1x128xf32, #tpu.memory_space<any>>
    %c5_i32_94 = arith.constant 5 : i32
    %c0_i32_95 = arith.constant 0 : i32
    %105 = tpu.memref_slice %arg14[%c5_i32_94, %c0_i32_95] : memref<16x128xf32, #tpu.memory_space<vmem>> -> memref<1x128xf32, #tpu.memory_space<vmem>>
    %106 = tpu.memref_slice %arg15[%c2_i32_91, %c5_i32_92] : memref<3x16x!tpu.dma_semaphore, #tpu.memory_space<semaphore_mem>> -> memref<1x1x!tpu.dma_semaphore, #tpu.memory_space<semaphore_mem>>
    %107 = tpu.memref_squeeze %106 : memref<1x1x!tpu.dma_semaphore, #tpu.memory_space<semaphore_mem>> -> memref<!tpu.dma_semaphore, #tpu.memory_space<semaphore_mem>>
    tpu.enqueue_dma source(%104 : memref<1x128xf32, #tpu.memory_space<any>>) target(%105 : memref<1x128xf32, #tpu.memory_space<vmem>>) target_semaphore(%107 : memref<!tpu.dma_semaphore, #tpu.memory_space<semaphore_mem>>)
    %108 = arith.index_cast %arg0 : i32 to index
    %c6 = arith.constant 6 : index
    %109 = memref.load %arg1[%108, %c6] : memref<2x16xi32, #tpu.memory_space<smem>>
    %110 = arith.index_cast %arg0 : i32 to index
    %c6_96 = arith.constant 6 : index
    %111 = memref.load %arg2[%110, %c6_96] : memref<2x16xi32, #tpu.memory_space<smem>>
    %112 = arith.index_cast %arg0 : i32 to index
    %c6_97 = arith.constant 6 : index
    %113 = memref.load %arg3[%112, %c6_97] : memref<2x16xi32, #tpu.memory_space<smem>>
    %c0_i32_98 = arith.constant 0 : i32
    %c6_i32 = arith.constant 6 : i32
    %c0_i32_99 = arith.constant 0 : i32
    %114 = tpu.memref_slice %arg4[%109, %c0_i32_99] : memref<512x128xf32, #tpu.memory_space<any>> -> memref<1x128xf32, #tpu.memory_space<any>>
    %c6_i32_100 = arith.constant 6 : i32
    %c0_i32_101 = arith.constant 0 : i32
    %115 = tpu.memref_slice %arg12[%c6_i32_100, %c0_i32_101] : memref<16x128xf32, #tpu.memory_space<vmem>> -> memref<1x128xf32, #tpu.memory_space<vmem>>
    %116 = tpu.memref_slice %arg15[%c0_i32_98, %c6_i32] : memref<3x16x!tpu.dma_semaphore, #tpu.memory_space<semaphore_mem>> -> memref<1x1x!tpu.dma_semaphore, #tpu.memory_space<semaphore_mem>>
    %117 = tpu.memref_squeeze %116 : memref<1x1x!tpu.dma_semaphore, #tpu.memory_space<semaphore_mem>> -> memref<!tpu.dma_semaphore, #tpu.memory_space<semaphore_mem>>
    tpu.enqueue_dma source(%114 : memref<1x128xf32, #tpu.memory_space<any>>) target(%115 : memref<1x128xf32, #tpu.memory_space<vmem>>) target_semaphore(%117 : memref<!tpu.dma_semaphore, #tpu.memory_space<semaphore_mem>>)
    %c1_i32_102 = arith.constant 1 : i32
    %c6_i32_103 = arith.constant 6 : i32
    %c0_i32_104 = arith.constant 0 : i32
    %118 = tpu.memref_slice %arg4[%111, %c0_i32_104] : memref<512x128xf32, #tpu.memory_space<any>> -> memref<1x128xf32, #tpu.memory_space<any>>
    %c6_i32_105 = arith.constant 6 : i32
    %c0_i32_106 = arith.constant 0 : i32
    %119 = tpu.memref_slice %arg13[%c6_i32_105, %c0_i32_106] : memref<16x128xf32, #tpu.memory_space<vmem>> -> memref<1x128xf32, #tpu.memory_space<vmem>>
    %120 = tpu.memref_slice %arg15[%c1_i32_102, %c6_i32_103] : memref<3x16x!tpu.dma_semaphore, #tpu.memory_space<semaphore_mem>> -> memref<1x1x!tpu.dma_semaphore, #tpu.memory_space<semaphore_mem>>
    %121 = tpu.memref_squeeze %120 : memref<1x1x!tpu.dma_semaphore, #tpu.memory_space<semaphore_mem>> -> memref<!tpu.dma_semaphore, #tpu.memory_space<semaphore_mem>>
    tpu.enqueue_dma source(%118 : memref<1x128xf32, #tpu.memory_space<any>>) target(%119 : memref<1x128xf32, #tpu.memory_space<vmem>>) target_semaphore(%121 : memref<!tpu.dma_semaphore, #tpu.memory_space<semaphore_mem>>)
    %c2_i32_107 = arith.constant 2 : i32
    %c6_i32_108 = arith.constant 6 : i32
    %c0_i32_109 = arith.constant 0 : i32
    %122 = tpu.memref_slice %arg5[%113, %c0_i32_109] : memref<32x128xf32, #tpu.memory_space<any>> -> memref<1x128xf32, #tpu.memory_space<any>>
    %c6_i32_110 = arith.constant 6 : i32
    %c0_i32_111 = arith.constant 0 : i32
    %123 = tpu.memref_slice %arg14[%c6_i32_110, %c0_i32_111] : memref<16x128xf32, #tpu.memory_space<vmem>> -> memref<1x128xf32, #tpu.memory_space<vmem>>
    %124 = tpu.memref_slice %arg15[%c2_i32_107, %c6_i32_108] : memref<3x16x!tpu.dma_semaphore, #tpu.memory_space<semaphore_mem>> -> memref<1x1x!tpu.dma_semaphore, #tpu.memory_space<semaphore_mem>>
    %125 = tpu.memref_squeeze %124 : memref<1x1x!tpu.dma_semaphore, #tpu.memory_space<semaphore_mem>> -> memref<!tpu.dma_semaphore, #tpu.memory_space<semaphore_mem>>
    tpu.enqueue_dma source(%122 : memref<1x128xf32, #tpu.memory_space<any>>) target(%123 : memref<1x128xf32, #tpu.memory_space<vmem>>) target_semaphore(%125 : memref<!tpu.dma_semaphore, #tpu.memory_space<semaphore_mem>>)
    %126 = arith.index_cast %arg0 : i32 to index
    %c7 = arith.constant 7 : index
    %127 = memref.load %arg1[%126, %c7] : memref<2x16xi32, #tpu.memory_space<smem>>
    %128 = arith.index_cast %arg0 : i32 to index
    %c7_112 = arith.constant 7 : index
    %129 = memref.load %arg2[%128, %c7_112] : memref<2x16xi32, #tpu.memory_space<smem>>
    %130 = arith.index_cast %arg0 : i32 to index
    %c7_113 = arith.constant 7 : index
    %131 = memref.load %arg3[%130, %c7_113] : memref<2x16xi32, #tpu.memory_space<smem>>
    %c0_i32_114 = arith.constant 0 : i32
    %c7_i32 = arith.constant 7 : i32
    %c0_i32_115 = arith.constant 0 : i32
    %132 = tpu.memref_slice %arg4[%127, %c0_i32_115] : memref<512x128xf32, #tpu.memory_space<any>> -> memref<1x128xf32, #tpu.memory_space<any>>
    %c7_i32_116 = arith.constant 7 : i32
    %c0_i32_117 = arith.constant 0 : i32
    %133 = tpu.memref_slice %arg12[%c7_i32_116, %c0_i32_117] : memref<16x128xf32, #tpu.memory_space<vmem>> -> memref<1x128xf32, #tpu.memory_space<vmem>>
    %134 = tpu.memref_slice %arg15[%c0_i32_114, %c7_i32] : memref<3x16x!tpu.dma_semaphore, #tpu.memory_space<semaphore_mem>> -> memref<1x1x!tpu.dma_semaphore, #tpu.memory_space<semaphore_mem>>
    %135 = tpu.memref_squeeze %134 : memref<1x1x!tpu.dma_semaphore, #tpu.memory_space<semaphore_mem>> -> memref<!tpu.dma_semaphore, #tpu.memory_space<semaphore_mem>>
    tpu.enqueue_dma source(%132 : memref<1x128xf32, #tpu.memory_space<any>>) target(%133 : memref<1x128xf32, #tpu.memory_space<vmem>>) target_semaphore(%135 : memref<!tpu.dma_semaphore, #tpu.memory_space<semaphore_mem>>)
    %c1_i32_118 = arith.constant 1 : i32
    %c7_i32_119 = arith.constant 7 : i32
    %c0_i32_120 = arith.constant 0 : i32
    %136 = tpu.memref_slice %arg4[%129, %c0_i32_120] : memref<512x128xf32, #tpu.memory_space<any>> -> memref<1x128xf32, #tpu.memory_space<any>>
    %c7_i32_121 = arith.constant 7 : i32
    %c0_i32_122 = arith.constant 0 : i32
    %137 = tpu.memref_slice %arg13[%c7_i32_121, %c0_i32_122] : memref<16x128xf32, #tpu.memory_space<vmem>> -> memref<1x128xf32, #tpu.memory_space<vmem>>
    %138 = tpu.memref_slice %arg15[%c1_i32_118, %c7_i32_119] : memref<3x16x!tpu.dma_semaphore, #tpu.memory_space<semaphore_mem>> -> memref<1x1x!tpu.dma_semaphore, #tpu.memory_space<semaphore_mem>>
    %139 = tpu.memref_squeeze %138 : memref<1x1x!tpu.dma_semaphore, #tpu.memory_space<semaphore_mem>> -> memref<!tpu.dma_semaphore, #tpu.memory_space<semaphore_mem>>
    tpu.enqueue_dma source(%136 : memref<1x128xf32, #tpu.memory_space<any>>) target(%137 : memref<1x128xf32, #tpu.memory_space<vmem>>) target_semaphore(%139 : memref<!tpu.dma_semaphore, #tpu.memory_space<semaphore_mem>>)
    %c2_i32_123 = arith.constant 2 : i32
    %c7_i32_124 = arith.constant 7 : i32
    %c0_i32_125 = arith.constant 0 : i32
    %140 = tpu.memref_slice %arg5[%131, %c0_i32_125] : memref<32x128xf32, #tpu.memory_space<any>> -> memref<1x128xf32, #tpu.memory_space<any>>
    %c7_i32_126 = arith.constant 7 : i32
    %c0_i32_127 = arith.constant 0 : i32
    %141 = tpu.memref_slice %arg14[%c7_i32_126, %c0_i32_127] : memref<16x128xf32, #tpu.memory_space<vmem>> -> memref<1x128xf32, #tpu.memory_space<vmem>>
    %142 = tpu.memref_slice %arg15[%c2_i32_123, %c7_i32_124] : memref<3x16x!tpu.dma_semaphore, #tpu.memory_space<semaphore_mem>> -> memref<1x1x!tpu.dma_semaphore, #tpu.memory_space<semaphore_mem>>
    %143 = tpu.memref_squeeze %142 : memref<1x1x!tpu.dma_semaphore, #tpu.memory_space<semaphore_mem>> -> memref<!tpu.dma_semaphore, #tpu.memory_space<semaphore_mem>>
    tpu.enqueue_dma source(%140 : memref<1x128xf32, #tpu.memory_space<any>>) target(%141 : memref<1x128xf32, #tpu.memory_space<vmem>>) target_semaphore(%143 : memref<!tpu.dma_semaphore, #tpu.memory_space<semaphore_mem>>)
    %144 = arith.index_cast %arg0 : i32 to index
    %c8 = arith.constant 8 : index
    %145 = memref.load %arg1[%144, %c8] : memref<2x16xi32, #tpu.memory_space<smem>>
    %146 = arith.index_cast %arg0 : i32 to index
    %c8_128 = arith.constant 8 : index
    %147 = memref.load %arg2[%146, %c8_128] : memref<2x16xi32, #tpu.memory_space<smem>>
    %148 = arith.index_cast %arg0 : i32 to index
    %c8_129 = arith.constant 8 : index
    %149 = memref.load %arg3[%148, %c8_129] : memref<2x16xi32, #tpu.memory_space<smem>>
    %c0_i32_130 = arith.constant 0 : i32
    %c8_i32 = arith.constant 8 : i32
    %c0_i32_131 = arith.constant 0 : i32
    %150 = tpu.memref_slice %arg4[%145, %c0_i32_131] : memref<512x128xf32, #tpu.memory_space<any>> -> memref<1x128xf32, #tpu.memory_space<any>>
    %c8_i32_132 = arith.constant 8 : i32
    %c0_i32_133 = arith.constant 0 : i32
    %151 = tpu.memref_slice %arg12[%c8_i32_132, %c0_i32_133] : memref<16x128xf32, #tpu.memory_space<vmem>> -> memref<1x128xf32, #tpu.memory_space<vmem>>
    %152 = tpu.memref_slice %arg15[%c0_i32_130, %c8_i32] : memref<3x16x!tpu.dma_semaphore, #tpu.memory_space<semaphore_mem>> -> memref<1x1x!tpu.dma_semaphore, #tpu.memory_space<semaphore_mem>>
    %153 = tpu.memref_squeeze %152 : memref<1x1x!tpu.dma_semaphore, #tpu.memory_space<semaphore_mem>> -> memref<!tpu.dma_semaphore, #tpu.memory_space<semaphore_mem>>
    tpu.enqueue_dma source(%150 : memref<1x128xf32, #tpu.memory_space<any>>) target(%151 : memref<1x128xf32, #tpu.memory_space<vmem>>) target_semaphore(%153 : memref<!tpu.dma_semaphore, #tpu.memory_space<semaphore_mem>>)
    %c1_i32_134 = arith.constant 1 : i32
    %c8_i32_135 = arith.constant 8 : i32
    %c0_i32_136 = arith.constant 0 : i32
    %154 = tpu.memref_slice %arg4[%147, %c0_i32_136] : memref<512x128xf32, #tpu.memory_space<any>> -> memref<1x128xf32, #tpu.memory_space<any>>
    %c8_i32_137 = arith.constant 8 : i32
    %c0_i32_138 = arith.constant 0 : i32
    %155 = tpu.memref_slice %arg13[%c8_i32_137, %c0_i32_138] : memref<16x128xf32, #tpu.memory_space<vmem>> -> memref<1x128xf32, #tpu.memory_space<vmem>>
    %156 = tpu.memref_slice %arg15[%c1_i32_134, %c8_i32_135] : memref<3x16x!tpu.dma_semaphore, #tpu.memory_space<semaphore_mem>> -> memref<1x1x!tpu.dma_semaphore, #tpu.memory_space<semaphore_mem>>
    %157 = tpu.memref_squeeze %156 : memref<1x1x!tpu.dma_semaphore, #tpu.memory_space<semaphore_mem>> -> memref<!tpu.dma_semaphore, #tpu.memory_space<semaphore_mem>>
    tpu.enqueue_dma source(%154 : memref<1x128xf32, #tpu.memory_space<any>>) target(%155 : memref<1x128xf32, #tpu.memory_space<vmem>>) target_semaphore(%157 : memref<!tpu.dma_semaphore, #tpu.memory_space<semaphore_mem>>)
    %c2_i32_139 = arith.constant 2 : i32
    %c8_i32_140 = arith.constant 8 : i32
    %c0_i32_141 = arith.constant 0 : i32
    %158 = tpu.memref_slice %arg5[%149, %c0_i32_141] : memref<32x128xf32, #tpu.memory_space<any>> -> memref<1x128xf32, #tpu.memory_space<any>>
    %c8_i32_142 = arith.constant 8 : i32
    %c0_i32_143 = arith.constant 0 : i32
    %159 = tpu.memref_slice %arg14[%c8_i32_142, %c0_i32_143] : memref<16x128xf32, #tpu.memory_space<vmem>> -> memref<1x128xf32, #tpu.memory_space<vmem>>
    %160 = tpu.memref_slice %arg15[%c2_i32_139, %c8_i32_140] : memref<3x16x!tpu.dma_semaphore, #tpu.memory_space<semaphore_mem>> -> memref<1x1x!tpu.dma_semaphore, #tpu.memory_space<semaphore_mem>>
    %161 = tpu.memref_squeeze %160 : memref<1x1x!tpu.dma_semaphore, #tpu.memory_space<semaphore_mem>> -> memref<!tpu.dma_semaphore, #tpu.memory_space<semaphore_mem>>
    tpu.enqueue_dma source(%158 : memref<1x128xf32, #tpu.memory_space<any>>) target(%159 : memref<1x128xf32, #tpu.memory_space<vmem>>) target_semaphore(%161 : memref<!tpu.dma_semaphore, #tpu.memory_space<semaphore_mem>>)
    %162 = arith.index_cast %arg0 : i32 to index
    %c9 = arith.constant 9 : index
    %163 = memref.load %arg1[%162, %c9] : memref<2x16xi32, #tpu.memory_space<smem>>
    %164 = arith.index_cast %arg0 : i32 to index
    %c9_144 = arith.constant 9 : index
    %165 = memref.load %arg2[%164, %c9_144] : memref<2x16xi32, #tpu.memory_space<smem>>
    %166 = arith.index_cast %arg0 : i32 to index
    %c9_145 = arith.constant 9 : index
    %167 = memref.load %arg3[%166, %c9_145] : memref<2x16xi32, #tpu.memory_space<smem>>
    %c0_i32_146 = arith.constant 0 : i32
    %c9_i32 = arith.constant 9 : i32
    %c0_i32_147 = arith.constant 0 : i32
    %168 = tpu.memref_slice %arg4[%163, %c0_i32_147] : memref<512x128xf32, #tpu.memory_space<any>> -> memref<1x128xf32, #tpu.memory_space<any>>
    %c9_i32_148 = arith.constant 9 : i32
    %c0_i32_149 = arith.constant 0 : i32
    %169 = tpu.memref_slice %arg12[%c9_i32_148, %c0_i32_149] : memref<16x128xf32, #tpu.memory_space<vmem>> -> memref<1x128xf32, #tpu.memory_space<vmem>>
    %170 = tpu.memref_slice %arg15[%c0_i32_146, %c9_i32] : memref<3x16x!tpu.dma_semaphore, #tpu.memory_space<semaphore_mem>> -> memref<1x1x!tpu.dma_semaphore, #tpu.memory_space<semaphore_mem>>
    %171 = tpu.memref_squeeze %170 : memref<1x1x!tpu.dma_semaphore, #tpu.memory_space<semaphore_mem>> -> memref<!tpu.dma_semaphore, #tpu.memory_space<semaphore_mem>>
    tpu.enqueue_dma source(%168 : memref<1x128xf32, #tpu.memory_space<any>>) target(%169 : memref<1x128xf32, #tpu.memory_space<vmem>>) target_semaphore(%171 : memref<!tpu.dma_semaphore, #tpu.memory_space<semaphore_mem>>)
    %c1_i32_150 = arith.constant 1 : i32
    %c9_i32_151 = arith.constant 9 : i32
    %c0_i32_152 = arith.constant 0 : i32
    %172 = tpu.memref_slice %arg4[%165, %c0_i32_152] : memref<512x128xf32, #tpu.memory_space<any>> -> memref<1x128xf32, #tpu.memory_space<any>>
    %c9_i32_153 = arith.constant 9 : i32
    %c0_i32_154 = arith.constant 0 : i32
    %173 = tpu.memref_slice %arg13[%c9_i32_153, %c0_i32_154] : memref<16x128xf32, #tpu.memory_space<vmem>> -> memref<1x128xf32, #tpu.memory_space<vmem>>
    %174 = tpu.memref_slice %arg15[%c1_i32_150, %c9_i32_151] : memref<3x16x!tpu.dma_semaphore, #tpu.memory_space<semaphore_mem>> -> memref<1x1x!tpu.dma_semaphore, #tpu.memory_space<semaphore_mem>>
    %175 = tpu.memref_squeeze %174 : memref<1x1x!tpu.dma_semaphore, #tpu.memory_space<semaphore_mem>> -> memref<!tpu.dma_semaphore, #tpu.memory_space<semaphore_mem>>
    tpu.enqueue_dma source(%172 : memref<1x128xf32, #tpu.memory_space<any>>) target(%173 : memref<1x128xf32, #tpu.memory_space<vmem>>) target_semaphore(%175 : memref<!tpu.dma_semaphore, #tpu.memory_space<semaphore_mem>>)
    %c2_i32_155 = arith.constant 2 : i32
    %c9_i32_156 = arith.constant 9 : i32
    %c0_i32_157 = arith.constant 0 : i32
    %176 = tpu.memref_slice %arg5[%167, %c0_i32_157] : memref<32x128xf32, #tpu.memory_space<any>> -> memref<1x128xf32, #tpu.memory_space<any>>
    %c9_i32_158 = arith.constant 9 : i32
    %c0_i32_159 = arith.constant 0 : i32
    %177 = tpu.memref_slice %arg14[%c9_i32_158, %c0_i32_159] : memref<16x128xf32, #tpu.memory_space<vmem>> -> memref<1x128xf32, #tpu.memory_space<vmem>>
    %178 = tpu.memref_slice %arg15[%c2_i32_155, %c9_i32_156] : memref<3x16x!tpu.dma_semaphore, #tpu.memory_space<semaphore_mem>> -> memref<1x1x!tpu.dma_semaphore, #tpu.memory_space<semaphore_mem>>
    %179 = tpu.memref_squeeze %178 : memref<1x1x!tpu.dma_semaphore, #tpu.memory_space<semaphore_mem>> -> memref<!tpu.dma_semaphore, #tpu.memory_space<semaphore_mem>>
    tpu.enqueue_dma source(%176 : memref<1x128xf32, #tpu.memory_space<any>>) target(%177 : memref<1x128xf32, #tpu.memory_space<vmem>>) target_semaphore(%179 : memref<!tpu.dma_semaphore, #tpu.memory_space<semaphore_mem>>)
    %180 = arith.index_cast %arg0 : i32 to index
    %c10 = arith.constant 10 : index
    %181 = memref.load %arg1[%180, %c10] : memref<2x16xi32, #tpu.memory_space<smem>>
    %182 = arith.index_cast %arg0 : i32 to index
    %c10_160 = arith.constant 10 : index
    %183 = memref.load %arg2[%182, %c10_160] : memref<2x16xi32, #tpu.memory_space<smem>>
    %184 = arith.index_cast %arg0 : i32 to index
    %c10_161 = arith.constant 10 : index
    %185 = memref.load %arg3[%184, %c10_161] : memref<2x16xi32, #tpu.memory_space<smem>>
    %c0_i32_162 = arith.constant 0 : i32
    %c10_i32 = arith.constant 10 : i32
    %c0_i32_163 = arith.constant 0 : i32
    %186 = tpu.memref_slice %arg4[%181, %c0_i32_163] : memref<512x128xf32, #tpu.memory_space<any>> -> memref<1x128xf32, #tpu.memory_space<any>>
    %c10_i32_164 = arith.constant 10 : i32
    %c0_i32_165 = arith.constant 0 : i32
    %187 = tpu.memref_slice %arg12[%c10_i32_164, %c0_i32_165] : memref<16x128xf32, #tpu.memory_space<vmem>> -> memref<1x128xf32, #tpu.memory_space<vmem>>
    %188 = tpu.memref_slice %arg15[%c0_i32_162, %c10_i32] : memref<3x16x!tpu.dma_semaphore, #tpu.memory_space<semaphore_mem>> -> memref<1x1x!tpu.dma_semaphore, #tpu.memory_space<semaphore_mem>>
    %189 = tpu.memref_squeeze %188 : memref<1x1x!tpu.dma_semaphore, #tpu.memory_space<semaphore_mem>> -> memref<!tpu.dma_semaphore, #tpu.memory_space<semaphore_mem>>
    tpu.enqueue_dma source(%186 : memref<1x128xf32, #tpu.memory_space<any>>) target(%187 : memref<1x128xf32, #tpu.memory_space<vmem>>) target_semaphore(%189 : memref<!tpu.dma_semaphore, #tpu.memory_space<semaphore_mem>>)
    %c1_i32_166 = arith.constant 1 : i32
    %c10_i32_167 = arith.constant 10 : i32
    %c0_i32_168 = arith.constant 0 : i32
    %190 = tpu.memref_slice %arg4[%183, %c0_i32_168] : memref<512x128xf32, #tpu.memory_space<any>> -> memref<1x128xf32, #tpu.memory_space<any>>
    %c10_i32_169 = arith.constant 10 : i32
    %c0_i32_170 = arith.constant 0 : i32
    %191 = tpu.memref_slice %arg13[%c10_i32_169, %c0_i32_170] : memref<16x128xf32, #tpu.memory_space<vmem>> -> memref<1x128xf32, #tpu.memory_space<vmem>>
    %192 = tpu.memref_slice %arg15[%c1_i32_166, %c10_i32_167] : memref<3x16x!tpu.dma_semaphore, #tpu.memory_space<semaphore_mem>> -> memref<1x1x!tpu.dma_semaphore, #tpu.memory_space<semaphore_mem>>
    %193 = tpu.memref_squeeze %192 : memref<1x1x!tpu.dma_semaphore, #tpu.memory_space<semaphore_mem>> -> memref<!tpu.dma_semaphore, #tpu.memory_space<semaphore_mem>>
    tpu.enqueue_dma source(%190 : memref<1x128xf32, #tpu.memory_space<any>>) target(%191 : memref<1x128xf32, #tpu.memory_space<vmem>>) target_semaphore(%193 : memref<!tpu.dma_semaphore, #tpu.memory_space<semaphore_mem>>)
    %c2_i32_171 = arith.constant 2 : i32
    %c10_i32_172 = arith.constant 10 : i32
    %c0_i32_173 = arith.constant 0 : i32
    %194 = tpu.memref_slice %arg5[%185, %c0_i32_173] : memref<32x128xf32, #tpu.memory_space<any>> -> memref<1x128xf32, #tpu.memory_space<any>>
    %c10_i32_174 = arith.constant 10 : i32
    %c0_i32_175 = arith.constant 0 : i32
    %195 = tpu.memref_slice %arg14[%c10_i32_174, %c0_i32_175] : memref<16x128xf32, #tpu.memory_space<vmem>> -> memref<1x128xf32, #tpu.memory_space<vmem>>
    %196 = tpu.memref_slice %arg15[%c2_i32_171, %c10_i32_172] : memref<3x16x!tpu.dma_semaphore, #tpu.memory_space<semaphore_mem>> -> memref<1x1x!tpu.dma_semaphore, #tpu.memory_space<semaphore_mem>>
    %197 = tpu.memref_squeeze %196 : memref<1x1x!tpu.dma_semaphore, #tpu.memory_space<semaphore_mem>> -> memref<!tpu.dma_semaphore, #tpu.memory_space<semaphore_mem>>
    tpu.enqueue_dma source(%194 : memref<1x128xf32, #tpu.memory_space<any>>) target(%195 : memref<1x128xf32, #tpu.memory_space<vmem>>) target_semaphore(%197 : memref<!tpu.dma_semaphore, #tpu.memory_space<semaphore_mem>>)
    %198 = arith.index_cast %arg0 : i32 to index
    %c11 = arith.constant 11 : index
    %199 = memref.load %arg1[%198, %c11] : memref<2x16xi32, #tpu.memory_space<smem>>
    %200 = arith.index_cast %arg0 : i32 to index
    %c11_176 = arith.constant 11 : index
    %201 = memref.load %arg2[%200, %c11_176] : memref<2x16xi32, #tpu.memory_space<smem>>
    %202 = arith.index_cast %arg0 : i32 to index
    %c11_177 = arith.constant 11 : index
    %203 = memref.load %arg3[%202, %c11_177] : memref<2x16xi32, #tpu.memory_space<smem>>
    %c0_i32_178 = arith.constant 0 : i32
    %c11_i32 = arith.constant 11 : i32
    %c0_i32_179 = arith.constant 0 : i32
    %204 = tpu.memref_slice %arg4[%199, %c0_i32_179] : memref<512x128xf32, #tpu.memory_space<any>> -> memref<1x128xf32, #tpu.memory_space<any>>
    %c11_i32_180 = arith.constant 11 : i32
    %c0_i32_181 = arith.constant 0 : i32
    %205 = tpu.memref_slice %arg12[%c11_i32_180, %c0_i32_181] : memref<16x128xf32, #tpu.memory_space<vmem>> -> memref<1x128xf32, #tpu.memory_space<vmem>>
    %206 = tpu.memref_slice %arg15[%c0_i32_178, %c11_i32] : memref<3x16x!tpu.dma_semaphore, #tpu.memory_space<semaphore_mem>> -> memref<1x1x!tpu.dma_semaphore, #tpu.memory_space<semaphore_mem>>
    %207 = tpu.memref_squeeze %206 : memref<1x1x!tpu.dma_semaphore, #tpu.memory_space<semaphore_mem>> -> memref<!tpu.dma_semaphore, #tpu.memory_space<semaphore_mem>>
    tpu.enqueue_dma source(%204 : memref<1x128xf32, #tpu.memory_space<any>>) target(%205 : memref<1x128xf32, #tpu.memory_space<vmem>>) target_semaphore(%207 : memref<!tpu.dma_semaphore, #tpu.memory_space<semaphore_mem>>)
    %c1_i32_182 = arith.constant 1 : i32
    %c11_i32_183 = arith.constant 11 : i32
    %c0_i32_184 = arith.constant 0 : i32
    %208 = tpu.memref_slice %arg4[%201, %c0_i32_184] : memref<512x128xf32, #tpu.memory_space<any>> -> memref<1x128xf32, #tpu.memory_space<any>>
    %c11_i32_185 = arith.constant 11 : i32
    %c0_i32_186 = arith.constant 0 : i32
    %209 = tpu.memref_slice %arg13[%c11_i32_185, %c0_i32_186] : memref<16x128xf32, #tpu.memory_space<vmem>> -> memref<1x128xf32, #tpu.memory_space<vmem>>
    %210 = tpu.memref_slice %arg15[%c1_i32_182, %c11_i32_183] : memref<3x16x!tpu.dma_semaphore, #tpu.memory_space<semaphore_mem>> -> memref<1x1x!tpu.dma_semaphore, #tpu.memory_space<semaphore_mem>>
    %211 = tpu.memref_squeeze %210 : memref<1x1x!tpu.dma_semaphore, #tpu.memory_space<semaphore_mem>> -> memref<!tpu.dma_semaphore, #tpu.memory_space<semaphore_mem>>
    tpu.enqueue_dma source(%208 : memref<1x128xf32, #tpu.memory_space<any>>) target(%209 : memref<1x128xf32, #tpu.memory_space<vmem>>) target_semaphore(%211 : memref<!tpu.dma_semaphore, #tpu.memory_space<semaphore_mem>>)
    %c2_i32_187 = arith.constant 2 : i32
    %c11_i32_188 = arith.constant 11 : i32
    %c0_i32_189 = arith.constant 0 : i32
    %212 = tpu.memref_slice %arg5[%203, %c0_i32_189] : memref<32x128xf32, #tpu.memory_space<any>> -> memref<1x128xf32, #tpu.memory_space<any>>
    %c11_i32_190 = arith.constant 11 : i32
    %c0_i32_191 = arith.constant 0 : i32
    %213 = tpu.memref_slice %arg14[%c11_i32_190, %c0_i32_191] : memref<16x128xf32, #tpu.memory_space<vmem>> -> memref<1x128xf32, #tpu.memory_space<vmem>>
    %214 = tpu.memref_slice %arg15[%c2_i32_187, %c11_i32_188] : memref<3x16x!tpu.dma_semaphore, #tpu.memory_space<semaphore_mem>> -> memref<1x1x!tpu.dma_semaphore, #tpu.memory_space<semaphore_mem>>
    %215 = tpu.memref_squeeze %214 : memref<1x1x!tpu.dma_semaphore, #tpu.memory_space<semaphore_mem>> -> memref<!tpu.dma_semaphore, #tpu.memory_space<semaphore_mem>>
    tpu.enqueue_dma source(%212 : memref<1x128xf32, #tpu.memory_space<any>>) target(%213 : memref<1x128xf32, #tpu.memory_space<vmem>>) target_semaphore(%215 : memref<!tpu.dma_semaphore, #tpu.memory_space<semaphore_mem>>)
    %216 = arith.index_cast %arg0 : i32 to index
    %c12 = arith.constant 12 : index
    %217 = memref.load %arg1[%216, %c12] : memref<2x16xi32, #tpu.memory_space<smem>>
    %218 = arith.index_cast %arg0 : i32 to index
    %c12_192 = arith.constant 12 : index
    %219 = memref.load %arg2[%218, %c12_192] : memref<2x16xi32, #tpu.memory_space<smem>>
    %220 = arith.index_cast %arg0 : i32 to index
    %c12_193 = arith.constant 12 : index
    %221 = memref.load %arg3[%220, %c12_193] : memref<2x16xi32, #tpu.memory_space<smem>>
    %c0_i32_194 = arith.constant 0 : i32
    %c12_i32 = arith.constant 12 : i32
    %c0_i32_195 = arith.constant 0 : i32
    %222 = tpu.memref_slice %arg4[%217, %c0_i32_195] : memref<512x128xf32, #tpu.memory_space<any>> -> memref<1x128xf32, #tpu.memory_space<any>>
    %c12_i32_196 = arith.constant 12 : i32
    %c0_i32_197 = arith.constant 0 : i32
    %223 = tpu.memref_slice %arg12[%c12_i32_196, %c0_i32_197] : memref<16x128xf32, #tpu.memory_space<vmem>> -> memref<1x128xf32, #tpu.memory_space<vmem>>
    %224 = tpu.memref_slice %arg15[%c0_i32_194, %c12_i32] : memref<3x16x!tpu.dma_semaphore, #tpu.memory_space<semaphore_mem>> -> memref<1x1x!tpu.dma_semaphore, #tpu.memory_space<semaphore_mem>>
    %225 = tpu.memref_squeeze %224 : memref<1x1x!tpu.dma_semaphore, #tpu.memory_space<semaphore_mem>> -> memref<!tpu.dma_semaphore, #tpu.memory_space<semaphore_mem>>
    tpu.enqueue_dma source(%222 : memref<1x128xf32, #tpu.memory_space<any>>) target(%223 : memref<1x128xf32, #tpu.memory_space<vmem>>) target_semaphore(%225 : memref<!tpu.dma_semaphore, #tpu.memory_space<semaphore_mem>>)
    %c1_i32_198 = arith.constant 1 : i32
    %c12_i32_199 = arith.constant 12 : i32
    %c0_i32_200 = arith.constant 0 : i32
    %226 = tpu.memref_slice %arg4[%219, %c0_i32_200] : memref<512x128xf32, #tpu.memory_space<any>> -> memref<1x128xf32, #tpu.memory_space<any>>
    %c12_i32_201 = arith.constant 12 : i32
    %c0_i32_202 = arith.constant 0 : i32
    %227 = tpu.memref_slice %arg13[%c12_i32_201, %c0_i32_202] : memref<16x128xf32, #tpu.memory_space<vmem>> -> memref<1x128xf32, #tpu.memory_space<vmem>>
    %228 = tpu.memref_slice %arg15[%c1_i32_198, %c12_i32_199] : memref<3x16x!tpu.dma_semaphore, #tpu.memory_space<semaphore_mem>> -> memref<1x1x!tpu.dma_semaphore, #tpu.memory_space<semaphore_mem>>
    %229 = tpu.memref_squeeze %228 : memref<1x1x!tpu.dma_semaphore, #tpu.memory_space<semaphore_mem>> -> memref<!tpu.dma_semaphore, #tpu.memory_space<semaphore_mem>>
    tpu.enqueue_dma source(%226 : memref<1x128xf32, #tpu.memory_space<any>>) target(%227 : memref<1x128xf32, #tpu.memory_space<vmem>>) target_semaphore(%229 : memref<!tpu.dma_semaphore, #tpu.memory_space<semaphore_mem>>)
    %c2_i32_203 = arith.constant 2 : i32
    %c12_i32_204 = arith.constant 12 : i32
    %c0_i32_205 = arith.constant 0 : i32
    %230 = tpu.memref_slice %arg5[%221, %c0_i32_205] : memref<32x128xf32, #tpu.memory_space<any>> -> memref<1x128xf32, #tpu.memory_space<any>>
    %c12_i32_206 = arith.constant 12 : i32
    %c0_i32_207 = arith.constant 0 : i32
    %231 = tpu.memref_slice %arg14[%c12_i32_206, %c0_i32_207] : memref<16x128xf32, #tpu.memory_space<vmem>> -> memref<1x128xf32, #tpu.memory_space<vmem>>
    %232 = tpu.memref_slice %arg15[%c2_i32_203, %c12_i32_204] : memref<3x16x!tpu.dma_semaphore, #tpu.memory_space<semaphore_mem>> -> memref<1x1x!tpu.dma_semaphore, #tpu.memory_space<semaphore_mem>>
    %233 = tpu.memref_squeeze %232 : memref<1x1x!tpu.dma_semaphore, #tpu.memory_space<semaphore_mem>> -> memref<!tpu.dma_semaphore, #tpu.memory_space<semaphore_mem>>
    tpu.enqueue_dma source(%230 : memref<1x128xf32, #tpu.memory_space<any>>) target(%231 : memref<1x128xf32, #tpu.memory_space<vmem>>) target_semaphore(%233 : memref<!tpu.dma_semaphore, #tpu.memory_space<semaphore_mem>>)
    %234 = arith.index_cast %arg0 : i32 to index
    %c13 = arith.constant 13 : index
    %235 = memref.load %arg1[%234, %c13] : memref<2x16xi32, #tpu.memory_space<smem>>
    %236 = arith.index_cast %arg0 : i32 to index
    %c13_208 = arith.constant 13 : index
    %237 = memref.load %arg2[%236, %c13_208] : memref<2x16xi32, #tpu.memory_space<smem>>
    %238 = arith.index_cast %arg0 : i32 to index
    %c13_209 = arith.constant 13 : index
    %239 = memref.load %arg3[%238, %c13_209] : memref<2x16xi32, #tpu.memory_space<smem>>
    %c0_i32_210 = arith.constant 0 : i32
    %c13_i32 = arith.constant 13 : i32
    %c0_i32_211 = arith.constant 0 : i32
    %240 = tpu.memref_slice %arg4[%235, %c0_i32_211] : memref<512x128xf32, #tpu.memory_space<any>> -> memref<1x128xf32, #tpu.memory_space<any>>
    %c13_i32_212 = arith.constant 13 : i32
    %c0_i32_213 = arith.constant 0 : i32
    %241 = tpu.memref_slice %arg12[%c13_i32_212, %c0_i32_213] : memref<16x128xf32, #tpu.memory_space<vmem>> -> memref<1x128xf32, #tpu.memory_space<vmem>>
    %242 = tpu.memref_slice %arg15[%c0_i32_210, %c13_i32] : memref<3x16x!tpu.dma_semaphore, #tpu.memory_space<semaphore_mem>> -> memref<1x1x!tpu.dma_semaphore, #tpu.memory_space<semaphore_mem>>
    %243 = tpu.memref_squeeze %242 : memref<1x1x!tpu.dma_semaphore, #tpu.memory_space<semaphore_mem>> -> memref<!tpu.dma_semaphore, #tpu.memory_space<semaphore_mem>>
    tpu.enqueue_dma source(%240 : memref<1x128xf32, #tpu.memory_space<any>>) target(%241 : memref<1x128xf32, #tpu.memory_space<vmem>>) target_semaphore(%243 : memref<!tpu.dma_semaphore, #tpu.memory_space<semaphore_mem>>)
    %c1_i32_214 = arith.constant 1 : i32
    %c13_i32_215 = arith.constant 13 : i32
    %c0_i32_216 = arith.constant 0 : i32
    %244 = tpu.memref_slice %arg4[%237, %c0_i32_216] : memref<512x128xf32, #tpu.memory_space<any>> -> memref<1x128xf32, #tpu.memory_space<any>>
    %c13_i32_217 = arith.constant 13 : i32
    %c0_i32_218 = arith.constant 0 : i32
    %245 = tpu.memref_slice %arg13[%c13_i32_217, %c0_i32_218] : memref<16x128xf32, #tpu.memory_space<vmem>> -> memref<1x128xf32, #tpu.memory_space<vmem>>
    %246 = tpu.memref_slice %arg15[%c1_i32_214, %c13_i32_215] : memref<3x16x!tpu.dma_semaphore, #tpu.memory_space<semaphore_mem>> -> memref<1x1x!tpu.dma_semaphore, #tpu.memory_space<semaphore_mem>>
    %247 = tpu.memref_squeeze %246 : memref<1x1x!tpu.dma_semaphore, #tpu.memory_space<semaphore_mem>> -> memref<!tpu.dma_semaphore, #tpu.memory_space<semaphore_mem>>
    tpu.enqueue_dma source(%244 : memref<1x128xf32, #tpu.memory_space<any>>) target(%245 : memref<1x128xf32, #tpu.memory_space<vmem>>) target_semaphore(%247 : memref<!tpu.dma_semaphore, #tpu.memory_space<semaphore_mem>>)
    %c2_i32_219 = arith.constant 2 : i32
    %c13_i32_220 = arith.constant 13 : i32
    %c0_i32_221 = arith.constant 0 : i32
    %248 = tpu.memref_slice %arg5[%239, %c0_i32_221] : memref<32x128xf32, #tpu.memory_space<any>> -> memref<1x128xf32, #tpu.memory_space<any>>
    %c13_i32_222 = arith.constant 13 : i32
    %c0_i32_223 = arith.constant 0 : i32
    %249 = tpu.memref_slice %arg14[%c13_i32_222, %c0_i32_223] : memref<16x128xf32, #tpu.memory_space<vmem>> -> memref<1x128xf32, #tpu.memory_space<vmem>>
    %250 = tpu.memref_slice %arg15[%c2_i32_219, %c13_i32_220] : memref<3x16x!tpu.dma_semaphore, #tpu.memory_space<semaphore_mem>> -> memref<1x1x!tpu.dma_semaphore, #tpu.memory_space<semaphore_mem>>
    %251 = tpu.memref_squeeze %250 : memref<1x1x!tpu.dma_semaphore, #tpu.memory_space<semaphore_mem>> -> memref<!tpu.dma_semaphore, #tpu.memory_space<semaphore_mem>>
    tpu.enqueue_dma source(%248 : memref<1x128xf32, #tpu.memory_space<any>>) target(%249 : memref<1x128xf32, #tpu.memory_space<vmem>>) target_semaphore(%251 : memref<!tpu.dma_semaphore, #tpu.memory_space<semaphore_mem>>)
    %252 = arith.index_cast %arg0 : i32 to index
    %c14 = arith.constant 14 : index
    %253 = memref.load %arg1[%252, %c14] : memref<2x16xi32, #tpu.memory_space<smem>>
    %254 = arith.index_cast %arg0 : i32 to index
    %c14_224 = arith.constant 14 : index
    %255 = memref.load %arg2[%254, %c14_224] : memref<2x16xi32, #tpu.memory_space<smem>>
    %256 = arith.index_cast %arg0 : i32 to index
    %c14_225 = arith.constant 14 : index
    %257 = memref.load %arg3[%256, %c14_225] : memref<2x16xi32, #tpu.memory_space<smem>>
    %c0_i32_226 = arith.constant 0 : i32
    %c14_i32 = arith.constant 14 : i32
    %c0_i32_227 = arith.constant 0 : i32
    %258 = tpu.memref_slice %arg4[%253, %c0_i32_227] : memref<512x128xf32, #tpu.memory_space<any>> -> memref<1x128xf32, #tpu.memory_space<any>>
    %c14_i32_228 = arith.constant 14 : i32
    %c0_i32_229 = arith.constant 0 : i32
    %259 = tpu.memref_slice %arg12[%c14_i32_228, %c0_i32_229] : memref<16x128xf32, #tpu.memory_space<vmem>> -> memref<1x128xf32, #tpu.memory_space<vmem>>
    %260 = tpu.memref_slice %arg15[%c0_i32_226, %c14_i32] : memref<3x16x!tpu.dma_semaphore, #tpu.memory_space<semaphore_mem>> -> memref<1x1x!tpu.dma_semaphore, #tpu.memory_space<semaphore_mem>>
    %261 = tpu.memref_squeeze %260 : memref<1x1x!tpu.dma_semaphore, #tpu.memory_space<semaphore_mem>> -> memref<!tpu.dma_semaphore, #tpu.memory_space<semaphore_mem>>
    tpu.enqueue_dma source(%258 : memref<1x128xf32, #tpu.memory_space<any>>) target(%259 : memref<1x128xf32, #tpu.memory_space<vmem>>) target_semaphore(%261 : memref<!tpu.dma_semaphore, #tpu.memory_space<semaphore_mem>>)
    %c1_i32_230 = arith.constant 1 : i32
    %c14_i32_231 = arith.constant 14 : i32
    %c0_i32_232 = arith.constant 0 : i32
    %262 = tpu.memref_slice %arg4[%255, %c0_i32_232] : memref<512x128xf32, #tpu.memory_space<any>> -> memref<1x128xf32, #tpu.memory_space<any>>
    %c14_i32_233 = arith.constant 14 : i32
    %c0_i32_234 = arith.constant 0 : i32
    %263 = tpu.memref_slice %arg13[%c14_i32_233, %c0_i32_234] : memref<16x128xf32, #tpu.memory_space<vmem>> -> memref<1x128xf32, #tpu.memory_space<vmem>>
    %264 = tpu.memref_slice %arg15[%c1_i32_230, %c14_i32_231] : memref<3x16x!tpu.dma_semaphore, #tpu.memory_space<semaphore_mem>> -> memref<1x1x!tpu.dma_semaphore, #tpu.memory_space<semaphore_mem>>
    %265 = tpu.memref_squeeze %264 : memref<1x1x!tpu.dma_semaphore, #tpu.memory_space<semaphore_mem>> -> memref<!tpu.dma_semaphore, #tpu.memory_space<semaphore_mem>>
    tpu.enqueue_dma source(%262 : memref<1x128xf32, #tpu.memory_space<any>>) target(%263 : memref<1x128xf32, #tpu.memory_space<vmem>>) target_semaphore(%265 : memref<!tpu.dma_semaphore, #tpu.memory_space<semaphore_mem>>)
    %c2_i32_235 = arith.constant 2 : i32
    %c14_i32_236 = arith.constant 14 : i32
    %c0_i32_237 = arith.constant 0 : i32
    %266 = tpu.memref_slice %arg5[%257, %c0_i32_237] : memref<32x128xf32, #tpu.memory_space<any>> -> memref<1x128xf32, #tpu.memory_space<any>>
    %c14_i32_238 = arith.constant 14 : i32
    %c0_i32_239 = arith.constant 0 : i32
    %267 = tpu.memref_slice %arg14[%c14_i32_238, %c0_i32_239] : memref<16x128xf32, #tpu.memory_space<vmem>> -> memref<1x128xf32, #tpu.memory_space<vmem>>
    %268 = tpu.memref_slice %arg15[%c2_i32_235, %c14_i32_236] : memref<3x16x!tpu.dma_semaphore, #tpu.memory_space<semaphore_mem>> -> memref<1x1x!tpu.dma_semaphore, #tpu.memory_space<semaphore_mem>>
    %269 = tpu.memref_squeeze %268 : memref<1x1x!tpu.dma_semaphore, #tpu.memory_space<semaphore_mem>> -> memref<!tpu.dma_semaphore, #tpu.memory_space<semaphore_mem>>
    tpu.enqueue_dma source(%266 : memref<1x128xf32, #tpu.memory_space<any>>) target(%267 : memref<1x128xf32, #tpu.memory_space<vmem>>) target_semaphore(%269 : memref<!tpu.dma_semaphore, #tpu.memory_space<semaphore_mem>>)
    %270 = arith.index_cast %arg0 : i32 to index
    %c15 = arith.constant 15 : index
    %271 = memref.load %arg1[%270, %c15] : memref<2x16xi32, #tpu.memory_space<smem>>
    %272 = arith.index_cast %arg0 : i32 to index
    %c15_240 = arith.constant 15 : index
    %273 = memref.load %arg2[%272, %c15_240] : memref<2x16xi32, #tpu.memory_space<smem>>
    %274 = arith.index_cast %arg0 : i32 to index
    %c15_241 = arith.constant 15 : index
    %275 = memref.load %arg3[%274, %c15_241] : memref<2x16xi32, #tpu.memory_space<smem>>
    %c0_i32_242 = arith.constant 0 : i32
    %c15_i32 = arith.constant 15 : i32
    %c0_i32_243 = arith.constant 0 : i32
    %276 = tpu.memref_slice %arg4[%271, %c0_i32_243] : memref<512x128xf32, #tpu.memory_space<any>> -> memref<1x128xf32, #tpu.memory_space<any>>
    %c15_i32_244 = arith.constant 15 : i32
    %c0_i32_245 = arith.constant 0 : i32
    %277 = tpu.memref_slice %arg12[%c15_i32_244, %c0_i32_245] : memref<16x128xf32, #tpu.memory_space<vmem>> -> memref<1x128xf32, #tpu.memory_space<vmem>>
    %278 = tpu.memref_slice %arg15[%c0_i32_242, %c15_i32] : memref<3x16x!tpu.dma_semaphore, #tpu.memory_space<semaphore_mem>> -> memref<1x1x!tpu.dma_semaphore, #tpu.memory_space<semaphore_mem>>
    %279 = tpu.memref_squeeze %278 : memref<1x1x!tpu.dma_semaphore, #tpu.memory_space<semaphore_mem>> -> memref<!tpu.dma_semaphore, #tpu.memory_space<semaphore_mem>>
    tpu.enqueue_dma source(%276 : memref<1x128xf32, #tpu.memory_space<any>>) target(%277 : memref<1x128xf32, #tpu.memory_space<vmem>>) target_semaphore(%279 : memref<!tpu.dma_semaphore, #tpu.memory_space<semaphore_mem>>)
    %c1_i32_246 = arith.constant 1 : i32
    %c15_i32_247 = arith.constant 15 : i32
    %c0_i32_248 = arith.constant 0 : i32
    %280 = tpu.memref_slice %arg4[%273, %c0_i32_248] : memref<512x128xf32, #tpu.memory_space<any>> -> memref<1x128xf32, #tpu.memory_space<any>>
    %c15_i32_249 = arith.constant 15 : i32
    %c0_i32_250 = arith.constant 0 : i32
    %281 = tpu.memref_slice %arg13[%c15_i32_249, %c0_i32_250] : memref<16x128xf32, #tpu.memory_space<vmem>> -> memref<1x128xf32, #tpu.memory_space<vmem>>
    %282 = tpu.memref_slice %arg15[%c1_i32_246, %c15_i32_247] : memref<3x16x!tpu.dma_semaphore, #tpu.memory_space<semaphore_mem>> -> memref<1x1x!tpu.dma_semaphore, #tpu.memory_space<semaphore_mem>>
    %283 = tpu.memref_squeeze %282 : memref<1x1x!tpu.dma_semaphore, #tpu.memory_space<semaphore_mem>> -> memref<!tpu.dma_semaphore, #tpu.memory_space<semaphore_mem>>
    tpu.enqueue_dma source(%280 : memref<1x128xf32, #tpu.memory_space<any>>) target(%281 : memref<1x128xf32, #tpu.memory_space<vmem>>) target_semaphore(%283 : memref<!tpu.dma_semaphore, #tpu.memory_space<semaphore_mem>>)
    %c2_i32_251 = arith.constant 2 : i32
    %c15_i32_252 = arith.constant 15 : i32
    %c0_i32_253 = arith.constant 0 : i32
    %284 = tpu.memref_slice %arg5[%275, %c0_i32_253] : memref<32x128xf32, #tpu.memory_space<any>> -> memref<1x128xf32, #tpu.memory_space<any>>
    %c15_i32_254 = arith.constant 15 : i32
    %c0_i32_255 = arith.constant 0 : i32
    %285 = tpu.memref_slice %arg14[%c15_i32_254, %c0_i32_255] : memref<16x128xf32, #tpu.memory_space<vmem>> -> memref<1x128xf32, #tpu.memory_space<vmem>>
    %286 = tpu.memref_slice %arg15[%c2_i32_251, %c15_i32_252] : memref<3x16x!tpu.dma_semaphore, #tpu.memory_space<semaphore_mem>> -> memref<1x1x!tpu.dma_semaphore, #tpu.memory_space<semaphore_mem>>
    %287 = tpu.memref_squeeze %286 : memref<1x1x!tpu.dma_semaphore, #tpu.memory_space<semaphore_mem>> -> memref<!tpu.dma_semaphore, #tpu.memory_space<semaphore_mem>>
    tpu.enqueue_dma source(%284 : memref<1x128xf32, #tpu.memory_space<any>>) target(%285 : memref<1x128xf32, #tpu.memory_space<vmem>>) target_semaphore(%287 : memref<!tpu.dma_semaphore, #tpu.memory_space<semaphore_mem>>)
    %c0_256 = arith.constant 0 : index
    %c0_257 = arith.constant 0 : index
    %288 = vector.load %arg7[%c0_256, %c0_257] : memref<16x128xf32, #tpu.memory_space<vmem>>, vector<16x128xf32>
    %c0_258 = arith.constant 0 : index
    %c0_259 = arith.constant 0 : index
    %c0_260 = arith.constant 0 : index
    %289 = vector.load %arg6[%c0_258, %c0_259, %c0_260] : memref<1x1x16xi32, #tpu.memory_space<vmem>>, vector<1x1x16xi32>
    %290 = vector.shape_cast %289 : vector<1x1x16xi32> to vector<16x1xi32>
    %c0_261 = arith.constant 0 : index
    %c0_262 = arith.constant 0 : index
    %291 = vector.load %arg8[%c0_261, %c0_262] : memref<2x128xf32, #tpu.memory_space<vmem>>, vector<1x128xf32>
    %292 = vector.shape_cast %291 : vector<1x128xf32> to vector<128xf32>
    %293 = vector.shape_cast %292 : vector<128xf32> to vector<1x128xf32>
    %294 = vector.broadcast %293 : vector<1x128xf32> to vector<16x128xf32>
    %c1_263 = arith.constant 1 : index
    %c0_264 = arith.constant 0 : index
    %295 = vector.load %arg8[%c1_263, %c0_264] : memref<2x128xf32, #tpu.memory_space<vmem>>, vector<1x128xf32>
    %296 = vector.shape_cast %295 : vector<1x128xf32> to vector<128xf32>
    %c1_i32_265 = arith.constant 1 : i32
    %297 = vector.broadcast %c1_i32_265 : i32 to vector<16x1xi32>
    %298 = arith.cmpi eq, %290, %297 : vector<16x1xi32>
    %299 = vector.shape_cast %296 : vector<128xf32> to vector<1x128xf32>
    %300 = vector.shape_cast %298 : vector<16x1xi1> to vector<16x1xi1>
    %301 = vector.broadcast %300 : vector<16x1xi1> to vector<16x128xi1>
    %302 = vector.shape_cast %299 : vector<1x128xf32> to vector<1x128xf32>
    %303 = vector.broadcast %302 : vector<1x128xf32> to vector<16x128xf32>
    %304 = arith.select %301, %303, %294 : vector<16x128xi1>, vector<16x128xf32>
    %305 = arith.addf %288, %304 : vector<16x128xf32>
    %c0_i32_266 = arith.constant 0 : i32
    %c0_i32_267 = arith.constant 0 : i32
    %c0_i32_268 = arith.constant 0 : i32
    %c0_i32_269 = arith.constant 0 : i32
    %306 = tpu.memref_slice %arg4[%c0_i32_268, %c0_i32_269] : memref<512x128xf32, #tpu.memory_space<any>> -> memref<1x128xf32, #tpu.memory_space<any>>
    %c0_i32_270 = arith.constant 0 : i32
    %c0_i32_271 = arith.constant 0 : i32
    %307 = tpu.memref_slice %arg12[%c0_i32_270, %c0_i32_271] : memref<16x128xf32, #tpu.memory_space<vmem>> -> memref<1x128xf32, #tpu.memory_space<vmem>>
    %308 = tpu.memref_slice %arg15[%c0_i32_266, %c0_i32_267] : memref<3x16x!tpu.dma_semaphore, #tpu.memory_space<semaphore_mem>> -> memref<1x1x!tpu.dma_semaphore, #tpu.memory_space<semaphore_mem>>
    %309 = tpu.memref_squeeze %308 : memref<1x1x!tpu.dma_semaphore, #tpu.memory_space<semaphore_mem>> -> memref<!tpu.dma_semaphore, #tpu.memory_space<semaphore_mem>>
    tpu.wait_dma2 semaphore(%309 : memref<!tpu.dma_semaphore, #tpu.memory_space<semaphore_mem>>) src(%306 : memref<1x128xf32, #tpu.memory_space<any>>) dst(%307 : memref<1x128xf32, #tpu.memory_space<vmem>>)
    %c1_i32_272 = arith.constant 1 : i32
    %c0_i32_273 = arith.constant 0 : i32
    %c0_i32_274 = arith.constant 0 : i32
    %c0_i32_275 = arith.constant 0 : i32
    %310 = tpu.memref_slice %arg4[%c0_i32_274, %c0_i32_275] : memref<512x128xf32, #tpu.memory_space<any>> -> memref<1x128xf32, #tpu.memory_space<any>>
    %c0_i32_276 = arith.constant 0 : i32
    %c0_i32_277 = arith.constant 0 : i32
    %311 = tpu.memref_slice %arg13[%c0_i32_276, %c0_i32_277] : memref<16x128xf32, #tpu.memory_space<vmem>> -> memref<1x128xf32, #tpu.memory_space<vmem>>
    %312 = tpu.memref_slice %arg15[%c1_i32_272, %c0_i32_273] : memref<3x16x!tpu.dma_semaphore, #tpu.memory_space<semaphore_mem>> -> memref<1x1x!tpu.dma_semaphore, #tpu.memory_space<semaphore_mem>>
    %313 = tpu.memref_squeeze %312 : memref<1x1x!tpu.dma_semaphore, #tpu.memory_space<semaphore_mem>> -> memref<!tpu.dma_semaphore, #tpu.memory_space<semaphore_mem>>
    tpu.wait_dma2 semaphore(%313 : memref<!tpu.dma_semaphore, #tpu.memory_space<semaphore_mem>>) src(%310 : memref<1x128xf32, #tpu.memory_space<any>>) dst(%311 : memref<1x128xf32, #tpu.memory_space<vmem>>)
    %c2_i32_278 = arith.constant 2 : i32
    %c0_i32_279 = arith.constant 0 : i32
    %c0_i32_280 = arith.constant 0 : i32
    %c0_i32_281 = arith.constant 0 : i32
    %314 = tpu.memref_slice %arg5[%c0_i32_280, %c0_i32_281] : memref<32x128xf32, #tpu.memory_space<any>> -> memref<1x128xf32, #tpu.memory_space<any>>
    %c0_i32_282 = arith.constant 0 : i32
    %c0_i32_283 = arith.constant 0 : i32
    %315 = tpu.memref_slice %arg14[%c0_i32_282, %c0_i32_283] : memref<16x128xf32, #tpu.memory_space<vmem>> -> memref<1x128xf32, #tpu.memory_space<vmem>>
    %316 = tpu.memref_slice %arg15[%c2_i32_278, %c0_i32_279] : memref<3x16x!tpu.dma_semaphore, #tpu.memory_space<semaphore_mem>> -> memref<1x1x!tpu.dma_semaphore, #tpu.memory_space<semaphore_mem>>
    %317 = tpu.memref_squeeze %316 : memref<1x1x!tpu.dma_semaphore, #tpu.memory_space<semaphore_mem>> -> memref<!tpu.dma_semaphore, #tpu.memory_space<semaphore_mem>>
    tpu.wait_dma2 semaphore(%317 : memref<!tpu.dma_semaphore, #tpu.memory_space<semaphore_mem>>) src(%314 : memref<1x128xf32, #tpu.memory_space<any>>) dst(%315 : memref<1x128xf32, #tpu.memory_space<vmem>>)
    %c0_i32_284 = arith.constant 0 : i32
    %c1_i32_285 = arith.constant 1 : i32
    %c0_i32_286 = arith.constant 0 : i32
    %c0_i32_287 = arith.constant 0 : i32
    %318 = tpu.memref_slice %arg4[%c0_i32_286, %c0_i32_287] : memref<512x128xf32, #tpu.memory_space<any>> -> memref<1x128xf32, #tpu.memory_space<any>>
    %c1_i32_288 = arith.constant 1 : i32
    %c0_i32_289 = arith.constant 0 : i32
    %319 = tpu.memref_slice %arg12[%c1_i32_288, %c0_i32_289] : memref<16x128xf32, #tpu.memory_space<vmem>> -> memref<1x128xf32, #tpu.memory_space<vmem>>
    %320 = tpu.memref_slice %arg15[%c0_i32_284, %c1_i32_285] : memref<3x16x!tpu.dma_semaphore, #tpu.memory_space<semaphore_mem>> -> memref<1x1x!tpu.dma_semaphore, #tpu.memory_space<semaphore_mem>>
    %321 = tpu.memref_squeeze %320 : memref<1x1x!tpu.dma_semaphore, #tpu.memory_space<semaphore_mem>> -> memref<!tpu.dma_semaphore, #tpu.memory_space<semaphore_mem>>
    tpu.wait_dma2 semaphore(%321 : memref<!tpu.dma_semaphore, #tpu.memory_space<semaphore_mem>>) src(%318 : memref<1x128xf32, #tpu.memory_space<any>>) dst(%319 : memref<1x128xf32, #tpu.memory_space<vmem>>)
    %c1_i32_290 = arith.constant 1 : i32
    %c1_i32_291 = arith.constant 1 : i32
    %c0_i32_292 = arith.constant 0 : i32
    %c0_i32_293 = arith.constant 0 : i32
    %322 = tpu.memref_slice %arg4[%c0_i32_292, %c0_i32_293] : memref<512x128xf32, #tpu.memory_space<any>> -> memref<1x128xf32, #tpu.memory_space<any>>
    %c1_i32_294 = arith.constant 1 : i32
    %c0_i32_295 = arith.constant 0 : i32
    %323 = tpu.memref_slice %arg13[%c1_i32_294, %c0_i32_295] : memref<16x128xf32, #tpu.memory_space<vmem>> -> memref<1x128xf32, #tpu.memory_space<vmem>>
    %324 = tpu.memref_slice %arg15[%c1_i32_290, %c1_i32_291] : memref<3x16x!tpu.dma_semaphore, #tpu.memory_space<semaphore_mem>> -> memref<1x1x!tpu.dma_semaphore, #tpu.memory_space<semaphore_mem>>
    %325 = tpu.memref_squeeze %324 : memref<1x1x!tpu.dma_semaphore, #tpu.memory_space<semaphore_mem>> -> memref<!tpu.dma_semaphore, #tpu.memory_space<semaphore_mem>>
    tpu.wait_dma2 semaphore(%325 : memref<!tpu.dma_semaphore, #tpu.memory_space<semaphore_mem>>) src(%322 : memref<1x128xf32, #tpu.memory_space<any>>) dst(%323 : memref<1x128xf32, #tpu.memory_space<vmem>>)
    %c2_i32_296 = arith.constant 2 : i32
    %c1_i32_297 = arith.constant 1 : i32
    %c0_i32_298 = arith.constant 0 : i32
    %c0_i32_299 = arith.constant 0 : i32
    %326 = tpu.memref_slice %arg5[%c0_i32_298, %c0_i32_299] : memref<32x128xf32, #tpu.memory_space<any>> -> memref<1x128xf32, #tpu.memory_space<any>>
    %c1_i32_300 = arith.constant 1 : i32
    %c0_i32_301 = arith.constant 0 : i32
    %327 = tpu.memref_slice %arg14[%c1_i32_300, %c0_i32_301] : memref<16x128xf32, #tpu.memory_space<vmem>> -> memref<1x128xf32, #tpu.memory_space<vmem>>
    %328 = tpu.memref_slice %arg15[%c2_i32_296, %c1_i32_297] : memref<3x16x!tpu.dma_semaphore, #tpu.memory_space<semaphore_mem>> -> memref<1x1x!tpu.dma_semaphore, #tpu.memory_space<semaphore_mem>>
    %329 = tpu.memref_squeeze %328 : memref<1x1x!tpu.dma_semaphore, #tpu.memory_space<semaphore_mem>> -> memref<!tpu.dma_semaphore, #tpu.memory_space<semaphore_mem>>
    tpu.wait_dma2 semaphore(%329 : memref<!tpu.dma_semaphore, #tpu.memory_space<semaphore_mem>>) src(%326 : memref<1x128xf32, #tpu.memory_space<any>>) dst(%327 : memref<1x128xf32, #tpu.memory_space<vmem>>)
    %c0_i32_302 = arith.constant 0 : i32
    %c2_i32_303 = arith.constant 2 : i32
    %c0_i32_304 = arith.constant 0 : i32
    %c0_i32_305 = arith.constant 0 : i32
    %330 = tpu.memref_slice %arg4[%c0_i32_304, %c0_i32_305] : memref<512x128xf32, #tpu.memory_space<any>> -> memref<1x128xf32, #tpu.memory_space<any>>
    %c2_i32_306 = arith.constant 2 : i32
    %c0_i32_307 = arith.constant 0 : i32
    %331 = tpu.memref_slice %arg12[%c2_i32_306, %c0_i32_307] : memref<16x128xf32, #tpu.memory_space<vmem>> -> memref<1x128xf32, #tpu.memory_space<vmem>>
    %332 = tpu.memref_slice %arg15[%c0_i32_302, %c2_i32_303] : memref<3x16x!tpu.dma_semaphore, #tpu.memory_space<semaphore_mem>> -> memref<1x1x!tpu.dma_semaphore, #tpu.memory_space<semaphore_mem>>
    %333 = tpu.memref_squeeze %332 : memref<1x1x!tpu.dma_semaphore, #tpu.memory_space<semaphore_mem>> -> memref<!tpu.dma_semaphore, #tpu.memory_space<semaphore_mem>>
    tpu.wait_dma2 semaphore(%333 : memref<!tpu.dma_semaphore, #tpu.memory_space<semaphore_mem>>) src(%330 : memref<1x128xf32, #tpu.memory_space<any>>) dst(%331 : memref<1x128xf32, #tpu.memory_space<vmem>>)
    %c1_i32_308 = arith.constant 1 : i32
    %c2_i32_309 = arith.constant 2 : i32
    %c0_i32_310 = arith.constant 0 : i32
    %c0_i32_311 = arith.constant 0 : i32
    %334 = tpu.memref_slice %arg4[%c0_i32_310, %c0_i32_311] : memref<512x128xf32, #tpu.memory_space<any>> -> memref<1x128xf32, #tpu.memory_space<any>>
    %c2_i32_312 = arith.constant 2 : i32
    %c0_i32_313 = arith.constant 0 : i32
    %335 = tpu.memref_slice %arg13[%c2_i32_312, %c0_i32_313] : memref<16x128xf32, #tpu.memory_space<vmem>> -> memref<1x128xf32, #tpu.memory_space<vmem>>
    %336 = tpu.memref_slice %arg15[%c1_i32_308, %c2_i32_309] : memref<3x16x!tpu.dma_semaphore, #tpu.memory_space<semaphore_mem>> -> memref<1x1x!tpu.dma_semaphore, #tpu.memory_space<semaphore_mem>>
    %337 = tpu.memref_squeeze %336 : memref<1x1x!tpu.dma_semaphore, #tpu.memory_space<semaphore_mem>> -> memref<!tpu.dma_semaphore, #tpu.memory_space<semaphore_mem>>
    tpu.wait_dma2 semaphore(%337 : memref<!tpu.dma_semaphore, #tpu.memory_space<semaphore_mem>>) src(%334 : memref<1x128xf32, #tpu.memory_space<any>>) dst(%335 : memref<1x128xf32, #tpu.memory_space<vmem>>)
    %c2_i32_314 = arith.constant 2 : i32
    %c2_i32_315 = arith.constant 2 : i32
    %c0_i32_316 = arith.constant 0 : i32
    %c0_i32_317 = arith.constant 0 : i32
    %338 = tpu.memref_slice %arg5[%c0_i32_316, %c0_i32_317] : memref<32x128xf32, #tpu.memory_space<any>> -> memref<1x128xf32, #tpu.memory_space<any>>
    %c2_i32_318 = arith.constant 2 : i32
    %c0_i32_319 = arith.constant 0 : i32
    %339 = tpu.memref_slice %arg14[%c2_i32_318, %c0_i32_319] : memref<16x128xf32, #tpu.memory_space<vmem>> -> memref<1x128xf32, #tpu.memory_space<vmem>>
    %340 = tpu.memref_slice %arg15[%c2_i32_314, %c2_i32_315] : memref<3x16x!tpu.dma_semaphore, #tpu.memory_space<semaphore_mem>> -> memref<1x1x!tpu.dma_semaphore, #tpu.memory_space<semaphore_mem>>
    %341 = tpu.memref_squeeze %340 : memref<1x1x!tpu.dma_semaphore, #tpu.memory_space<semaphore_mem>> -> memref<!tpu.dma_semaphore, #tpu.memory_space<semaphore_mem>>
    tpu.wait_dma2 semaphore(%341 : memref<!tpu.dma_semaphore, #tpu.memory_space<semaphore_mem>>) src(%338 : memref<1x128xf32, #tpu.memory_space<any>>) dst(%339 : memref<1x128xf32, #tpu.memory_space<vmem>>)
    %c0_i32_320 = arith.constant 0 : i32
    %c3_i32_321 = arith.constant 3 : i32
    %c0_i32_322 = arith.constant 0 : i32
    %c0_i32_323 = arith.constant 0 : i32
    %342 = tpu.memref_slice %arg4[%c0_i32_322, %c0_i32_323] : memref<512x128xf32, #tpu.memory_space<any>> -> memref<1x128xf32, #tpu.memory_space<any>>
    %c3_i32_324 = arith.constant 3 : i32
    %c0_i32_325 = arith.constant 0 : i32
    %343 = tpu.memref_slice %arg12[%c3_i32_324, %c0_i32_325] : memref<16x128xf32, #tpu.memory_space<vmem>> -> memref<1x128xf32, #tpu.memory_space<vmem>>
    %344 = tpu.memref_slice %arg15[%c0_i32_320, %c3_i32_321] : memref<3x16x!tpu.dma_semaphore, #tpu.memory_space<semaphore_mem>> -> memref<1x1x!tpu.dma_semaphore, #tpu.memory_space<semaphore_mem>>
    %345 = tpu.memref_squeeze %344 : memref<1x1x!tpu.dma_semaphore, #tpu.memory_space<semaphore_mem>> -> memref<!tpu.dma_semaphore, #tpu.memory_space<semaphore_mem>>
    tpu.wait_dma2 semaphore(%345 : memref<!tpu.dma_semaphore, #tpu.memory_space<semaphore_mem>>) src(%342 : memref<1x128xf32, #tpu.memory_space<any>>) dst(%343 : memref<1x128xf32, #tpu.memory_space<vmem>>)
    %c1_i32_326 = arith.constant 1 : i32
    %c3_i32_327 = arith.constant 3 : i32
    %c0_i32_328 = arith.constant 0 : i32
    %c0_i32_329 = arith.constant 0 : i32
    %346 = tpu.memref_slice %arg4[%c0_i32_328, %c0_i32_329] : memref<512x128xf32, #tpu.memory_space<any>> -> memref<1x128xf32, #tpu.memory_space<any>>
    %c3_i32_330 = arith.constant 3 : i32
    %c0_i32_331 = arith.constant 0 : i32
    %347 = tpu.memref_slice %arg13[%c3_i32_330, %c0_i32_331] : memref<16x128xf32, #tpu.memory_space<vmem>> -> memref<1x128xf32, #tpu.memory_space<vmem>>
    %348 = tpu.memref_slice %arg15[%c1_i32_326, %c3_i32_327] : memref<3x16x!tpu.dma_semaphore, #tpu.memory_space<semaphore_mem>> -> memref<1x1x!tpu.dma_semaphore, #tpu.memory_space<semaphore_mem>>
    %349 = tpu.memref_squeeze %348 : memref<1x1x!tpu.dma_semaphore, #tpu.memory_space<semaphore_mem>> -> memref<!tpu.dma_semaphore, #tpu.memory_space<semaphore_mem>>
    tpu.wait_dma2 semaphore(%349 : memref<!tpu.dma_semaphore, #tpu.memory_space<semaphore_mem>>) src(%346 : memref<1x128xf32, #tpu.memory_space<any>>) dst(%347 : memref<1x128xf32, #tpu.memory_space<vmem>>)
    %c2_i32_332 = arith.constant 2 : i32
    %c3_i32_333 = arith.constant 3 : i32
    %c0_i32_334 = arith.constant 0 : i32
    %c0_i32_335 = arith.constant 0 : i32
    %350 = tpu.memref_slice %arg5[%c0_i32_334, %c0_i32_335] : memref<32x128xf32, #tpu.memory_space<any>> -> memref<1x128xf32, #tpu.memory_space<any>>
    %c3_i32_336 = arith.constant 3 : i32
    %c0_i32_337 = arith.constant 0 : i32
    %351 = tpu.memref_slice %arg14[%c3_i32_336, %c0_i32_337] : memref<16x128xf32, #tpu.memory_space<vmem>> -> memref<1x128xf32, #tpu.memory_space<vmem>>
    %352 = tpu.memref_slice %arg15[%c2_i32_332, %c3_i32_333] : memref<3x16x!tpu.dma_semaphore, #tpu.memory_space<semaphore_mem>> -> memref<1x1x!tpu.dma_semaphore, #tpu.memory_space<semaphore_mem>>
    %353 = tpu.memref_squeeze %352 : memref<1x1x!tpu.dma_semaphore, #tpu.memory_space<semaphore_mem>> -> memref<!tpu.dma_semaphore, #tpu.memory_space<semaphore_mem>>
    tpu.wait_dma2 semaphore(%353 : memref<!tpu.dma_semaphore, #tpu.memory_space<semaphore_mem>>) src(%350 : memref<1x128xf32, #tpu.memory_space<any>>) dst(%351 : memref<1x128xf32, #tpu.memory_space<vmem>>)
    %c0_i32_338 = arith.constant 0 : i32
    %c4_i32_339 = arith.constant 4 : i32
    %c0_i32_340 = arith.constant 0 : i32
    %c0_i32_341 = arith.constant 0 : i32
    %354 = tpu.memref_slice %arg4[%c0_i32_340, %c0_i32_341] : memref<512x128xf32, #tpu.memory_space<any>> -> memref<1x128xf32, #tpu.memory_space<any>>
    %c4_i32_342 = arith.constant 4 : i32
    %c0_i32_343 = arith.constant 0 : i32
    %355 = tpu.memref_slice %arg12[%c4_i32_342, %c0_i32_343] : memref<16x128xf32, #tpu.memory_space<vmem>> -> memref<1x128xf32, #tpu.memory_space<vmem>>
    %356 = tpu.memref_slice %arg15[%c0_i32_338, %c4_i32_339] : memref<3x16x!tpu.dma_semaphore, #tpu.memory_space<semaphore_mem>> -> memref<1x1x!tpu.dma_semaphore, #tpu.memory_space<semaphore_mem>>
    %357 = tpu.memref_squeeze %356 : memref<1x1x!tpu.dma_semaphore, #tpu.memory_space<semaphore_mem>> -> memref<!tpu.dma_semaphore, #tpu.memory_space<semaphore_mem>>
    tpu.wait_dma2 semaphore(%357 : memref<!tpu.dma_semaphore, #tpu.memory_space<semaphore_mem>>) src(%354 : memref<1x128xf32, #tpu.memory_space<any>>) dst(%355 : memref<1x128xf32, #tpu.memory_space<vmem>>)
    %c1_i32_344 = arith.constant 1 : i32
    %c4_i32_345 = arith.constant 4 : i32
    %c0_i32_346 = arith.constant 0 : i32
    %c0_i32_347 = arith.constant 0 : i32
    %358 = tpu.memref_slice %arg4[%c0_i32_346, %c0_i32_347] : memref<512x128xf32, #tpu.memory_space<any>> -> memref<1x128xf32, #tpu.memory_space<any>>
    %c4_i32_348 = arith.constant 4 : i32
    %c0_i32_349 = arith.constant 0 : i32
    %359 = tpu.memref_slice %arg13[%c4_i32_348, %c0_i32_349] : memref<16x128xf32, #tpu.memory_space<vmem>> -> memref<1x128xf32, #tpu.memory_space<vmem>>
    %360 = tpu.memref_slice %arg15[%c1_i32_344, %c4_i32_345] : memref<3x16x!tpu.dma_semaphore, #tpu.memory_space<semaphore_mem>> -> memref<1x1x!tpu.dma_semaphore, #tpu.memory_space<semaphore_mem>>
    %361 = tpu.memref_squeeze %360 : memref<1x1x!tpu.dma_semaphore, #tpu.memory_space<semaphore_mem>> -> memref<!tpu.dma_semaphore, #tpu.memory_space<semaphore_mem>>
    tpu.wait_dma2 semaphore(%361 : memref<!tpu.dma_semaphore, #tpu.memory_space<semaphore_mem>>) src(%358 : memref<1x128xf32, #tpu.memory_space<any>>) dst(%359 : memref<1x128xf32, #tpu.memory_space<vmem>>)
    %c2_i32_350 = arith.constant 2 : i32
    %c4_i32_351 = arith.constant 4 : i32
    %c0_i32_352 = arith.constant 0 : i32
    %c0_i32_353 = arith.constant 0 : i32
    %362 = tpu.memref_slice %arg5[%c0_i32_352, %c0_i32_353] : memref<32x128xf32, #tpu.memory_space<any>> -> memref<1x128xf32, #tpu.memory_space<any>>
    %c4_i32_354 = arith.constant 4 : i32
    %c0_i32_355 = arith.constant 0 : i32
    %363 = tpu.memref_slice %arg14[%c4_i32_354, %c0_i32_355] : memref<16x128xf32, #tpu.memory_space<vmem>> -> memref<1x128xf32, #tpu.memory_space<vmem>>
    %364 = tpu.memref_slice %arg15[%c2_i32_350, %c4_i32_351] : memref<3x16x!tpu.dma_semaphore, #tpu.memory_space<semaphore_mem>> -> memref<1x1x!tpu.dma_semaphore, #tpu.memory_space<semaphore_mem>>
    %365 = tpu.memref_squeeze %364 : memref<1x1x!tpu.dma_semaphore, #tpu.memory_space<semaphore_mem>> -> memref<!tpu.dma_semaphore, #tpu.memory_space<semaphore_mem>>
    tpu.wait_dma2 semaphore(%365 : memref<!tpu.dma_semaphore, #tpu.memory_space<semaphore_mem>>) src(%362 : memref<1x128xf32, #tpu.memory_space<any>>) dst(%363 : memref<1x128xf32, #tpu.memory_space<vmem>>)
    %c0_i32_356 = arith.constant 0 : i32
    %c5_i32_357 = arith.constant 5 : i32
    %c0_i32_358 = arith.constant 0 : i32
    %c0_i32_359 = arith.constant 0 : i32
    %366 = tpu.memref_slice %arg4[%c0_i32_358, %c0_i32_359] : memref<512x128xf32, #tpu.memory_space<any>> -> memref<1x128xf32, #tpu.memory_space<any>>
    %c5_i32_360 = arith.constant 5 : i32
    %c0_i32_361 = arith.constant 0 : i32
    %367 = tpu.memref_slice %arg12[%c5_i32_360, %c0_i32_361] : memref<16x128xf32, #tpu.memory_space<vmem>> -> memref<1x128xf32, #tpu.memory_space<vmem>>
    %368 = tpu.memref_slice %arg15[%c0_i32_356, %c5_i32_357] : memref<3x16x!tpu.dma_semaphore, #tpu.memory_space<semaphore_mem>> -> memref<1x1x!tpu.dma_semaphore, #tpu.memory_space<semaphore_mem>>
    %369 = tpu.memref_squeeze %368 : memref<1x1x!tpu.dma_semaphore, #tpu.memory_space<semaphore_mem>> -> memref<!tpu.dma_semaphore, #tpu.memory_space<semaphore_mem>>
    tpu.wait_dma2 semaphore(%369 : memref<!tpu.dma_semaphore, #tpu.memory_space<semaphore_mem>>) src(%366 : memref<1x128xf32, #tpu.memory_space<any>>) dst(%367 : memref<1x128xf32, #tpu.memory_space<vmem>>)
    %c1_i32_362 = arith.constant 1 : i32
    %c5_i32_363 = arith.constant 5 : i32
    %c0_i32_364 = arith.constant 0 : i32
    %c0_i32_365 = arith.constant 0 : i32
    %370 = tpu.memref_slice %arg4[%c0_i32_364, %c0_i32_365] : memref<512x128xf32, #tpu.memory_space<any>> -> memref<1x128xf32, #tpu.memory_space<any>>
    %c5_i32_366 = arith.constant 5 : i32
    %c0_i32_367 = arith.constant 0 : i32
    %371 = tpu.memref_slice %arg13[%c5_i32_366, %c0_i32_367] : memref<16x128xf32, #tpu.memory_space<vmem>> -> memref<1x128xf32, #tpu.memory_space<vmem>>
    %372 = tpu.memref_slice %arg15[%c1_i32_362, %c5_i32_363] : memref<3x16x!tpu.dma_semaphore, #tpu.memory_space<semaphore_mem>> -> memref<1x1x!tpu.dma_semaphore, #tpu.memory_space<semaphore_mem>>
    %373 = tpu.memref_squeeze %372 : memref<1x1x!tpu.dma_semaphore, #tpu.memory_space<semaphore_mem>> -> memref<!tpu.dma_semaphore, #tpu.memory_space<semaphore_mem>>
    tpu.wait_dma2 semaphore(%373 : memref<!tpu.dma_semaphore, #tpu.memory_space<semaphore_mem>>) src(%370 : memref<1x128xf32, #tpu.memory_space<any>>) dst(%371 : memref<1x128xf32, #tpu.memory_space<vmem>>)
    %c2_i32_368 = arith.constant 2 : i32
    %c5_i32_369 = arith.constant 5 : i32
    %c0_i32_370 = arith.constant 0 : i32
    %c0_i32_371 = arith.constant 0 : i32
    %374 = tpu.memref_slice %arg5[%c0_i32_370, %c0_i32_371] : memref<32x128xf32, #tpu.memory_space<any>> -> memref<1x128xf32, #tpu.memory_space<any>>
    %c5_i32_372 = arith.constant 5 : i32
    %c0_i32_373 = arith.constant 0 : i32
    %375 = tpu.memref_slice %arg14[%c5_i32_372, %c0_i32_373] : memref<16x128xf32, #tpu.memory_space<vmem>> -> memref<1x128xf32, #tpu.memory_space<vmem>>
    %376 = tpu.memref_slice %arg15[%c2_i32_368, %c5_i32_369] : memref<3x16x!tpu.dma_semaphore, #tpu.memory_space<semaphore_mem>> -> memref<1x1x!tpu.dma_semaphore, #tpu.memory_space<semaphore_mem>>
    %377 = tpu.memref_squeeze %376 : memref<1x1x!tpu.dma_semaphore, #tpu.memory_space<semaphore_mem>> -> memref<!tpu.dma_semaphore, #tpu.memory_space<semaphore_mem>>
    tpu.wait_dma2 semaphore(%377 : memref<!tpu.dma_semaphore, #tpu.memory_space<semaphore_mem>>) src(%374 : memref<1x128xf32, #tpu.memory_space<any>>) dst(%375 : memref<1x128xf32, #tpu.memory_space<vmem>>)
    %c0_i32_374 = arith.constant 0 : i32
    %c6_i32_375 = arith.constant 6 : i32
    %c0_i32_376 = arith.constant 0 : i32
    %c0_i32_377 = arith.constant 0 : i32
    %378 = tpu.memref_slice %arg4[%c0_i32_376, %c0_i32_377] : memref<512x128xf32, #tpu.memory_space<any>> -> memref<1x128xf32, #tpu.memory_space<any>>
    %c6_i32_378 = arith.constant 6 : i32
    %c0_i32_379 = arith.constant 0 : i32
    %379 = tpu.memref_slice %arg12[%c6_i32_378, %c0_i32_379] : memref<16x128xf32, #tpu.memory_space<vmem>> -> memref<1x128xf32, #tpu.memory_space<vmem>>
    %380 = tpu.memref_slice %arg15[%c0_i32_374, %c6_i32_375] : memref<3x16x!tpu.dma_semaphore, #tpu.memory_space<semaphore_mem>> -> memref<1x1x!tpu.dma_semaphore, #tpu.memory_space<semaphore_mem>>
    %381 = tpu.memref_squeeze %380 : memref<1x1x!tpu.dma_semaphore, #tpu.memory_space<semaphore_mem>> -> memref<!tpu.dma_semaphore, #tpu.memory_space<semaphore_mem>>
    tpu.wait_dma2 semaphore(%381 : memref<!tpu.dma_semaphore, #tpu.memory_space<semaphore_mem>>) src(%378 : memref<1x128xf32, #tpu.memory_space<any>>) dst(%379 : memref<1x128xf32, #tpu.memory_space<vmem>>)
    %c1_i32_380 = arith.constant 1 : i32
    %c6_i32_381 = arith.constant 6 : i32
    %c0_i32_382 = arith.constant 0 : i32
    %c0_i32_383 = arith.constant 0 : i32
    %382 = tpu.memref_slice %arg4[%c0_i32_382, %c0_i32_383] : memref<512x128xf32, #tpu.memory_space<any>> -> memref<1x128xf32, #tpu.memory_space<any>>
    %c6_i32_384 = arith.constant 6 : i32
    %c0_i32_385 = arith.constant 0 : i32
    %383 = tpu.memref_slice %arg13[%c6_i32_384, %c0_i32_385] : memref<16x128xf32, #tpu.memory_space<vmem>> -> memref<1x128xf32, #tpu.memory_space<vmem>>
    %384 = tpu.memref_slice %arg15[%c1_i32_380, %c6_i32_381] : memref<3x16x!tpu.dma_semaphore, #tpu.memory_space<semaphore_mem>> -> memref<1x1x!tpu.dma_semaphore, #tpu.memory_space<semaphore_mem>>
    %385 = tpu.memref_squeeze %384 : memref<1x1x!tpu.dma_semaphore, #tpu.memory_space<semaphore_mem>> -> memref<!tpu.dma_semaphore, #tpu.memory_space<semaphore_mem>>
    tpu.wait_dma2 semaphore(%385 : memref<!tpu.dma_semaphore, #tpu.memory_space<semaphore_mem>>) src(%382 : memref<1x128xf32, #tpu.memory_space<any>>) dst(%383 : memref<1x128xf32, #tpu.memory_space<vmem>>)
    %c2_i32_386 = arith.constant 2 : i32
    %c6_i32_387 = arith.constant 6 : i32
    %c0_i32_388 = arith.constant 0 : i32
    %c0_i32_389 = arith.constant 0 : i32
    %386 = tpu.memref_slice %arg5[%c0_i32_388, %c0_i32_389] : memref<32x128xf32, #tpu.memory_space<any>> -> memref<1x128xf32, #tpu.memory_space<any>>
    %c6_i32_390 = arith.constant 6 : i32
    %c0_i32_391 = arith.constant 0 : i32
    %387 = tpu.memref_slice %arg14[%c6_i32_390, %c0_i32_391] : memref<16x128xf32, #tpu.memory_space<vmem>> -> memref<1x128xf32, #tpu.memory_space<vmem>>
    %388 = tpu.memref_slice %arg15[%c2_i32_386, %c6_i32_387] : memref<3x16x!tpu.dma_semaphore, #tpu.memory_space<semaphore_mem>> -> memref<1x1x!tpu.dma_semaphore, #tpu.memory_space<semaphore_mem>>
    %389 = tpu.memref_squeeze %388 : memref<1x1x!tpu.dma_semaphore, #tpu.memory_space<semaphore_mem>> -> memref<!tpu.dma_semaphore, #tpu.memory_space<semaphore_mem>>
    tpu.wait_dma2 semaphore(%389 : memref<!tpu.dma_semaphore, #tpu.memory_space<semaphore_mem>>) src(%386 : memref<1x128xf32, #tpu.memory_space<any>>) dst(%387 : memref<1x128xf32, #tpu.memory_space<vmem>>)
    %c0_i32_392 = arith.constant 0 : i32
    %c7_i32_393 = arith.constant 7 : i32
    %c0_i32_394 = arith.constant 0 : i32
    %c0_i32_395 = arith.constant 0 : i32
    %390 = tpu.memref_slice %arg4[%c0_i32_394, %c0_i32_395] : memref<512x128xf32, #tpu.memory_space<any>> -> memref<1x128xf32, #tpu.memory_space<any>>
    %c7_i32_396 = arith.constant 7 : i32
    %c0_i32_397 = arith.constant 0 : i32
    %391 = tpu.memref_slice %arg12[%c7_i32_396, %c0_i32_397] : memref<16x128xf32, #tpu.memory_space<vmem>> -> memref<1x128xf32, #tpu.memory_space<vmem>>
    %392 = tpu.memref_slice %arg15[%c0_i32_392, %c7_i32_393] : memref<3x16x!tpu.dma_semaphore, #tpu.memory_space<semaphore_mem>> -> memref<1x1x!tpu.dma_semaphore, #tpu.memory_space<semaphore_mem>>
    %393 = tpu.memref_squeeze %392 : memref<1x1x!tpu.dma_semaphore, #tpu.memory_space<semaphore_mem>> -> memref<!tpu.dma_semaphore, #tpu.memory_space<semaphore_mem>>
    tpu.wait_dma2 semaphore(%393 : memref<!tpu.dma_semaphore, #tpu.memory_space<semaphore_mem>>) src(%390 : memref<1x128xf32, #tpu.memory_space<any>>) dst(%391 : memref<1x128xf32, #tpu.memory_space<vmem>>)
    %c1_i32_398 = arith.constant 1 : i32
    %c7_i32_399 = arith.constant 7 : i32
    %c0_i32_400 = arith.constant 0 : i32
    %c0_i32_401 = arith.constant 0 : i32
    %394 = tpu.memref_slice %arg4[%c0_i32_400, %c0_i32_401] : memref<512x128xf32, #tpu.memory_space<any>> -> memref<1x128xf32, #tpu.memory_space<any>>
    %c7_i32_402 = arith.constant 7 : i32
    %c0_i32_403 = arith.constant 0 : i32
    %395 = tpu.memref_slice %arg13[%c7_i32_402, %c0_i32_403] : memref<16x128xf32, #tpu.memory_space<vmem>> -> memref<1x128xf32, #tpu.memory_space<vmem>>
    %396 = tpu.memref_slice %arg15[%c1_i32_398, %c7_i32_399] : memref<3x16x!tpu.dma_semaphore, #tpu.memory_space<semaphore_mem>> -> memref<1x1x!tpu.dma_semaphore, #tpu.memory_space<semaphore_mem>>
    %397 = tpu.memref_squeeze %396 : memref<1x1x!tpu.dma_semaphore, #tpu.memory_space<semaphore_mem>> -> memref<!tpu.dma_semaphore, #tpu.memory_space<semaphore_mem>>
    tpu.wait_dma2 semaphore(%397 : memref<!tpu.dma_semaphore, #tpu.memory_space<semaphore_mem>>) src(%394 : memref<1x128xf32, #tpu.memory_space<any>>) dst(%395 : memref<1x128xf32, #tpu.memory_space<vmem>>)
    %c2_i32_404 = arith.constant 2 : i32
    %c7_i32_405 = arith.constant 7 : i32
    %c0_i32_406 = arith.constant 0 : i32
    %c0_i32_407 = arith.constant 0 : i32
    %398 = tpu.memref_slice %arg5[%c0_i32_406, %c0_i32_407] : memref<32x128xf32, #tpu.memory_space<any>> -> memref<1x128xf32, #tpu.memory_space<any>>
    %c7_i32_408 = arith.constant 7 : i32
    %c0_i32_409 = arith.constant 0 : i32
    %399 = tpu.memref_slice %arg14[%c7_i32_408, %c0_i32_409] : memref<16x128xf32, #tpu.memory_space<vmem>> -> memref<1x128xf32, #tpu.memory_space<vmem>>
    %400 = tpu.memref_slice %arg15[%c2_i32_404, %c7_i32_405] : memref<3x16x!tpu.dma_semaphore, #tpu.memory_space<semaphore_mem>> -> memref<1x1x!tpu.dma_semaphore, #tpu.memory_space<semaphore_mem>>
    %401 = tpu.memref_squeeze %400 : memref<1x1x!tpu.dma_semaphore, #tpu.memory_space<semaphore_mem>> -> memref<!tpu.dma_semaphore, #tpu.memory_space<semaphore_mem>>
    tpu.wait_dma2 semaphore(%401 : memref<!tpu.dma_semaphore, #tpu.memory_space<semaphore_mem>>) src(%398 : memref<1x128xf32, #tpu.memory_space<any>>) dst(%399 : memref<1x128xf32, #tpu.memory_space<vmem>>)
    %c0_i32_410 = arith.constant 0 : i32
    %c8_i32_411 = arith.constant 8 : i32
    %c0_i32_412 = arith.constant 0 : i32
    %c0_i32_413 = arith.constant 0 : i32
    %402 = tpu.memref_slice %arg4[%c0_i32_412, %c0_i32_413] : memref<512x128xf32, #tpu.memory_space<any>> -> memref<1x128xf32, #tpu.memory_space<any>>
    %c8_i32_414 = arith.constant 8 : i32
    %c0_i32_415 = arith.constant 0 : i32
    %403 = tpu.memref_slice %arg12[%c8_i32_414, %c0_i32_415] : memref<16x128xf32, #tpu.memory_space<vmem>> -> memref<1x128xf32, #tpu.memory_space<vmem>>
    %404 = tpu.memref_slice %arg15[%c0_i32_410, %c8_i32_411] : memref<3x16x!tpu.dma_semaphore, #tpu.memory_space<semaphore_mem>> -> memref<1x1x!tpu.dma_semaphore, #tpu.memory_space<semaphore_mem>>
    %405 = tpu.memref_squeeze %404 : memref<1x1x!tpu.dma_semaphore, #tpu.memory_space<semaphore_mem>> -> memref<!tpu.dma_semaphore, #tpu.memory_space<semaphore_mem>>
    tpu.wait_dma2 semaphore(%405 : memref<!tpu.dma_semaphore, #tpu.memory_space<semaphore_mem>>) src(%402 : memref<1x128xf32, #tpu.memory_space<any>>) dst(%403 : memref<1x128xf32, #tpu.memory_space<vmem>>)
    %c1_i32_416 = arith.constant 1 : i32
    %c8_i32_417 = arith.constant 8 : i32
    %c0_i32_418 = arith.constant 0 : i32
    %c0_i32_419 = arith.constant 0 : i32
    %406 = tpu.memref_slice %arg4[%c0_i32_418, %c0_i32_419] : memref<512x128xf32, #tpu.memory_space<any>> -> memref<1x128xf32, #tpu.memory_space<any>>
    %c8_i32_420 = arith.constant 8 : i32
    %c0_i32_421 = arith.constant 0 : i32
    %407 = tpu.memref_slice %arg13[%c8_i32_420, %c0_i32_421] : memref<16x128xf32, #tpu.memory_space<vmem>> -> memref<1x128xf32, #tpu.memory_space<vmem>>
    %408 = tpu.memref_slice %arg15[%c1_i32_416, %c8_i32_417] : memref<3x16x!tpu.dma_semaphore, #tpu.memory_space<semaphore_mem>> -> memref<1x1x!tpu.dma_semaphore, #tpu.memory_space<semaphore_mem>>
    %409 = tpu.memref_squeeze %408 : memref<1x1x!tpu.dma_semaphore, #tpu.memory_space<semaphore_mem>> -> memref<!tpu.dma_semaphore, #tpu.memory_space<semaphore_mem>>
    tpu.wait_dma2 semaphore(%409 : memref<!tpu.dma_semaphore, #tpu.memory_space<semaphore_mem>>) src(%406 : memref<1x128xf32, #tpu.memory_space<any>>) dst(%407 : memref<1x128xf32, #tpu.memory_space<vmem>>)
    %c2_i32_422 = arith.constant 2 : i32
    %c8_i32_423 = arith.constant 8 : i32
    %c0_i32_424 = arith.constant 0 : i32
    %c0_i32_425 = arith.constant 0 : i32
    %410 = tpu.memref_slice %arg5[%c0_i32_424, %c0_i32_425] : memref<32x128xf32, #tpu.memory_space<any>> -> memref<1x128xf32, #tpu.memory_space<any>>
    %c8_i32_426 = arith.constant 8 : i32
    %c0_i32_427 = arith.constant 0 : i32
    %411 = tpu.memref_slice %arg14[%c8_i32_426, %c0_i32_427] : memref<16x128xf32, #tpu.memory_space<vmem>> -> memref<1x128xf32, #tpu.memory_space<vmem>>
    %412 = tpu.memref_slice %arg15[%c2_i32_422, %c8_i32_423] : memref<3x16x!tpu.dma_semaphore, #tpu.memory_space<semaphore_mem>> -> memref<1x1x!tpu.dma_semaphore, #tpu.memory_space<semaphore_mem>>
    %413 = tpu.memref_squeeze %412 : memref<1x1x!tpu.dma_semaphore, #tpu.memory_space<semaphore_mem>> -> memref<!tpu.dma_semaphore, #tpu.memory_space<semaphore_mem>>
    tpu.wait_dma2 semaphore(%413 : memref<!tpu.dma_semaphore, #tpu.memory_space<semaphore_mem>>) src(%410 : memref<1x128xf32, #tpu.memory_space<any>>) dst(%411 : memref<1x128xf32, #tpu.memory_space<vmem>>)
    %c0_i32_428 = arith.constant 0 : i32
    %c9_i32_429 = arith.constant 9 : i32
    %c0_i32_430 = arith.constant 0 : i32
    %c0_i32_431 = arith.constant 0 : i32
    %414 = tpu.memref_slice %arg4[%c0_i32_430, %c0_i32_431] : memref<512x128xf32, #tpu.memory_space<any>> -> memref<1x128xf32, #tpu.memory_space<any>>
    %c9_i32_432 = arith.constant 9 : i32
    %c0_i32_433 = arith.constant 0 : i32
    %415 = tpu.memref_slice %arg12[%c9_i32_432, %c0_i32_433] : memref<16x128xf32, #tpu.memory_space<vmem>> -> memref<1x128xf32, #tpu.memory_space<vmem>>
    %416 = tpu.memref_slice %arg15[%c0_i32_428, %c9_i32_429] : memref<3x16x!tpu.dma_semaphore, #tpu.memory_space<semaphore_mem>> -> memref<1x1x!tpu.dma_semaphore, #tpu.memory_space<semaphore_mem>>
    %417 = tpu.memref_squeeze %416 : memref<1x1x!tpu.dma_semaphore, #tpu.memory_space<semaphore_mem>> -> memref<!tpu.dma_semaphore, #tpu.memory_space<semaphore_mem>>
    tpu.wait_dma2 semaphore(%417 : memref<!tpu.dma_semaphore, #tpu.memory_space<semaphore_mem>>) src(%414 : memref<1x128xf32, #tpu.memory_space<any>>) dst(%415 : memref<1x128xf32, #tpu.memory_space<vmem>>)
    %c1_i32_434 = arith.constant 1 : i32
    %c9_i32_435 = arith.constant 9 : i32
    %c0_i32_436 = arith.constant 0 : i32
    %c0_i32_437 = arith.constant 0 : i32
    %418 = tpu.memref_slice %arg4[%c0_i32_436, %c0_i32_437] : memref<512x128xf32, #tpu.memory_space<any>> -> memref<1x128xf32, #tpu.memory_space<any>>
    %c9_i32_438 = arith.constant 9 : i32
    %c0_i32_439 = arith.constant 0 : i32
    %419 = tpu.memref_slice %arg13[%c9_i32_438, %c0_i32_439] : memref<16x128xf32, #tpu.memory_space<vmem>> -> memref<1x128xf32, #tpu.memory_space<vmem>>
    %420 = tpu.memref_slice %arg15[%c1_i32_434, %c9_i32_435] : memref<3x16x!tpu.dma_semaphore, #tpu.memory_space<semaphore_mem>> -> memref<1x1x!tpu.dma_semaphore, #tpu.memory_space<semaphore_mem>>
    %421 = tpu.memref_squeeze %420 : memref<1x1x!tpu.dma_semaphore, #tpu.memory_space<semaphore_mem>> -> memref<!tpu.dma_semaphore, #tpu.memory_space<semaphore_mem>>
    tpu.wait_dma2 semaphore(%421 : memref<!tpu.dma_semaphore, #tpu.memory_space<semaphore_mem>>) src(%418 : memref<1x128xf32, #tpu.memory_space<any>>) dst(%419 : memref<1x128xf32, #tpu.memory_space<vmem>>)
    %c2_i32_440 = arith.constant 2 : i32
    %c9_i32_441 = arith.constant 9 : i32
    %c0_i32_442 = arith.constant 0 : i32
    %c0_i32_443 = arith.constant 0 : i32
    %422 = tpu.memref_slice %arg5[%c0_i32_442, %c0_i32_443] : memref<32x128xf32, #tpu.memory_space<any>> -> memref<1x128xf32, #tpu.memory_space<any>>
    %c9_i32_444 = arith.constant 9 : i32
    %c0_i32_445 = arith.constant 0 : i32
    %423 = tpu.memref_slice %arg14[%c9_i32_444, %c0_i32_445] : memref<16x128xf32, #tpu.memory_space<vmem>> -> memref<1x128xf32, #tpu.memory_space<vmem>>
    %424 = tpu.memref_slice %arg15[%c2_i32_440, %c9_i32_441] : memref<3x16x!tpu.dma_semaphore, #tpu.memory_space<semaphore_mem>> -> memref<1x1x!tpu.dma_semaphore, #tpu.memory_space<semaphore_mem>>
    %425 = tpu.memref_squeeze %424 : memref<1x1x!tpu.dma_semaphore, #tpu.memory_space<semaphore_mem>> -> memref<!tpu.dma_semaphore, #tpu.memory_space<semaphore_mem>>
    tpu.wait_dma2 semaphore(%425 : memref<!tpu.dma_semaphore, #tpu.memory_space<semaphore_mem>>) src(%422 : memref<1x128xf32, #tpu.memory_space<any>>) dst(%423 : memref<1x128xf32, #tpu.memory_space<vmem>>)
    %c0_i32_446 = arith.constant 0 : i32
    %c10_i32_447 = arith.constant 10 : i32
    %c0_i32_448 = arith.constant 0 : i32
    %c0_i32_449 = arith.constant 0 : i32
    %426 = tpu.memref_slice %arg4[%c0_i32_448, %c0_i32_449] : memref<512x128xf32, #tpu.memory_space<any>> -> memref<1x128xf32, #tpu.memory_space<any>>
    %c10_i32_450 = arith.constant 10 : i32
    %c0_i32_451 = arith.constant 0 : i32
    %427 = tpu.memref_slice %arg12[%c10_i32_450, %c0_i32_451] : memref<16x128xf32, #tpu.memory_space<vmem>> -> memref<1x128xf32, #tpu.memory_space<vmem>>
    %428 = tpu.memref_slice %arg15[%c0_i32_446, %c10_i32_447] : memref<3x16x!tpu.dma_semaphore, #tpu.memory_space<semaphore_mem>> -> memref<1x1x!tpu.dma_semaphore, #tpu.memory_space<semaphore_mem>>
    %429 = tpu.memref_squeeze %428 : memref<1x1x!tpu.dma_semaphore, #tpu.memory_space<semaphore_mem>> -> memref<!tpu.dma_semaphore, #tpu.memory_space<semaphore_mem>>
    tpu.wait_dma2 semaphore(%429 : memref<!tpu.dma_semaphore, #tpu.memory_space<semaphore_mem>>) src(%426 : memref<1x128xf32, #tpu.memory_space<any>>) dst(%427 : memref<1x128xf32, #tpu.memory_space<vmem>>)
    %c1_i32_452 = arith.constant 1 : i32
    %c10_i32_453 = arith.constant 10 : i32
    %c0_i32_454 = arith.constant 0 : i32
    %c0_i32_455 = arith.constant 0 : i32
    %430 = tpu.memref_slice %arg4[%c0_i32_454, %c0_i32_455] : memref<512x128xf32, #tpu.memory_space<any>> -> memref<1x128xf32, #tpu.memory_space<any>>
    %c10_i32_456 = arith.constant 10 : i32
    %c0_i32_457 = arith.constant 0 : i32
    %431 = tpu.memref_slice %arg13[%c10_i32_456, %c0_i32_457] : memref<16x128xf32, #tpu.memory_space<vmem>> -> memref<1x128xf32, #tpu.memory_space<vmem>>
    %432 = tpu.memref_slice %arg15[%c1_i32_452, %c10_i32_453] : memref<3x16x!tpu.dma_semaphore, #tpu.memory_space<semaphore_mem>> -> memref<1x1x!tpu.dma_semaphore, #tpu.memory_space<semaphore_mem>>
    %433 = tpu.memref_squeeze %432 : memref<1x1x!tpu.dma_semaphore, #tpu.memory_space<semaphore_mem>> -> memref<!tpu.dma_semaphore, #tpu.memory_space<semaphore_mem>>
    tpu.wait_dma2 semaphore(%433 : memref<!tpu.dma_semaphore, #tpu.memory_space<semaphore_mem>>) src(%430 : memref<1x128xf32, #tpu.memory_space<any>>) dst(%431 : memref<1x128xf32, #tpu.memory_space<vmem>>)
    %c2_i32_458 = arith.constant 2 : i32
    %c10_i32_459 = arith.constant 10 : i32
    %c0_i32_460 = arith.constant 0 : i32
    %c0_i32_461 = arith.constant 0 : i32
    %434 = tpu.memref_slice %arg5[%c0_i32_460, %c0_i32_461] : memref<32x128xf32, #tpu.memory_space<any>> -> memref<1x128xf32, #tpu.memory_space<any>>
    %c10_i32_462 = arith.constant 10 : i32
    %c0_i32_463 = arith.constant 0 : i32
    %435 = tpu.memref_slice %arg14[%c10_i32_462, %c0_i32_463] : memref<16x128xf32, #tpu.memory_space<vmem>> -> memref<1x128xf32, #tpu.memory_space<vmem>>
    %436 = tpu.memref_slice %arg15[%c2_i32_458, %c10_i32_459] : memref<3x16x!tpu.dma_semaphore, #tpu.memory_space<semaphore_mem>> -> memref<1x1x!tpu.dma_semaphore, #tpu.memory_space<semaphore_mem>>
    %437 = tpu.memref_squeeze %436 : memref<1x1x!tpu.dma_semaphore, #tpu.memory_space<semaphore_mem>> -> memref<!tpu.dma_semaphore, #tpu.memory_space<semaphore_mem>>
    tpu.wait_dma2 semaphore(%437 : memref<!tpu.dma_semaphore, #tpu.memory_space<semaphore_mem>>) src(%434 : memref<1x128xf32, #tpu.memory_space<any>>) dst(%435 : memref<1x128xf32, #tpu.memory_space<vmem>>)
    %c0_i32_464 = arith.constant 0 : i32
    %c11_i32_465 = arith.constant 11 : i32
    %c0_i32_466 = arith.constant 0 : i32
    %c0_i32_467 = arith.constant 0 : i32
    %438 = tpu.memref_slice %arg4[%c0_i32_466, %c0_i32_467] : memref<512x128xf32, #tpu.memory_space<any>> -> memref<1x128xf32, #tpu.memory_space<any>>
    %c11_i32_468 = arith.constant 11 : i32
    %c0_i32_469 = arith.constant 0 : i32
    %439 = tpu.memref_slice %arg12[%c11_i32_468, %c0_i32_469] : memref<16x128xf32, #tpu.memory_space<vmem>> -> memref<1x128xf32, #tpu.memory_space<vmem>>
    %440 = tpu.memref_slice %arg15[%c0_i32_464, %c11_i32_465] : memref<3x16x!tpu.dma_semaphore, #tpu.memory_space<semaphore_mem>> -> memref<1x1x!tpu.dma_semaphore, #tpu.memory_space<semaphore_mem>>
    %441 = tpu.memref_squeeze %440 : memref<1x1x!tpu.dma_semaphore, #tpu.memory_space<semaphore_mem>> -> memref<!tpu.dma_semaphore, #tpu.memory_space<semaphore_mem>>
    tpu.wait_dma2 semaphore(%441 : memref<!tpu.dma_semaphore, #tpu.memory_space<semaphore_mem>>) src(%438 : memref<1x128xf32, #tpu.memory_space<any>>) dst(%439 : memref<1x128xf32, #tpu.memory_space<vmem>>)
    %c1_i32_470 = arith.constant 1 : i32
    %c11_i32_471 = arith.constant 11 : i32
    %c0_i32_472 = arith.constant 0 : i32
    %c0_i32_473 = arith.constant 0 : i32
    %442 = tpu.memref_slice %arg4[%c0_i32_472, %c0_i32_473] : memref<512x128xf32, #tpu.memory_space<any>> -> memref<1x128xf32, #tpu.memory_space<any>>
    %c11_i32_474 = arith.constant 11 : i32
    %c0_i32_475 = arith.constant 0 : i32
    %443 = tpu.memref_slice %arg13[%c11_i32_474, %c0_i32_475] : memref<16x128xf32, #tpu.memory_space<vmem>> -> memref<1x128xf32, #tpu.memory_space<vmem>>
    %444 = tpu.memref_slice %arg15[%c1_i32_470, %c11_i32_471] : memref<3x16x!tpu.dma_semaphore, #tpu.memory_space<semaphore_mem>> -> memref<1x1x!tpu.dma_semaphore, #tpu.memory_space<semaphore_mem>>
    %445 = tpu.memref_squeeze %444 : memref<1x1x!tpu.dma_semaphore, #tpu.memory_space<semaphore_mem>> -> memref<!tpu.dma_semaphore, #tpu.memory_space<semaphore_mem>>
    tpu.wait_dma2 semaphore(%445 : memref<!tpu.dma_semaphore, #tpu.memory_space<semaphore_mem>>) src(%442 : memref<1x128xf32, #tpu.memory_space<any>>) dst(%443 : memref<1x128xf32, #tpu.memory_space<vmem>>)
    %c2_i32_476 = arith.constant 2 : i32
    %c11_i32_477 = arith.constant 11 : i32
    %c0_i32_478 = arith.constant 0 : i32
    %c0_i32_479 = arith.constant 0 : i32
    %446 = tpu.memref_slice %arg5[%c0_i32_478, %c0_i32_479] : memref<32x128xf32, #tpu.memory_space<any>> -> memref<1x128xf32, #tpu.memory_space<any>>
    %c11_i32_480 = arith.constant 11 : i32
    %c0_i32_481 = arith.constant 0 : i32
    %447 = tpu.memref_slice %arg14[%c11_i32_480, %c0_i32_481] : memref<16x128xf32, #tpu.memory_space<vmem>> -> memref<1x128xf32, #tpu.memory_space<vmem>>
    %448 = tpu.memref_slice %arg15[%c2_i32_476, %c11_i32_477] : memref<3x16x!tpu.dma_semaphore, #tpu.memory_space<semaphore_mem>> -> memref<1x1x!tpu.dma_semaphore, #tpu.memory_space<semaphore_mem>>
    %449 = tpu.memref_squeeze %448 : memref<1x1x!tpu.dma_semaphore, #tpu.memory_space<semaphore_mem>> -> memref<!tpu.dma_semaphore, #tpu.memory_space<semaphore_mem>>
    tpu.wait_dma2 semaphore(%449 : memref<!tpu.dma_semaphore, #tpu.memory_space<semaphore_mem>>) src(%446 : memref<1x128xf32, #tpu.memory_space<any>>) dst(%447 : memref<1x128xf32, #tpu.memory_space<vmem>>)
    %c0_i32_482 = arith.constant 0 : i32
    %c12_i32_483 = arith.constant 12 : i32
    %c0_i32_484 = arith.constant 0 : i32
    %c0_i32_485 = arith.constant 0 : i32
    %450 = tpu.memref_slice %arg4[%c0_i32_484, %c0_i32_485] : memref<512x128xf32, #tpu.memory_space<any>> -> memref<1x128xf32, #tpu.memory_space<any>>
    %c12_i32_486 = arith.constant 12 : i32
    %c0_i32_487 = arith.constant 0 : i32
    %451 = tpu.memref_slice %arg12[%c12_i32_486, %c0_i32_487] : memref<16x128xf32, #tpu.memory_space<vmem>> -> memref<1x128xf32, #tpu.memory_space<vmem>>
    %452 = tpu.memref_slice %arg15[%c0_i32_482, %c12_i32_483] : memref<3x16x!tpu.dma_semaphore, #tpu.memory_space<semaphore_mem>> -> memref<1x1x!tpu.dma_semaphore, #tpu.memory_space<semaphore_mem>>
    %453 = tpu.memref_squeeze %452 : memref<1x1x!tpu.dma_semaphore, #tpu.memory_space<semaphore_mem>> -> memref<!tpu.dma_semaphore, #tpu.memory_space<semaphore_mem>>
    tpu.wait_dma2 semaphore(%453 : memref<!tpu.dma_semaphore, #tpu.memory_space<semaphore_mem>>) src(%450 : memref<1x128xf32, #tpu.memory_space<any>>) dst(%451 : memref<1x128xf32, #tpu.memory_space<vmem>>)
    %c1_i32_488 = arith.constant 1 : i32
    %c12_i32_489 = arith.constant 12 : i32
    %c0_i32_490 = arith.constant 0 : i32
    %c0_i32_491 = arith.constant 0 : i32
    %454 = tpu.memref_slice %arg4[%c0_i32_490, %c0_i32_491] : memref<512x128xf32, #tpu.memory_space<any>> -> memref<1x128xf32, #tpu.memory_space<any>>
    %c12_i32_492 = arith.constant 12 : i32
    %c0_i32_493 = arith.constant 0 : i32
    %455 = tpu.memref_slice %arg13[%c12_i32_492, %c0_i32_493] : memref<16x128xf32, #tpu.memory_space<vmem>> -> memref<1x128xf32, #tpu.memory_space<vmem>>
    %456 = tpu.memref_slice %arg15[%c1_i32_488, %c12_i32_489] : memref<3x16x!tpu.dma_semaphore, #tpu.memory_space<semaphore_mem>> -> memref<1x1x!tpu.dma_semaphore, #tpu.memory_space<semaphore_mem>>
    %457 = tpu.memref_squeeze %456 : memref<1x1x!tpu.dma_semaphore, #tpu.memory_space<semaphore_mem>> -> memref<!tpu.dma_semaphore, #tpu.memory_space<semaphore_mem>>
    tpu.wait_dma2 semaphore(%457 : memref<!tpu.dma_semaphore, #tpu.memory_space<semaphore_mem>>) src(%454 : memref<1x128xf32, #tpu.memory_space<any>>) dst(%455 : memref<1x128xf32, #tpu.memory_space<vmem>>)
    %c2_i32_494 = arith.constant 2 : i32
    %c12_i32_495 = arith.constant 12 : i32
    %c0_i32_496 = arith.constant 0 : i32
    %c0_i32_497 = arith.constant 0 : i32
    %458 = tpu.memref_slice %arg5[%c0_i32_496, %c0_i32_497] : memref<32x128xf32, #tpu.memory_space<any>> -> memref<1x128xf32, #tpu.memory_space<any>>
    %c12_i32_498 = arith.constant 12 : i32
    %c0_i32_499 = arith.constant 0 : i32
    %459 = tpu.memref_slice %arg14[%c12_i32_498, %c0_i32_499] : memref<16x128xf32, #tpu.memory_space<vmem>> -> memref<1x128xf32, #tpu.memory_space<vmem>>
    %460 = tpu.memref_slice %arg15[%c2_i32_494, %c12_i32_495] : memref<3x16x!tpu.dma_semaphore, #tpu.memory_space<semaphore_mem>> -> memref<1x1x!tpu.dma_semaphore, #tpu.memory_space<semaphore_mem>>
    %461 = tpu.memref_squeeze %460 : memref<1x1x!tpu.dma_semaphore, #tpu.memory_space<semaphore_mem>> -> memref<!tpu.dma_semaphore, #tpu.memory_space<semaphore_mem>>
    tpu.wait_dma2 semaphore(%461 : memref<!tpu.dma_semaphore, #tpu.memory_space<semaphore_mem>>) src(%458 : memref<1x128xf32, #tpu.memory_space<any>>) dst(%459 : memref<1x128xf32, #tpu.memory_space<vmem>>)
    %c0_i32_500 = arith.constant 0 : i32
    %c13_i32_501 = arith.constant 13 : i32
    %c0_i32_502 = arith.constant 0 : i32
    %c0_i32_503 = arith.constant 0 : i32
    %462 = tpu.memref_slice %arg4[%c0_i32_502, %c0_i32_503] : memref<512x128xf32, #tpu.memory_space<any>> -> memref<1x128xf32, #tpu.memory_space<any>>
    %c13_i32_504 = arith.constant 13 : i32
    %c0_i32_505 = arith.constant 0 : i32
    %463 = tpu.memref_slice %arg12[%c13_i32_504, %c0_i32_505] : memref<16x128xf32, #tpu.memory_space<vmem>> -> memref<1x128xf32, #tpu.memory_space<vmem>>
    %464 = tpu.memref_slice %arg15[%c0_i32_500, %c13_i32_501] : memref<3x16x!tpu.dma_semaphore, #tpu.memory_space<semaphore_mem>> -> memref<1x1x!tpu.dma_semaphore, #tpu.memory_space<semaphore_mem>>
    %465 = tpu.memref_squeeze %464 : memref<1x1x!tpu.dma_semaphore, #tpu.memory_space<semaphore_mem>> -> memref<!tpu.dma_semaphore, #tpu.memory_space<semaphore_mem>>
    tpu.wait_dma2 semaphore(%465 : memref<!tpu.dma_semaphore, #tpu.memory_space<semaphore_mem>>) src(%462 : memref<1x128xf32, #tpu.memory_space<any>>) dst(%463 : memref<1x128xf32, #tpu.memory_space<vmem>>)
    %c1_i32_506 = arith.constant 1 : i32
    %c13_i32_507 = arith.constant 13 : i32
    %c0_i32_508 = arith.constant 0 : i32
    %c0_i32_509 = arith.constant 0 : i32
    %466 = tpu.memref_slice %arg4[%c0_i32_508, %c0_i32_509] : memref<512x128xf32, #tpu.memory_space<any>> -> memref<1x128xf32, #tpu.memory_space<any>>
    %c13_i32_510 = arith.constant 13 : i32
    %c0_i32_511 = arith.constant 0 : i32
    %467 = tpu.memref_slice %arg13[%c13_i32_510, %c0_i32_511] : memref<16x128xf32, #tpu.memory_space<vmem>> -> memref<1x128xf32, #tpu.memory_space<vmem>>
    %468 = tpu.memref_slice %arg15[%c1_i32_506, %c13_i32_507] : memref<3x16x!tpu.dma_semaphore, #tpu.memory_space<semaphore_mem>> -> memref<1x1x!tpu.dma_semaphore, #tpu.memory_space<semaphore_mem>>
    %469 = tpu.memref_squeeze %468 : memref<1x1x!tpu.dma_semaphore, #tpu.memory_space<semaphore_mem>> -> memref<!tpu.dma_semaphore, #tpu.memory_space<semaphore_mem>>
    tpu.wait_dma2 semaphore(%469 : memref<!tpu.dma_semaphore, #tpu.memory_space<semaphore_mem>>) src(%466 : memref<1x128xf32, #tpu.memory_space<any>>) dst(%467 : memref<1x128xf32, #tpu.memory_space<vmem>>)
    %c2_i32_512 = arith.constant 2 : i32
    %c13_i32_513 = arith.constant 13 : i32
    %c0_i32_514 = arith.constant 0 : i32
    %c0_i32_515 = arith.constant 0 : i32
    %470 = tpu.memref_slice %arg5[%c0_i32_514, %c0_i32_515] : memref<32x128xf32, #tpu.memory_space<any>> -> memref<1x128xf32, #tpu.memory_space<any>>
    %c13_i32_516 = arith.constant 13 : i32
    %c0_i32_517 = arith.constant 0 : i32
    %471 = tpu.memref_slice %arg14[%c13_i32_516, %c0_i32_517] : memref<16x128xf32, #tpu.memory_space<vmem>> -> memref<1x128xf32, #tpu.memory_space<vmem>>
    %472 = tpu.memref_slice %arg15[%c2_i32_512, %c13_i32_513] : memref<3x16x!tpu.dma_semaphore, #tpu.memory_space<semaphore_mem>> -> memref<1x1x!tpu.dma_semaphore, #tpu.memory_space<semaphore_mem>>
    %473 = tpu.memref_squeeze %472 : memref<1x1x!tpu.dma_semaphore, #tpu.memory_space<semaphore_mem>> -> memref<!tpu.dma_semaphore, #tpu.memory_space<semaphore_mem>>
    tpu.wait_dma2 semaphore(%473 : memref<!tpu.dma_semaphore, #tpu.memory_space<semaphore_mem>>) src(%470 : memref<1x128xf32, #tpu.memory_space<any>>) dst(%471 : memref<1x128xf32, #tpu.memory_space<vmem>>)
    %c0_i32_518 = arith.constant 0 : i32
    %c14_i32_519 = arith.constant 14 : i32
    %c0_i32_520 = arith.constant 0 : i32
    %c0_i32_521 = arith.constant 0 : i32
    %474 = tpu.memref_slice %arg4[%c0_i32_520, %c0_i32_521] : memref<512x128xf32, #tpu.memory_space<any>> -> memref<1x128xf32, #tpu.memory_space<any>>
    %c14_i32_522 = arith.constant 14 : i32
    %c0_i32_523 = arith.constant 0 : i32
    %475 = tpu.memref_slice %arg12[%c14_i32_522, %c0_i32_523] : memref<16x128xf32, #tpu.memory_space<vmem>> -> memref<1x128xf32, #tpu.memory_space<vmem>>
    %476 = tpu.memref_slice %arg15[%c0_i32_518, %c14_i32_519] : memref<3x16x!tpu.dma_semaphore, #tpu.memory_space<semaphore_mem>> -> memref<1x1x!tpu.dma_semaphore, #tpu.memory_space<semaphore_mem>>
    %477 = tpu.memref_squeeze %476 : memref<1x1x!tpu.dma_semaphore, #tpu.memory_space<semaphore_mem>> -> memref<!tpu.dma_semaphore, #tpu.memory_space<semaphore_mem>>
    tpu.wait_dma2 semaphore(%477 : memref<!tpu.dma_semaphore, #tpu.memory_space<semaphore_mem>>) src(%474 : memref<1x128xf32, #tpu.memory_space<any>>) dst(%475 : memref<1x128xf32, #tpu.memory_space<vmem>>)
    %c1_i32_524 = arith.constant 1 : i32
    %c14_i32_525 = arith.constant 14 : i32
    %c0_i32_526 = arith.constant 0 : i32
    %c0_i32_527 = arith.constant 0 : i32
    %478 = tpu.memref_slice %arg4[%c0_i32_526, %c0_i32_527] : memref<512x128xf32, #tpu.memory_space<any>> -> memref<1x128xf32, #tpu.memory_space<any>>
    %c14_i32_528 = arith.constant 14 : i32
    %c0_i32_529 = arith.constant 0 : i32
    %479 = tpu.memref_slice %arg13[%c14_i32_528, %c0_i32_529] : memref<16x128xf32, #tpu.memory_space<vmem>> -> memref<1x128xf32, #tpu.memory_space<vmem>>
    %480 = tpu.memref_slice %arg15[%c1_i32_524, %c14_i32_525] : memref<3x16x!tpu.dma_semaphore, #tpu.memory_space<semaphore_mem>> -> memref<1x1x!tpu.dma_semaphore, #tpu.memory_space<semaphore_mem>>
    %481 = tpu.memref_squeeze %480 : memref<1x1x!tpu.dma_semaphore, #tpu.memory_space<semaphore_mem>> -> memref<!tpu.dma_semaphore, #tpu.memory_space<semaphore_mem>>
    tpu.wait_dma2 semaphore(%481 : memref<!tpu.dma_semaphore, #tpu.memory_space<semaphore_mem>>) src(%478 : memref<1x128xf32, #tpu.memory_space<any>>) dst(%479 : memref<1x128xf32, #tpu.memory_space<vmem>>)
    %c2_i32_530 = arith.constant 2 : i32
    %c14_i32_531 = arith.constant 14 : i32
    %c0_i32_532 = arith.constant 0 : i32
    %c0_i32_533 = arith.constant 0 : i32
    %482 = tpu.memref_slice %arg5[%c0_i32_532, %c0_i32_533] : memref<32x128xf32, #tpu.memory_space<any>> -> memref<1x128xf32, #tpu.memory_space<any>>
    %c14_i32_534 = arith.constant 14 : i32
    %c0_i32_535 = arith.constant 0 : i32
    %483 = tpu.memref_slice %arg14[%c14_i32_534, %c0_i32_535] : memref<16x128xf32, #tpu.memory_space<vmem>> -> memref<1x128xf32, #tpu.memory_space<vmem>>
    %484 = tpu.memref_slice %arg15[%c2_i32_530, %c14_i32_531] : memref<3x16x!tpu.dma_semaphore, #tpu.memory_space<semaphore_mem>> -> memref<1x1x!tpu.dma_semaphore, #tpu.memory_space<semaphore_mem>>
    %485 = tpu.memref_squeeze %484 : memref<1x1x!tpu.dma_semaphore, #tpu.memory_space<semaphore_mem>> -> memref<!tpu.dma_semaphore, #tpu.memory_space<semaphore_mem>>
    tpu.wait_dma2 semaphore(%485 : memref<!tpu.dma_semaphore, #tpu.memory_space<semaphore_mem>>) src(%482 : memref<1x128xf32, #tpu.memory_space<any>>) dst(%483 : memref<1x128xf32, #tpu.memory_space<vmem>>)
    %c0_i32_536 = arith.constant 0 : i32
    %c15_i32_537 = arith.constant 15 : i32
    %c0_i32_538 = arith.constant 0 : i32
    %c0_i32_539 = arith.constant 0 : i32
    %486 = tpu.memref_slice %arg4[%c0_i32_538, %c0_i32_539] : memref<512x128xf32, #tpu.memory_space<any>> -> memref<1x128xf32, #tpu.memory_space<any>>
    %c15_i32_540 = arith.constant 15 : i32
    %c0_i32_541 = arith.constant 0 : i32
    %487 = tpu.memref_slice %arg12[%c15_i32_540, %c0_i32_541] : memref<16x128xf32, #tpu.memory_space<vmem>> -> memref<1x128xf32, #tpu.memory_space<vmem>>
    %488 = tpu.memref_slice %arg15[%c0_i32_536, %c15_i32_537] : memref<3x16x!tpu.dma_semaphore, #tpu.memory_space<semaphore_mem>> -> memref<1x1x!tpu.dma_semaphore, #tpu.memory_space<semaphore_mem>>
    %489 = tpu.memref_squeeze %488 : memref<1x1x!tpu.dma_semaphore, #tpu.memory_space<semaphore_mem>> -> memref<!tpu.dma_semaphore, #tpu.memory_space<semaphore_mem>>
    tpu.wait_dma2 semaphore(%489 : memref<!tpu.dma_semaphore, #tpu.memory_space<semaphore_mem>>) src(%486 : memref<1x128xf32, #tpu.memory_space<any>>) dst(%487 : memref<1x128xf32, #tpu.memory_space<vmem>>)
    %c1_i32_542 = arith.constant 1 : i32
    %c15_i32_543 = arith.constant 15 : i32
    %c0_i32_544 = arith.constant 0 : i32
    %c0_i32_545 = arith.constant 0 : i32
    %490 = tpu.memref_slice %arg4[%c0_i32_544, %c0_i32_545] : memref<512x128xf32, #tpu.memory_space<any>> -> memref<1x128xf32, #tpu.memory_space<any>>
    %c15_i32_546 = arith.constant 15 : i32
    %c0_i32_547 = arith.constant 0 : i32
    %491 = tpu.memref_slice %arg13[%c15_i32_546, %c0_i32_547] : memref<16x128xf32, #tpu.memory_space<vmem>> -> memref<1x128xf32, #tpu.memory_space<vmem>>
    %492 = tpu.memref_slice %arg15[%c1_i32_542, %c15_i32_543] : memref<3x16x!tpu.dma_semaphore, #tpu.memory_space<semaphore_mem>> -> memref<1x1x!tpu.dma_semaphore, #tpu.memory_space<semaphore_mem>>
    %493 = tpu.memref_squeeze %492 : memref<1x1x!tpu.dma_semaphore, #tpu.memory_space<semaphore_mem>> -> memref<!tpu.dma_semaphore, #tpu.memory_space<semaphore_mem>>
    tpu.wait_dma2 semaphore(%493 : memref<!tpu.dma_semaphore, #tpu.memory_space<semaphore_mem>>) src(%490 : memref<1x128xf32, #tpu.memory_space<any>>) dst(%491 : memref<1x128xf32, #tpu.memory_space<vmem>>)
    %c2_i32_548 = arith.constant 2 : i32
    %c15_i32_549 = arith.constant 15 : i32
    %c0_i32_550 = arith.constant 0 : i32
    %c0_i32_551 = arith.constant 0 : i32
    %494 = tpu.memref_slice %arg5[%c0_i32_550, %c0_i32_551] : memref<32x128xf32, #tpu.memory_space<any>> -> memref<1x128xf32, #tpu.memory_space<any>>
    %c15_i32_552 = arith.constant 15 : i32
    %c0_i32_553 = arith.constant 0 : i32
    %495 = tpu.memref_slice %arg14[%c15_i32_552, %c0_i32_553] : memref<16x128xf32, #tpu.memory_space<vmem>> -> memref<1x128xf32, #tpu.memory_space<vmem>>
    %496 = tpu.memref_slice %arg15[%c2_i32_548, %c15_i32_549] : memref<3x16x!tpu.dma_semaphore, #tpu.memory_space<semaphore_mem>> -> memref<1x1x!tpu.dma_semaphore, #tpu.memory_space<semaphore_mem>>
    %497 = tpu.memref_squeeze %496 : memref<1x1x!tpu.dma_semaphore, #tpu.memory_space<semaphore_mem>> -> memref<!tpu.dma_semaphore, #tpu.memory_space<semaphore_mem>>
    tpu.wait_dma2 semaphore(%497 : memref<!tpu.dma_semaphore, #tpu.memory_space<semaphore_mem>>) src(%494 : memref<1x128xf32, #tpu.memory_space<any>>) dst(%495 : memref<1x128xf32, #tpu.memory_space<vmem>>)
    %c0_554 = arith.constant 0 : index
    %c0_555 = arith.constant 0 : index
    %498 = vector.load %arg12[%c0_554, %c0_555] : memref<16x128xf32, #tpu.memory_space<vmem>>, vector<16x128xf32>
    %499 = arith.addf %305, %498 : vector<16x128xf32>
    %c0_556 = arith.constant 0 : index
    %c0_557 = arith.constant 0 : index
    %500 = vector.load %arg13[%c0_556, %c0_557] : memref<16x128xf32, #tpu.memory_space<vmem>>, vector<16x128xf32>
    %501 = arith.addf %499, %500 : vector<16x128xf32>
    %c0_558 = arith.constant 0 : index
    %c0_559 = arith.constant 0 : index
    %502 = vector.load %arg14[%c0_558, %c0_559] : memref<16x128xf32, #tpu.memory_space<vmem>>, vector<16x128xf32>
    %503 = arith.addf %501, %502 : vector<16x128xf32>
    %cst = arith.constant dense<0.000000e+00> : vector<16xf32>
    %504 = vector.multi_reduction <add>, %503, %cst [1] : vector<16x128xf32> to vector<16xf32>
    %505 = vector.shape_cast %504 : vector<16xf32> to vector<16x1xf32>
    %cst_560 = arith.constant 1.280000e+02 : f32
    %506 = vector.broadcast %cst_560 : f32 to vector<16x1xf32>
    %507 = arith.divf %505, %506 : vector<16x1xf32>
    %508 = vector.broadcast %507 : vector<16x1xf32> to vector<16x128xf32>
    %509 = arith.subf %503, %508 : vector<16x128xf32>
    %510 = arith.mulf %509, %509 : vector<16x128xf32>
    %cst_561 = arith.constant dense<0.000000e+00> : vector<16xf32>
    %511 = vector.multi_reduction <add>, %510, %cst_561 [1] : vector<16x128xf32> to vector<16xf32>
    %512 = vector.shape_cast %511 : vector<16xf32> to vector<16x1xf32>
    %cst_562 = arith.constant 1.280000e+02 : f32
    %513 = vector.broadcast %cst_562 : f32 to vector<16x1xf32>
    %514 = arith.divf %512, %513 : vector<16x1xf32>
    %cst_563 = arith.constant 9.99999996E-13 : f32
    %515 = vector.broadcast %cst_563 : f32 to vector<16x1xf32>
    %516 = arith.addf %514, %515 : vector<16x1xf32>
    %517 = math.rsqrt %516 : vector<16x1xf32>
    %518 = vector.broadcast %517 : vector<16x1xf32> to vector<16x128xf32>
    %519 = arith.mulf %509, %518 : vector<16x128xf32>
    %c0_564 = arith.constant 0 : index
    %c0_565 = arith.constant 0 : index
    %520 = vector.load %arg9[%c0_564, %c0_565] : memref<1x128xf32, #tpu.memory_space<vmem>>, vector<1x128xf32>
    %521 = vector.broadcast %520 : vector<1x128xf32> to vector<16x128xf32>
    %522 = arith.mulf %519, %521 : vector<16x128xf32>
    %c0_566 = arith.constant 0 : index
    %c0_567 = arith.constant 0 : index
    %523 = vector.load %arg10[%c0_566, %c0_567] : memref<1x128xf32, #tpu.memory_space<vmem>>, vector<1x128xf32>
    %524 = vector.broadcast %523 : vector<1x128xf32> to vector<16x128xf32>
    %525 = arith.addf %522, %524 : vector<16x128xf32>
    %526 = vector.shape_cast %525 : vector<16x128xf32> to vector<1x16x128xf32>
    %c0_568 = arith.constant 0 : index
    %c0_569 = arith.constant 0 : index
    %c0_570 = arith.constant 0 : index
    %527 = vector.load %arg11[%c0_568, %c0_569, %c0_570] : memref<1x16x128xf32, #tpu.memory_space<vmem>>, vector<1x16x128xf32>
    tpu.vector_store %arg11[%c0_568, %c0_569, %c0_570], %526 {strides = array<i32>} : memref<1x16x128xf32, #tpu.memory_space<vmem>>, vector<1x16x128xf32>,
    return
  }
  func.func @transform_2(%arg0: i32, %arg1: memref<2x16xi32, #tpu.memory_space<smem>>, %arg2: memref<2x16xi32, #tpu.memory_space<smem>>, %arg3: memref<2x16xi32, #tpu.memory_space<smem>>) -> (i32, i32, i32) {
    %c0_i32 = arith.constant 0 : i32
    %c0_i32_0 = arith.constant 0 : i32
    %c0_i32_1 = arith.constant 0 : i32
    return %arg0, %c0_i32, %c0_i32_0 : i32, i32, i32
  }
  func.func @transform_3(%arg0: i32, %arg1: memref<2x16xi32, #tpu.memory_space<smem>>, %arg2: memref<2x16xi32, #tpu.memory_space<smem>>, %arg3: memref<2x16xi32, #tpu.memory_space<smem>>) -> (i32, i32) {
    %c0_i32 = arith.constant 0 : i32
    %c0_i32_0 = arith.constant 0 : i32
    %c0_i32_1 = arith.constant 0 : i32
    return %c0_i32, %c0_i32_0 : i32, i32
  }
  func.func @transform_4(%arg0: i32, %arg1: memref<2x16xi32, #tpu.memory_space<smem>>, %arg2: memref<2x16xi32, #tpu.memory_space<smem>>, %arg3: memref<2x16xi32, #tpu.memory_space<smem>>) -> (i32, i32) {
    %c0_i32 = arith.constant 0 : i32
    %c0_i32_0 = arith.constant 0 : i32
    %c0_i32_1 = arith.constant 0 : i32
    return %c0_i32, %c0_i32_0 : i32, i32
  }
  func.func @transform_5(%arg0: i32, %arg1: memref<2x16xi32, #tpu.memory_space<smem>>, %arg2: memref<2x16xi32, #tpu.memory_space<smem>>, %arg3: memref<2x16xi32, #tpu.memory_space<smem>>) -> (i32, i32) {
    %c0_i32 = arith.constant 0 : i32
    %c0_i32_0 = arith.constant 0 : i32
    %c0_i32_1 = arith.constant 0 : i32
    return %c0_i32, %c0_i32_0 : i32, i32
  }
  func.func @transform_6(%arg0: i32, %arg1: memref<2x16xi32, #tpu.memory_space<smem>>, %arg2: memref<2x16xi32, #tpu.memory_space<smem>>, %arg3: memref<2x16xi32, #tpu.memory_space<smem>>) -> (i32, i32) {
    %c0_i32 = arith.constant 0 : i32
    %c0_i32_0 = arith.constant 0 : i32
    %c0_i32_1 = arith.constant 0 : i32
    return %c0_i32, %c0_i32_0 : i32, i32
  }
  func.func @transform_7(%arg0: i32, %arg1: memref<2x16xi32, #tpu.memory_space<smem>>, %arg2: memref<2x16xi32, #tpu.memory_space<smem>>, %arg3: memref<2x16xi32, #tpu.memory_space<smem>>) -> (i32, i32, i32) {
    %c0_i32 = arith.constant 0 : i32
    %c0_i32_0 = arith.constant 0 : i32
    %c0_i32_1 = arith.constant 0 : i32
    return %arg0, %c0_i32, %c0_i32_0 : i32, i32, i32
  }
}

</mosaic_0001>

<bundles_post_ra>
// kernel: tpu_custom_call.1
= control target key start
LH: loop header
LB: loop body
LE: loop exit
PB: predicated region body
PF: predicated region fallthrough
CT: control target
= control target key end

     0   :  { %s3227_s13 = smov [#allocation7]   ;;  %s3228_s16 = smov [#allocation8]   ;;  %s4286_s0 = inlined_call_operand.hbm [shape: s32[2,16], index: 0, kind: input, shape index: {}]   ;;  %s4287_s3 = inlined_call_operand.hbm [shape: f32[512,128], index: 3, kind: input, shape index: {}]   ;;  %s4288_s4 = inlined_call_operand.hbm [shape: f32[32,128], index: 4, kind: input, shape index: {}]   ;;  %s4289_s5 = inlined_call_operand.vmem [shape: s32[2,1,16], index: 5, kind: input, shape index: {}]   ;;  %s4290_s6 = inlined_call_operand.hbm [shape: f32[16,128], index: 6, kind: input, shape index: {}]   ;;  %s4291_s7 = inlined_call_operand.vmem [shape: f32[2,128], index: 7, kind: input, shape index: {}]   ;;  %s4292_s8 = inlined_call_operand.vmem [shape: f32[1,128], index: 8, kind: input, shape index: {}]   ;;  %s4293_s9 = inlined_call_operand.vmem [shape: f32[1,128], index: 9, kind: input, shape index: {}]   ;;  %s4294_s10 = inlined_call_operand.hbm [shape: f32[2,16,128], index: 10, kind: output, shape index: {}]   ;;  %s4295_s1 = inlined_call_operand.hbm [shape: s32[2,16], index: 1, kind: input, shape index: {}]   ;;  %s4296_s2 = inlined_call_operand.vmem [shape: s32[2,16], index: 2, kind: input, shape index: {}]  }
   0x1   :  { %4308 = sst [smem:[#allocation171_spill]] %s4289_s5  ;;  %s19_s21 = sshll.u32 %s4296_s2, 4  ;;  %s20_s21 = int_to_ptr.vmem [resolvable:$true] %s19_s21 }
   0x2   :  { %4309 = sst [smem:[#allocation172_spill]] %s4290_s6  ;;  %s1969_s22 = scalar_lea.vmem %s20_s21, 32 }
   0x3   :  { %4310 = sst [smem:[#allocation173_spill]] %s4292_s8  ;;  %p1970_p0 = scmp.ne.s32.totalorder %s20_s21, %s1969_s22 }
   0x4   :  { %4311 = sst [smem:[#allocation174_spill]] %s4293_s9  ;;  %p1974_p1 = scmp.lt.s32.totalorder %s20_s21, %s20_s21 }
   0x5   :  { %4312 = sst [smem:[#allocation175_spill]] %s4294_s10  ;;  %p1975_p2 = scmp.lt.s32.totalorder %s1969_s22, %s1969_s22 }
   0x6   :  { %16 = dma.hbm_to_smem %s4286_s0, 32, %s3227_s13, [#allocation6] }
   0x7   :  { %18 = dma.hbm_to_smem %s4295_s1, 32, %s3228_s16, [#allocation6] }
   0x8   :  { %p1976_p3 = por %p1975_p2, %p1974_p1 }
   0xa   :  { %p1977_p4 = pnand %p1976_p3, %p1970_p0 }
   0xc   :  { %1980 = shalt.err (!%p1977_p4)  }
   0xd   :  { %s3229_s23 = smov [#allocation9]  }
   0xe   :  { %22 = dma.vmem_to_smem %s20_s21, 32, %s3229_s23, [#allocation6] }
   0xf   :  { %3105 = dma.done.wait [#allocation6], 96 }
  0x10   :  { %3106 = vsyncadd [#allocation6], 4294967200 }
  0x11   :  { %24 = sfence }
  0x12   :  { %25 = vsyncpa [#allocation11], 0 }
  0x13   :  { %26 = vsyncpa [#allocation12], 0 }
  0x14   :  { %28 = vsyncpa [#allocation12 + $0x1], 0  ;;  %s3348_s0 = smov 0   ;;  %s3350_s1 = smov 0  }
  0x15   :  { %s3352_s2 = smov 0   ;;  %s3354_s24 = smov 0  }
  0x16 LB: > { %4313 = sst [smem:[#allocation163_spill]] %s3213_s0  ;;  %s3369_s25 = sadd.s32 4294967295, %s3225_s24   ;;  %s3225_s24 = sphi %s3354_s24, %s4336_s24   ;;  %s3221_s2 = sphi %s3352_s2, %s4339_s2   ;;  %s3217_s1 = sphi %s3350_s1, %s4338_s1   ;;  %s3213_s0 = sphi %s3348_s0, %s4337_s0  }
  0x17   : > { %4314 = sst [smem:[#allocation164_spill]] %s3217_s1  ;;  %s1729_s26 = sadd.s32 4294967294, %s3225_s24  }
  0x18   : > { %4315 = sst [smem:[#allocation165_spill]] %s3221_s2  ;;  %s3373_s27 = sadd.s32 1, %s3225_s24  }
  0x19   : > { %4316 = sst [smem:[#allocation166_spill]] %s3225_s24  ;;  %s151_s28 = sadd.s32 1, %s3221_s2 }
  0x1a   : > { %4317 = sst [smem:[#allocation167_spill]] %s3373_s27  ;;  %s148_s29 = ssub.s32 %s3225_s24, %s3373_s27 }
  0x1b   : > { %p161_p5 = scmp.ne.s32.totalorder %s3221_s2, %s3217_s1  ;;  %p149_p6 = scmp.eq.s32.totalorder %s148_s29, 0 }
  0x1c   : > { %p162_p7 = scmp.eq.s32.totalorder %s3369_s25, 1  ;;  %p167_p8 = scmp.ne.s32.totalorder %s3217_s1, %s3213_s0 }
  0x1d   : > { %p168_p9 = scmp.eq.s32.totalorder %s1729_s26, 1  ;;  %p1730_p12 = scmp.ge.s32.totalorder %s3225_s24, 1 }
  0x1e   : > { %s3384_s30 = scalar_select %p149_p6, %s3221_s2, %s151_s28  }
  0x1f   : > { %p3386_p10 = por %p162_p7, %p161_p5  ;;  %p3390_p11 = por %p168_p9, %p167_p8 }
  0x20   : > { %4318 = sst [smem:[#allocation168_spill]] %s3384_s30  ;;  %p175_p13 = scmp.lt.s32.totalorder %s3225_s24, 3 }
  0x21   : > { %s4319_s11 = scalar_select %p3386_p10, 1, 0 }
  0x22   : > { %s4321_s12 = scalar_select %p3390_p11, 1, 0 }
  0x23   : > { %4320 = sst [smem:[#allocation169_spill]] %s4319_s11  ;;  %p1858_p0 = scmp.eq.s32.totalorder %s3369_s25, 0 }
  0x24   : > { %4322 = sst [smem:[#allocation170_spill]] %s4321_s12  ;;  %p3397_p1 = pnand %p1730_p12, %p175_p13 }
  0x25   : > { %s3230_s14 = smov [#allocation10]  }
  0x26   : > { %s187_s15 = sshll.u32 %s3230_s14, 4  ;;  %p1850_p2 = pneg %p3397_p1  ;;  %s188_s15 = int_to_ptr.vmem [resolvable:$true] %s187_s15 }
  0x27   : > { %s1992_s16 = scalar_lea.vmem %s188_s15, 256  ;;  %p2000_p8 = scmp.lt.s32.totalorder %s188_s15, %s188_s15 }
  0x28   : > { %p1851_p3 = pnand %p1858_p0, %p1850_p2  ;;  %p1993_p5 = scmp.ne.s32.totalorder %s188_s15, %s1992_s16 }
  0x29   : > { %p2001_p9 = scmp.lt.s32.totalorder %s1992_s16, %s1992_s16 }
  0x2a   : > { %p1983_p4 = pneg %p1851_p3 }
  0x2b   : > { %p2002_p11 = por %p2001_p9, %p2000_p8 }
  0x2c   : > { %p1995_p6 = pnand %p1993_p5, %p1983_p4 }
  0x2e   : > { %p1996_p7 = pneg %p1995_p6 }
  0x30   : > { %p2003_p12 = pnand %p2002_p11, %p1996_p7 }
  0x32   : > { %2006 = shalt.err (!%p2003_p12)
}
  0x33   : > { %s3231_s17 = smov 128   ;;  %s3232_s18 = smov 8  }
  0x34   : > { %s4324_s6 = sld [smem:[#allocation172_spill]] }
  0x36   : > { %218 = sbr.rel (%p3397_p1) target bundleno = 1456 (0x5b0), region = 40 }
  0x3a   : > { %1853 = dma.hbm_to_vmem [thread:$0]  (!%p1851_p3), %s4324_s6, 256, %s188_s15, [#allocation11], %s3231_s17, %s3231_s17, %s3232_s18  }
  0x3b   : > { %3108 = dma.done.wait (%p1858_p0), [#allocation11], 256  }
  0x3c   : > { %3110 = vsyncadd (%p1858_p0), [#allocation11], 4294967040  ;;  %p244_p11 = scmp.lt.s32.totalorder %s3369_s25, 1  ;;  %s4297_s21 = sand.u32 1, %s3217_s1  }
  0x3d   : > { %s3418_s22 = sshll.u32 %s4297_s21, 4  ;;  %s3421_s23 = sshll.u32 %s3369_s25, 7 }
  0x3e   : > { %s245_s26 = scalar_select %p244_p11, %s3369_s25, 1 }
  0x3f   : > { %s248_s28 = sld [smem:[#allocation7 + %s3421_s23]]  ;;  %s3233_s15 = smov [#allocation2]  }
  0x40   : > { %s4325_s5 = sld [smem:[#allocation171_spill]]  ;;  %s260_s16 = sshll.u32 %s3233_s15, 4  ;;  %s3431_s16 = int_to_ptr.vmem [resolvable:$true] %s260_s16 }
  0x41   : > { %s3429_s17 = sld [smem:[#allocation8 + %s3421_s23]]  ;;  %s3234_s18 = smov [#allocation3]  }
  0x42   : > { %s274_s19 = sshll.u32 %s3234_s18, 4  ;;  %s3434_s20 = sld [smem:[#allocation9 + %s3421_s23]]  ;;  %s3436_s19 = int_to_ptr.vmem [resolvable:$true] %s274_s19 }
  0x43   : > { %s3235_s6 = smov [#allocation4]   ;;  %s3446_s18 = scalar_lea.hbm %s4287_s3, 8192 }
  0x44   : > { %s288_s30 = sshll.u32 %s3235_s6, 4  ;;  %s3441_s30 = int_to_ptr.vmem [resolvable:$true] %s288_s30 }
  0x45   : > { %s1737_s21 = sshll.u32 %s248_s28, 4 }
  0x46   : > { %s246_s14 = scalar_lea.vmem %s4325_s5, %s245_s26  ;;  %s252_s26 = scalar_lea.hbm %s4287_s3, %s1737_s21 }
  0x47   : > { %v1785_v0 = vld [vmem:[%s246_s14] ss:$0 sm:$0xff]  ;;  %s2007_s13 = scalar_lea.hbm %s252_s26, 16  ;;  %p2010_p0 = scmp.lt.s32.totalorder %s252_s26, %s4287_s3 }
  0x48   : > { %1035 = vbcast.lane.b32.xlu0 %v1785_v0, 256  ;;  %p2008_p13 = scmp.ne.s32.totalorder %s252_s26, %s2007_s13  ;;  %p2011_p1 = scmp.lt.s32.totalorder %s3446_s18, %s2007_s13 }
  0x4a   : > { %p2012_p2 = por %p2011_p1, %p2010_p0 }
  0x4c   : > { %p2013_p3 = pnand %p2012_p2, %p2008_p13 }
  0x4e   : > { %2016 = shalt.err (!%p2013_p3)  }
  0x4f   : > { %s2017_s6 = scalar_lea.vmem %s3431_s16, 16  ;;  %s3455_s2 = scalar_lea.vmem %s3431_s16, 256 }
  0x50   : > { %p2018_p4 = scmp.ne.s32.totalorder %s3431_s16, %s2017_s6  ;;  %p2022_p5 = scmp.lt.s32.totalorder %s3431_s16, %s3431_s16 }
  0x51   : > { %p2023_p6 = scmp.lt.s32.totalorder %s3455_s2, %s2017_s6 }
  0x53   : > { %p2024_p7 = por %p2023_p6, %p2022_p5 }
  0x55   : > { %p2025_p8 = pnand %p2024_p7, %p2018_p4 }
  0x57   : > { %2028 = shalt.err (!%p2025_p8)  }
  0x58   : > { %263 = dma.hbm_to_vmem [thread:$0]  %s252_s26, 16, %s3431_s16, [#allocation5]  ;;  %1039 = vbcast.lane.b32.xlu0 %v1785_v0, 264 }
  0x59   : > { %s1738_s5 = sshll.u32 %s3429_s17, 4  ;;  %s3463_s27 = sadd.s32 1, %s3421_s23 }
  0x5a   : > { %s265_s29 = scalar_lea.hbm %s4287_s3, %s1738_s5  ;;  %s1739_s13 = sshll.u32 %s3434_s20, 4 }
  0x5b   : > { %s2029_s15 = scalar_lea.hbm %s265_s29, 16  ;;  %p2032_p12 = scmp.lt.s32.totalorder %s265_s29, %s4287_s3 }
  0x5c   : > { %p2030_p9 = scmp.ne.s32.totalorder %s265_s29, %s2029_s15  ;;  %p2033_p11 = scmp.lt.s32.totalorder %s3446_s18, %s2029_s15 }
  0x5e   : > { %p2034_p13 = por %p2033_p11, %p2032_p12 }
  0x60   : > { %p2035_p0 = pnand %p2034_p13, %p2030_p9 }
  0x62   : > { %2038 = shalt.err (!%p2035_p0)  }
  0x63   : > { %s2039_s17 = scalar_lea.vmem %s3436_s19, 16  ;;  %s3476_s26 = scalar_lea.vmem %s3436_s19, 256 }
  0x64   : > { %p2040_p1 = scmp.ne.s32.totalorder %s3436_s19, %s2039_s17  ;;  %p2044_p2 = scmp.lt.s32.totalorder %s3436_s19, %s3436_s19 }
  0x65   : > { %p2045_p3 = scmp.lt.s32.totalorder %s3476_s26, %s2039_s17 }
  0x67   : > { %p2046_p4 = por %p2045_p3, %p2044_p2 }
  0x69   : > { %p2047_p5 = pnand %p2046_p4, %p2040_p1 }
  0x6b   : > { %2050 = shalt.err (!%p2047_p5)  }
  0x6c   : > { %277 = dma.hbm_to_vmem [thread:$0]  %s265_s29, 16, %s3436_s19, [#allocation5 + $0x10] }
  0x6d   : > { %s279_s21 = scalar_lea.hbm %s4288_s4, %s1739_s13  ;;  %s293_s28 = sld [smem:[#allocation7 + %s3463_s27]] }
  0x6e   : > { %s2051_s15 = scalar_lea.hbm %s279_s21, 16  ;;  %s3489_s12 = scalar_lea.hbm %s4288_s4, 512 }
  0x6f   : > { %p2052_p6 = scmp.ne.s32.totalorder %s279_s21, %s2051_s15  ;;  %p2054_p7 = scmp.lt.s32.totalorder %s279_s21, %s4288_s4 }
  0x70   : > { %p2055_p8 = scmp.lt.s32.totalorder %s3489_s12, %s2051_s15 }
  0x72   : > { %p2056_p9 = por %p2055_p8, %p2054_p7 }
  0x74   : > { %p2057_p12 = pnand %p2056_p9, %p2052_p6 }
  0x76   : > { %2060 = shalt.err (!%p2057_p12)  }
  0x77   : > { %s2061_s29 = scalar_lea.vmem %s3441_s30, 16  ;;  %s3498_s13 = scalar_lea.vmem %s3441_s30, 256 }
  0x78   : > { %p2062_p11 = scmp.ne.s32.totalorder %s3441_s30, %s2061_s29  ;;  %p2066_p13 = scmp.lt.s32.totalorder %s3441_s30, %s3441_s30 }
  0x79   : > { %p2067_p0 = scmp.lt.s32.totalorder %s3498_s13, %s2061_s29 }
  0x7b   : > { %p2068_p1 = por %p2067_p0, %p2066_p13 }
  0x7d   : > { %p2069_p2 = pnand %p2068_p1, %p2062_p11 }
  0x7f   : > { %2072 = shalt.err (!%p2069_p2)  }
  0x80   : > { %291 = dma.hbm_to_vmem [thread:$0]  %s279_s21, 16, %s3441_s30, [#allocation5 + $0x20] }
  0x81   : > { %s3505_s0 = sld [smem:[#allocation8 + %s3463_s27]]  ;;  %s3236_s20 = smov [#allocation2 + $0x1]  }
  0x82   : > { %s307_s5 = sshll.u32 %s3236_s20, 4  ;;  %s3237_s15 = smov [#allocation3 + $0x1]   ;;  %s308_s5 = int_to_ptr.vmem [resolvable:$true] %s307_s5 }
  0x83   : > { %s322_s14 = sshll.u32 %s3237_s15, 4  ;;  %s3510_s6 = sld [smem:[#allocation9 + %s3463_s27]]  ;;  %s3507_s14 = int_to_ptr.vmem [resolvable:$true] %s322_s14 }
  0x84   : > { %s1740_s17 = sshll.u32 %s293_s28, 4  ;;  %s3238_s11 = smov [#allocation4 + $0x1]  }
  0x85   : > { %s297_s10 = scalar_lea.hbm %s4287_s3, %s1740_s17  ;;  %s337_s9 = sshll.u32 %s3238_s11, 4  ;;  %s3522_s9 = int_to_ptr.vmem [resolvable:$true] %s337_s9 }
  0x86   : > { %s2073_s21 = scalar_lea.hbm %s297_s10, 16  ;;  %p2076_p4 = scmp.lt.s32.totalorder %s297_s10, %s4287_s3 }
  0x87   : > { %p2074_p3 = scmp.ne.s32.totalorder %s297_s10, %s2073_s21  ;;  %p2077_p5 = scmp.lt.s32.totalorder %s3446_s18, %s2073_s21 }
  0x89   : > { %p2078_p6 = por %p2077_p5, %p2076_p4 }
  0x8b   : > { %p2079_p7 = pnand %p2078_p6, %p2074_p3 }
  0x8d   : > { %2082 = shalt.err (!%p2079_p7)  }
  0x8e   : > { %s2083_s20 = scalar_lea.vmem %s308_s5, 16  ;;  %p2088_p9 = scmp.lt.s32.totalorder %s308_s5, %s3431_s16 }
  0x8f   : > { %p2084_p8 = scmp.ne.s32.totalorder %s308_s5, %s2083_s20  ;;  %p2089_p12 = scmp.lt.s32.totalorder %s3455_s2, %s2083_s20 }
  0x91   : > { %p2090_p11 = por %p2089_p12, %p2088_p9 }
  0x93   : > { %p2091_p13 = pnand %p2090_p11, %p2084_p8 }
  0x95   : > { %2094 = shalt.err (!%p2091_p13)  }
  0x96   : > { %310 = dma.hbm_to_vmem [thread:$0]  %s297_s10, 16, %s308_s5, [#allocation5 + $0x1] }
  0x97   : > { %s1741_s24 = sshll.u32 %s3505_s0, 4  ;;  %s3528_s27 = sadd.s32 2, %s3421_s23 }
  0x98   : > { %s312_s11 = scalar_lea.hbm %s4287_s3, %s1741_s24 }
  0x99   : > { %s2095_s28 = scalar_lea.hbm %s312_s11, 16  ;;  %p2098_p1 = scmp.lt.s32.totalorder %s312_s11, %s4287_s3 }
  0x9a   : > { %p2096_p0 = scmp.ne.s32.totalorder %s312_s11, %s2095_s28  ;;  %p2099_p2 = scmp.lt.s32.totalorder %s3446_s18, %s2095_s28 }
  0x9c   : > { %p2100_p3 = por %p2099_p2, %p2098_p1 }
  0x9e   : > { %p2101_p4 = pnand %p2100_p3, %p2096_p0 }
  0xa0   : > { %2104 = shalt.err (!%p2101_p4)  }
  0xa1   : > { %s2105_s10 = scalar_lea.vmem %s3507_s14, 16  ;;  %p2110_p6 = scmp.lt.s32.totalorder %s3507_s14, %s3436_s19 }
  0xa2   : > { %p2106_p5 = scmp.ne.s32.totalorder %s3507_s14, %s2105_s10  ;;  %p2111_p7 = scmp.lt.s32.totalorder %s3476_s26, %s2105_s10 }
  0xa4   : > { %p2112_p8 = por %p2111_p7, %p2110_p6 }
  0xa6   : > { %p2113_p9 = pnand %p2112_p8, %p2106_p5 }
  0xa8   : > { %2116 = shalt.err (!%p2113_p9)  }
  0xa9   : > { %325 = dma.hbm_to_vmem [thread:$0]  %s312_s11, 16, %s3507_s14, [#allocation5 + $0x11] }
  0xaa   : > { %s1742_s0 = sshll.u32 %s3510_s6, 4  ;;  %s342_s5 = sld [smem:[#allocation7 + %s3528_s27]] }
  0xab   : > { %s327_s20 = scalar_lea.hbm %s4288_s4, %s1742_s0 }
  0xac   : > { %s2117_s24 = scalar_lea.hbm %s327_s20, 16  ;;  %p2120_p11 = scmp.lt.s32.totalorder %s327_s20, %s4288_s4 }
  0xad   : > { %p2118_p12 = scmp.ne.s32.totalorder %s327_s20, %s2117_s24  ;;  %p2121_p13 = scmp.lt.s32.totalorder %s3489_s12, %s2117_s24 }
  0xaf   : > { %p2122_p0 = por %p2121_p13, %p2120_p11 }
  0xb1   : > { %p2123_p1 = pnand %p2122_p0, %p2118_p12 }
  0xb3   : > { %2126 = shalt.err (!%p2123_p1)  }
  0xb4   : > { %s2127_s14 = scalar_lea.vmem %s3522_s9, 16  ;;  %p2132_p3 = scmp.lt.s32.totalorder %s3522_s9, %s3441_s30 }
  0xb5   : > { %p2128_p2 = scmp.ne.s32.totalorder %s3522_s9, %s2127_s14  ;;  %p2133_p4 = scmp.lt.s32.totalorder %s3498_s13, %s2127_s14 }
  0xb7   : > { %p2134_p5 = por %p2133_p4, %p2132_p3 }
  0xb9   : > { %p2135_p6 = pnand %p2134_p5, %p2128_p2 }
  0xbb   : > { %2138 = shalt.err (!%p2135_p6)  }
  0xbc   : > { %340 = dma.hbm_to_vmem [thread:$0]  %s327_s20, 16, %s3522_s9, [#allocation5 + $0x21] }
  0xbd   : > { %s3239_s6 = smov [#allocation2 + $0x2]   ;;  %s343_s28 = sld [smem:[#allocation8 + %s3528_s27]] }
  0xbe   : > { %s356_s11 = sshll.u32 %s3239_s6, 4  ;;  %s3240_s15 = smov [#allocation3 + $0x2]   ;;  %s357_s11 = int_to_ptr.vmem [resolvable:$true] %s356_s11 }
  0xbf   : > { %s371_s17 = sshll.u32 %s3240_s15, 4  ;;  %s3557_s10 = sld [smem:[#allocation9 + %s3528_s27]]  ;;  %s3559_s17 = int_to_ptr.vmem [resolvable:$true] %s371_s17 }
  0xc0   : > { %s1743_s0 = sshll.u32 %s342_s5, 4 }
  0xc1   : > { %s346_s24 = scalar_lea.hbm %s4287_s3, %s1743_s0 }
  0xc2   : > { %s2139_s8 = scalar_lea.hbm %s346_s24, 16  ;;  %p2142_p8 = scmp.lt.s32.totalorder %s346_s24, %s4287_s3 }
  0xc3   : > { %p2140_p7 = scmp.ne.s32.totalorder %s346_s24, %s2139_s8  ;;  %p2143_p9 = scmp.lt.s32.totalorder %s3446_s18, %s2139_s8 }
  0xc5   : > { %p2144_p12 = por %p2143_p9, %p2142_p8 }
  0xc7   : > { %p2145_p11 = pnand %p2144_p12, %p2140_p7 }
  0xc9   : > { %2148 = shalt.err (!%p2145_p11)  }
  0xca   : > { %s2149_s9 = scalar_lea.vmem %s357_s11, 16  ;;  %p2154_p0 = scmp.lt.s32.totalorder %s357_s11, %s3431_s16 }
  0xcb   : > { %p2150_p13 = scmp.ne.s32.totalorder %s357_s11, %s2149_s9  ;;  %p2155_p1 = scmp.lt.s32.totalorder %s3455_s2, %s2149_s9 }
  0xcd   : > { %p2156_p2 = por %p2155_p1, %p2154_p0 }
  0xcf   : > { %p2157_p3 = pnand %p2156_p2, %p2150_p13 }
  0xd1   : > { %2160 = shalt.err (!%p2157_p3)  }
  0xd2   : > { %359 = dma.hbm_to_vmem [thread:$0]  %s346_s24, 16, %s357_s11, [#allocation5 + $0x2] }
  0xd3   : > { %s1744_s27 = sshll.u32 %s343_s28, 4  ;;  %s3241_s5 = smov [#allocation4 + $0x2]  }
  0xd4   : > { %s386_s20 = sshll.u32 %s3241_s5, 4  ;;  %s361_s0 = scalar_lea.hbm %s4287_s3, %s1744_s27  ;;  %s3573_s20 = int_to_ptr.vmem [resolvable:$true] %s386_s20 }
  0xd5   : > { %s2161_s29 = scalar_lea.hbm %s361_s0, 16  ;;  %p2164_p5 = scmp.lt.s32.totalorder %s361_s0, %s4287_s3 }
  0xd6   : > { %p2162_p4 = scmp.ne.s32.totalorder %s361_s0, %s2161_s29  ;;  %p2165_p6 = scmp.lt.s32.totalorder %s3446_s18, %s2161_s29 }
  0xd8   : > { %p2166_p7 = por %p2165_p6, %p2164_p5 }
  0xda   : > { %p2167_p8 = pnand %p2166_p7, %p2162_p4 }
  0xdc   : > { %2170 = shalt.err (!%p2167_p8)  }
  0xdd   : > { %s2171_s11 = scalar_lea.vmem %s3559_s17, 16  ;;  %p2176_p12 = scmp.lt.s32.totalorder %s3559_s17, %s3436_s19 }
  0xde   : > { %p2172_p9 = scmp.ne.s32.totalorder %s3559_s17, %s2171_s11  ;;  %p2177_p11 = scmp.lt.s32.totalorder %s3476_s26, %s2171_s11 }
  0xe0   : > { %p2178_p13 = por %p2177_p11, %p2176_p12 }
  0xe2   : > { %p2179_p0 = pnand %p2178_p13, %p2172_p9 }
  0xe4   : > { %2182 = shalt.err (!%p2179_p0)  }
  0xe5   : > { %374 = dma.hbm_to_vmem [thread:$0]  %s361_s0, 16, %s3559_s17, [#allocation5 + $0x12] }
  0xe6   : > { %s1745_s28 = sshll.u32 %s3557_s10, 4  ;;  %s390_s24 = sadd.s32 3, %s3421_s23 }
  0xe7   : > { %s376_s9 = scalar_lea.hbm %s4288_s4, %s1745_s28  ;;  %s391_s27 = sld [smem:[#allocation7 + %s390_s24]] }
  0xe8   : > { %s2183_s5 = scalar_lea.hbm %s376_s9, 16  ;;  %p2186_p2 = scmp.lt.s32.totalorder %s376_s9, %s4288_s4 }
  0xe9   : > { %p2184_p1 = scmp.ne.s32.totalorder %s376_s9, %s2183_s5  ;;  %p2187_p3 = scmp.lt.s32.totalorder %s3489_s12, %s2183_s5 }
  0xeb   : > { %p2188_p4 = por %p2187_p3, %p2186_p2 }
  0xed   : > { %p2189_p5 = pnand %p2188_p4, %p2184_p1 }
  0xef   : > { %2192 = shalt.err (!%p2189_p5)  }
  0xf0   : > { %s2193_s17 = scalar_lea.vmem %s3573_s20, 16  ;;  %p2198_p7 = scmp.lt.s32.totalorder %s3573_s20, %s3441_s30 }
  0xf1   : > { %p2194_p6 = scmp.ne.s32.totalorder %s3573_s20, %s2193_s17  ;;  %p2199_p8 = scmp.lt.s32.totalorder %s3498_s13, %s2193_s17 }
  0xf3   : > { %p2200_p9 = por %p2199_p8, %p2198_p7 }
  0xf5   : > { %p2201_p12 = pnand %p2200_p9, %p2194_p6 }
  0xf7   : > { %2204 = shalt.err (!%p2201_p12)  }
  0xf8   : > { %389 = dma.hbm_to_vmem [thread:$0]  %s376_s9, 16, %s3573_s20, [#allocation5 + $0x22] }
  0xf9   : > { %s3600_s10 = sld [smem:[#allocation8 + %s390_s24]]  ;;  %s3242_s0 = smov [#allocation2 + $0x3]  }
  0xfa   : > { %s405_s29 = sshll.u32 %s3242_s0, 4  ;;  %s3243_s21 = smov [#allocation3 + $0x3]   ;;  %s406_s29 = int_to_ptr.vmem [resolvable:$true] %s405_s29 }
  0xfb   : > { %s420_s8 = sshll.u32 %s3243_s21, 4  ;;  %s3604_s11 = sld [smem:[#allocation9 + %s390_s24]]  ;;  %s3602_s8 = int_to_ptr.vmem [resolvable:$true] %s420_s8 }
  0xfc   : > { %s1746_s28 = sshll.u32 %s391_s27, 4  ;;  %s3244_s6 = smov [#allocation4 + $0x3]  }
  0xfd   : > { %s395_s5 = scalar_lea.hbm %s4287_s3, %s1746_s28  ;;  %s435_s15 = sshll.u32 %s3244_s6, 4  ;;  %s3616_s15 = int_to_ptr.vmem [resolvable:$true] %s435_s15 }
  0xfe   : > { %s2205_s20 = scalar_lea.hbm %s395_s5, 16  ;;  %p2208_p13 = scmp.lt.s32.totalorder %s395_s5, %s4287_s3 }
  0xff   : > { %p2206_p11 = scmp.ne.s32.totalorder %s395_s5, %s2205_s20  ;;  %p2209_p0 = scmp.lt.s32.totalorder %s3446_s18, %s2205_s20 }
 0x101   : > { %p2210_p1 = por %p2209_p0, %p2208_p13 }
 0x103   : > { %p2211_p2 = pnand %p2210_p1, %p2206_p11 }
 0x105   : > { %2214 = shalt.err (!%p2211_p2)  }
 0x106   : > { %s2215_s0 = scalar_lea.vmem %s406_s29, 16  ;;  %p2220_p4 = scmp.lt.s32.totalorder %s406_s29, %s3431_s16 }
 0x107   : > { %p2216_p3 = scmp.ne.s32.totalorder %s406_s29, %s2215_s0  ;;  %p2221_p5 = scmp.lt.s32.totalorder %s3455_s2, %s2215_s0 }
 0x109   : > { %p2222_p6 = por %p2221_p5, %p2220_p4 }
 0x10b   : > { %p2223_p7 = pnand %p2222_p6, %p2216_p3 }
 0x10d   : > { %2226 = shalt.err (!%p2223_p7)  }
 0x10e   : > { %408 = dma.hbm_to_vmem [thread:$0]  %s395_s5, 16, %s406_s29, [#allocation5 + $0x3] }
 0x10f   : > { %s1747_s24 = sshll.u32 %s3600_s10, 4  ;;  %s3622_s1 = sadd.s32 4, %s3421_s23 }
 0x110   : > { %s410_s28 = scalar_lea.hbm %s4287_s3, %s1747_s24 }
 0x111   : > { %s2227_s14 = scalar_lea.hbm %s410_s28, 16  ;;  %p2230_p9 = scmp.lt.s32.totalorder %s410_s28, %s4287_s3 }
 0x112   : > { %p2228_p8 = scmp.ne.s32.totalorder %s410_s28, %s2227_s14  ;;  %p2231_p12 = scmp.lt.s32.totalorder %s3446_s18, %s2227_s14 }
 0x114   : > { %p2232_p11 = por %p2231_p12, %p2230_p9 }
 0x116   : > { %p2233_p13 = pnand %p2232_p11, %p2228_p8 }
 0x118   : > { %2236 = shalt.err (!%p2233_p13)  }
 0x119   : > { %s2237_s10 = scalar_lea.vmem %s3602_s8, 16  ;;  %p2242_p1 = scmp.lt.s32.totalorder %s3602_s8, %s3436_s19 }
 0x11a   : > { %p2238_p0 = scmp.ne.s32.totalorder %s3602_s8, %s2237_s10  ;;  %p2243_p2 = scmp.lt.s32.totalorder %s3476_s26, %s2237_s10 }
 0x11c   : > { %p2244_p3 = por %p2243_p2, %p2242_p1 }
 0x11e   : > { %p2245_p4 = pnand %p2244_p3, %p2238_p0 }
 0x120   : > { %2248 = shalt.err (!%p2245_p4)  }
 0x121   : > { %423 = dma.hbm_to_vmem [thread:$0]  %s410_s28, 16, %s3602_s8, [#allocation5 + $0x13] }
 0x122   : > { %s1748_s29 = sshll.u32 %s3604_s11, 4  ;;  %s440_s5 = sld [smem:[#allocation7 + %s3622_s1]] }
 0x123   : > { %s425_s0 = scalar_lea.hbm %s4288_s4, %s1748_s29 }
 0x124   : > { %s2249_s24 = scalar_lea.hbm %s425_s0, 16  ;;  %p2252_p6 = scmp.lt.s32.totalorder %s425_s0, %s4288_s4 }
 0x125   : > { %p2250_p5 = scmp.ne.s32.totalorder %s425_s0, %s2249_s24  ;;  %p2253_p7 = scmp.lt.s32.totalorder %s3489_s12, %s2249_s24 }
 0x127   : > { %p2254_p8 = por %p2253_p7, %p2252_p6 }
 0x129   : > { %p2255_p9 = pnand %p2254_p8, %p2250_p5 }
 0x12b   : > { %2258 = shalt.err (!%p2255_p9)  }
 0x12c   : > { %s2259_s8 = scalar_lea.vmem %s3616_s15, 16  ;;  %p2264_p11 = scmp.lt.s32.totalorder %s3616_s15, %s3441_s30 }
 0x12d   : > { %p2260_p12 = scmp.ne.s32.totalorder %s3616_s15, %s2259_s8  ;;  %p2265_p13 = scmp.lt.s32.totalorder %s3498_s13, %s2259_s8 }
 0x12f   : > { %p2266_p0 = por %p2265_p13, %p2264_p11 }
 0x131   : > { %p2267_p1 = pnand %p2266_p0, %p2260_p12 }
 0x133   : > { %2270 = shalt.err (!%p2267_p1)  }
 0x134   : > { %438 = dma.hbm_to_vmem [thread:$0]  %s425_s0, 16, %s3616_s15, [#allocation5 + $0x23] }
 0x135   : > { %s3245_s11 = smov [#allocation2 + $0x4]   ;;  %s441_s14 = sld [smem:[#allocation8 + %s3622_s1]] }
 0x136   : > { %s454_s28 = sshll.u32 %s3245_s11, 4  ;;  %s3246_s6 = smov [#allocation3 + $0x4]   ;;  %s455_s28 = int_to_ptr.vmem [resolvable:$true] %s454_s28 }
 0x137   : > { %s469_s20 = sshll.u32 %s3246_s6, 4  ;;  %s3651_s10 = sld [smem:[#allocation9 + %s3622_s1]]  ;;  %s3653_s20 = int_to_ptr.vmem [resolvable:$true] %s469_s20 }
 0x138   : > { %s1749_s29 = sshll.u32 %s440_s5, 4 }
 0x139   : > { %s444_s24 = scalar_lea.hbm %s4287_s3, %s1749_s29 }
 0x13a   : > { %s2271_s27 = scalar_lea.hbm %s444_s24, 16  ;;  %p2274_p3 = scmp.lt.s32.totalorder %s444_s24, %s4287_s3 }
 0x13b   : > { %p2272_p2 = scmp.ne.s32.totalorder %s444_s24, %s2271_s27  ;;  %p2275_p4 = scmp.lt.s32.totalorder %s3446_s18, %s2271_s27 }
 0x13d   : > { %p2276_p5 = por %p2275_p4, %p2274_p3 }
 0x13f   : > { %p2277_p6 = pnand %p2276_p5, %p2272_p2 }
 0x141   : > { %2280 = shalt.err (!%p2277_p6)  }
 0x142   : > { %s2281_s15 = scalar_lea.vmem %s455_s28, 16  ;;  %p2286_p8 = scmp.lt.s32.totalorder %s455_s28, %s3431_s16 }
 0x143   : > { %p2282_p7 = scmp.ne.s32.totalorder %s455_s28, %s2281_s15  ;;  %p2287_p9 = scmp.lt.s32.totalorder %s3455_s2, %s2281_s15 }
 0x145   : > { %p2288_p12 = por %p2287_p9, %p2286_p8 }
 0x147   : > { %p2289_p11 = pnand %p2288_p12, %p2282_p7 }
 0x149   : > { %2292 = shalt.err (!%p2289_p11)  }
 0x14a   : > { %457 = dma.hbm_to_vmem [thread:$0]  %s444_s24, 16, %s455_s28, [#allocation5 + $0x4] }
 0x14b   : > { %s1750_s1 = sshll.u32 %s441_s14, 4  ;;  %s3247_s5 = smov [#allocation4 + $0x4]  }
 0x14c   : > { %s484_s0 = sshll.u32 %s3247_s5, 4  ;;  %s459_s29 = scalar_lea.hbm %s4287_s3, %s1750_s1  ;;  %s3667_s0 = int_to_ptr.vmem [resolvable:$true] %s484_s0 }
 0x14d   : > { %s2293_s9 = scalar_lea.hbm %s459_s29, 16  ;;  %p2296_p0 = scmp.lt.s32.totalorder %s459_s29, %s4287_s3 }
 0x14e   : > { %p2294_p13 = scmp.ne.s32.totalorder %s459_s29, %s2293_s9  ;;  %p2297_p1 = scmp.lt.s32.totalorder %s3446_s18, %s2293_s9 }
 0x150   : > { %p2298_p2 = por %p2297_p1, %p2296_p0 }
 0x152   : > { %p2299_p3 = pnand %p2298_p2, %p2294_p13 }
 0x154   : > { %2302 = shalt.err (!%p2299_p3)  }
 0x155   : > { %s2303_s28 = scalar_lea.vmem %s3653_s20, 16  ;;  %p2308_p5 = scmp.lt.s32.totalorder %s3653_s20, %s3436_s19 }
 0x156   : > { %p2304_p4 = scmp.ne.s32.totalorder %s3653_s20, %s2303_s28  ;;  %p2309_p6 = scmp.lt.s32.totalorder %s3476_s26, %s2303_s28 }
 0x158   : > { %p2310_p7 = por %p2309_p6, %p2308_p5 }
 0x15a   : > { %p2311_p8 = pnand %p2310_p7, %p2304_p4 }
 0x15c   : > { %2314 = shalt.err (!%p2311_p8)  }
 0x15d   : > { %472 = dma.hbm_to_vmem [thread:$0]  %s459_s29, 16, %s3653_s20, [#allocation5 + $0x14] }
 0x15e   : > { %s1751_s14 = sshll.u32 %s3651_s10, 4  ;;  %s488_s24 = sadd.s32 5, %s3421_s23 }
 0x15f   : > { %s474_s15 = scalar_lea.hbm %s4288_s4, %s1751_s14  ;;  %s489_s1 = sld [smem:[#allocation7 + %s488_s24]] }
 0x160   : > { %s2315_s5 = scalar_lea.hbm %s474_s15, 16  ;;  %p2318_p12 = scmp.lt.s32.totalorder %s474_s15, %s4288_s4 }
 0x161   : > { %p2316_p9 = scmp.ne.s32.totalorder %s474_s15, %s2315_s5  ;;  %p2319_p11 = scmp.lt.s32.totalorder %s3489_s12, %s2315_s5 }
 0x163   : > { %p2320_p13 = por %p2319_p11, %p2318_p12 }
 0x165   : > { %p2321_p0 = pnand %p2320_p13, %p2316_p9 }
 0x167   : > { %2324 = shalt.err (!%p2321_p0)  }
 0x168   : > { %s2325_s20 = scalar_lea.vmem %s3667_s0, 16  ;;  %p2330_p2 = scmp.lt.s32.totalorder %s3667_s0, %s3441_s30 }
 0x169   : > { %p2326_p1 = scmp.ne.s32.totalorder %s3667_s0, %s2325_s20  ;;  %p2331_p3 = scmp.lt.s32.totalorder %s3498_s13, %s2325_s20 }
 0x16b   : > { %p2332_p4 = por %p2331_p3, %p2330_p2 }
 0x16d   : > { %p2333_p5 = pnand %p2332_p4, %p2326_p1 }
 0x16f   : > { %2336 = shalt.err (!%p2333_p5)  }
 0x170   : > { %487 = dma.hbm_to_vmem [thread:$0]  %s474_s15, 16, %s3667_s0, [#allocation5 + $0x24] }
 0x171   : > { %s3694_s10 = sld [smem:[#allocation8 + %s488_s24]]  ;;  %s3248_s29 = smov [#allocation2 + $0x5]  }
 0x172   : > { %s503_s9 = sshll.u32 %s3248_s29, 4  ;;  %s3249_s17 = smov [#allocation3 + $0x5]   ;;  %s504_s9 = int_to_ptr.vmem [resolvable:$true] %s503_s9 }
 0x173   : > { %s518_s27 = sshll.u32 %s3249_s17, 4  ;;  %s3698_s28 = sld [smem:[#allocation9 + %s488_s24]]  ;;  %s3696_s27 = int_to_ptr.vmem [resolvable:$true] %s518_s27 }
 0x174   : > { %s1752_s14 = sshll.u32 %s489_s1, 4  ;;  %s3250_s11 = smov [#allocation4 + $0x5]  }
 0x175   : > { %s493_s5 = scalar_lea.hbm %s4287_s3, %s1752_s14  ;;  %s533_s6 = sshll.u32 %s3250_s11, 4  ;;  %s3710_s6 = int_to_ptr.vmem [resolvable:$true] %s533_s6 }
 0x176   : > { %s2337_s0 = scalar_lea.hbm %s493_s5, 16  ;;  %p2340_p7 = scmp.lt.s32.totalorder %s493_s5, %s4287_s3 }
 0x177   : > { %p2338_p6 = scmp.ne.s32.totalorder %s493_s5, %s2337_s0  ;;  %p2341_p8 = scmp.lt.s32.totalorder %s3446_s18, %s2337_s0 }
 0x179   : > { %p2342_p9 = por %p2341_p8, %p2340_p7 }
 0x17b   : > { %p2343_p12 = pnand %p2342_p9, %p2338_p6 }
 0x17d   : > { %2346 = shalt.err (!%p2343_p12)  }
 0x17e   : > { %s2347_s29 = scalar_lea.vmem %s504_s9, 16  ;;  %p2352_p13 = scmp.lt.s32.totalorder %s504_s9, %s3431_s16 }
 0x17f   : > { %p2348_p11 = scmp.ne.s32.totalorder %s504_s9, %s2347_s29  ;;  %p2353_p0 = scmp.lt.s32.totalorder %s3455_s2, %s2347_s29 }
 0x181   : > { %p2354_p1 = por %p2353_p0, %p2352_p13 }
 0x183   : > { %p2355_p2 = pnand %p2354_p1, %p2348_p11 }
 0x185   : > { %2358 = shalt.err (!%p2355_p2)  }
 0x186   : > { %506 = dma.hbm_to_vmem [thread:$0]  %s493_s5, 16, %s504_s9, [#allocation5 + $0x5] }
 0x187   : > { %s1753_s24 = sshll.u32 %s3694_s10, 4  ;;  %s3716_s21 = sadd.s32 6, %s3421_s23 }
 0x188   : > { %s508_s14 = scalar_lea.hbm %s4287_s3, %s1753_s24 }
 0x189   : > { %s2359_s8 = scalar_lea.hbm %s508_s14, 16  ;;  %p2362_p4 = scmp.lt.s32.totalorder %s508_s14, %s4287_s3 }
 0x18a   : > { %p2360_p3 = scmp.ne.s32.totalorder %s508_s14, %s2359_s8  ;;  %p2363_p5 = scmp.lt.s32.totalorder %s3446_s18, %s2359_s8 }
 0x18c   : > { %p2364_p6 = por %p2363_p5, %p2362_p4 }
 0x18e   : > { %p2365_p7 = pnand %p2364_p6, %p2360_p3 }
 0x190   : > { %2368 = shalt.err (!%p2365_p7)  }
 0x191   : > { %s2369_s10 = scalar_lea.vmem %s3696_s27, 16  ;;  %p2374_p9 = scmp.lt.s32.totalorder %s3696_s27, %s3436_s19 }
 0x192   : > { %p2370_p8 = scmp.ne.s32.totalorder %s3696_s27, %s2369_s10  ;;  %p2375_p12 = scmp.lt.s32.totalorder %s3476_s26, %s2369_s10 }
 0x194   : > { %p2376_p11 = por %p2375_p12, %p2374_p9 }
 0x196   : > { %p2377_p13 = pnand %p2376_p11, %p2370_p8 }
 0x198   : > { %2380 = shalt.err (!%p2377_p13)  }
 0x199   : > { %521 = dma.hbm_to_vmem [thread:$0]  %s508_s14, 16, %s3696_s27, [#allocation5 + $0x15] }
 0x19a   : > { %s1754_s9 = sshll.u32 %s3698_s28, 4  ;;  %s538_s5 = sld [smem:[#allocation7 + %s3716_s21]] }
 0x19b   : > { %s523_s29 = scalar_lea.hbm %s4288_s4, %s1754_s9 }
 0x19c   : > { %s2381_s24 = scalar_lea.hbm %s523_s29, 16  ;;  %p2384_p1 = scmp.lt.s32.totalorder %s523_s29, %s4288_s4 }
 0x19d   : > { %p2382_p0 = scmp.ne.s32.totalorder %s523_s29, %s2381_s24  ;;  %p2385_p2 = scmp.lt.s32.totalorder %s3489_s12, %s2381_s24 }
 0x19f   : > { %p2386_p3 = por %p2385_p2, %p2384_p1 }
 0x1a1   : > { %p2387_p4 = pnand %p2386_p3, %p2382_p0 }
 0x1a3   : > { %2390 = shalt.err (!%p2387_p4)  }
 0x1a4   : > { %s2391_s27 = scalar_lea.vmem %s3710_s6, 16  ;;  %p2396_p6 = scmp.lt.s32.totalorder %s3710_s6, %s3441_s30 }
 0x1a5   : > { %p2392_p5 = scmp.ne.s32.totalorder %s3710_s6, %s2391_s27  ;;  %p2397_p7 = scmp.lt.s32.totalorder %s3498_s13, %s2391_s27 }
 0x1a7   : > { %p2398_p8 = por %p2397_p7, %p2396_p6 }
 0x1a9   : > { %p2399_p9 = pnand %p2398_p8, %p2392_p5 }
 0x1ab   : > { %2402 = shalt.err (!%p2399_p9)  }
 0x1ac   : > { %536 = dma.hbm_to_vmem [thread:$0]  %s523_s29, 16, %s3710_s6, [#allocation5 + $0x25] }
 0x1ad   : > { %s3251_s28 = smov [#allocation2 + $0x6]   ;;  %s539_s8 = sld [smem:[#allocation8 + %s3716_s21]] }
 0x1ae   : > { %s552_s14 = sshll.u32 %s3251_s28, 4  ;;  %s3252_s11 = smov [#allocation3 + $0x6]   ;;  %s553_s14 = int_to_ptr.vmem [resolvable:$true] %s552_s14 }
 0x1af   : > { %s567_s0 = sshll.u32 %s3252_s11, 4  ;;  %s3745_s10 = sld [smem:[#allocation9 + %s3716_s21]]  ;;  %s3747_s0 = int_to_ptr.vmem [resolvable:$true] %s567_s0 }
 0x1b0   : > { %s1755_s9 = sshll.u32 %s538_s5, 4 }
 0x1b1   : > { %s542_s24 = scalar_lea.hbm %s4287_s3, %s1755_s9 }
 0x1b2   : > { %s2403_s1 = scalar_lea.hbm %s542_s24, 16  ;;  %p2406_p11 = scmp.lt.s32.totalorder %s542_s24, %s4287_s3 }
 0x1b3   : > { %p2404_p12 = scmp.ne.s32.totalorder %s542_s24, %s2403_s1  ;;  %p2407_p13 = scmp.lt.s32.totalorder %s3446_s18, %s2403_s1 }
 0x1b5   : > { %p2408_p0 = por %p2407_p13, %p2406_p11 }
 0x1b7   : > { %p2409_p1 = pnand %p2408_p0, %p2404_p12 }
 0x1b9   : > { %2412 = shalt.err (!%p2409_p1)  }
 0x1ba   : > { %s2413_s6 = scalar_lea.vmem %s553_s14, 16  ;;  %p2418_p3 = scmp.lt.s32.totalorder %s553_s14, %s3431_s16 }
 0x1bb   : > { %p2414_p2 = scmp.ne.s32.totalorder %s553_s14, %s2413_s6  ;;  %p2419_p4 = scmp.lt.s32.totalorder %s3455_s2, %s2413_s6 }
 0x1bd   : > { %p2420_p5 = por %p2419_p4, %p2418_p3 }
 0x1bf   : > { %p2421_p6 = pnand %p2420_p5, %p2414_p2 }
 0x1c1   : > { %2424 = shalt.err (!%p2421_p6)  }
 0x1c2   : > { %555 = dma.hbm_to_vmem [thread:$0]  %s542_s24, 16, %s553_s14, [#allocation5 + $0x6] }
 0x1c3   : > { %s1756_s21 = sshll.u32 %s539_s8, 4  ;;  %s3253_s5 = smov [#allocation4 + $0x6]  }
 0x1c4   : > { %s582_s29 = sshll.u32 %s3253_s5, 4  ;;  %s557_s9 = scalar_lea.hbm %s4287_s3, %s1756_s21  ;;  %s3761_s29 = int_to_ptr.vmem [resolvable:$true] %s582_s29 }
 0x1c5   : > { %s2425_s15 = scalar_lea.hbm %s557_s9, 16  ;;  %p2428_p8 = scmp.lt.s32.totalorder %s557_s9, %s4287_s3 }
 0x1c6   : > { %p2426_p7 = scmp.ne.s32.totalorder %s557_s9, %s2425_s15  ;;  %p2429_p9 = scmp.lt.s32.totalorder %s3446_s18, %s2425_s15 }
 0x1c8   : > { %p2430_p12 = por %p2429_p9, %p2428_p8 }
 0x1ca   : > { %p2431_p11 = pnand %p2430_p12, %p2426_p7 }
 0x1cc   : > { %2434 = shalt.err (!%p2431_p11)  }
 0x1cd   : > { %s2435_s14 = scalar_lea.vmem %s3747_s0, 16  ;;  %p2440_p0 = scmp.lt.s32.totalorder %s3747_s0, %s3436_s19 }
 0x1ce   : > { %p2436_p13 = scmp.ne.s32.totalorder %s3747_s0, %s2435_s14  ;;  %p2441_p1 = scmp.lt.s32.totalorder %s3476_s26, %s2435_s14 }
 0x1d0   : > { %p2442_p2 = por %p2441_p1, %p2440_p0 }
 0x1d2   : > { %p2443_p3 = pnand %p2442_p2, %p2436_p13 }
 0x1d4   : > { %2446 = shalt.err (!%p2443_p3)  }
 0x1d5   : > { %570 = dma.hbm_to_vmem [thread:$0]  %s557_s9, 16, %s3747_s0, [#allocation5 + $0x16] }
 0x1d6   : > { %s1757_s8 = sshll.u32 %s3745_s10, 4  ;;  %s586_s24 = sadd.s32 7, %s3421_s23 }
 0x1d7   : > { %s572_s6 = scalar_lea.hbm %s4288_s4, %s1757_s8  ;;  %s587_s21 = sld [smem:[#allocation7 + %s586_s24]] }
 0x1d8   : > { %s2447_s5 = scalar_lea.hbm %s572_s6, 16  ;;  %p2450_p5 = scmp.lt.s32.totalorder %s572_s6, %s4288_s4 }
 0x1d9   : > { %p2448_p4 = scmp.ne.s32.totalorder %s572_s6, %s2447_s5  ;;  %p2451_p6 = scmp.lt.s32.totalorder %s3489_s12, %s2447_s5 }
 0x1db   : > { %p2452_p7 = por %p2451_p6, %p2450_p5 }
 0x1dd   : > { %p2453_p8 = pnand %p2452_p7, %p2448_p4 }
 0x1df   : > { %2456 = shalt.err (!%p2453_p8)  }
 0x1e0   : > { %s2457_s0 = scalar_lea.vmem %s3761_s29, 16  ;;  %p2462_p12 = scmp.lt.s32.totalorder %s3761_s29, %s3441_s30 }
 0x1e1   : > { %p2458_p9 = scmp.ne.s32.totalorder %s3761_s29, %s2457_s0  ;;  %p2463_p11 = scmp.lt.s32.totalorder %s3498_s13, %s2457_s0 }
 0x1e3   : > { %p2464_p13 = por %p2463_p11, %p2462_p12 }
 0x1e5   : > { %p2465_p0 = pnand %p2464_p13, %p2458_p9 }
 0x1e7   : > { %2468 = shalt.err (!%p2465_p0)  }
 0x1e8   : > { %585 = dma.hbm_to_vmem [thread:$0]  %s572_s6, 16, %s3761_s29, [#allocation5 + $0x26] }
 0x1e9   : > { %s3788_s10 = sld [smem:[#allocation8 + %s586_s24]]  ;;  %s3254_s9 = smov [#allocation2 + $0x7]  }
 0x1ea   : > { %s601_s15 = sshll.u32 %s3254_s9, 4  ;;  %s3255_s20 = smov [#allocation3 + $0x7]   ;;  %s602_s15 = int_to_ptr.vmem [resolvable:$true] %s601_s15 }
 0x1eb   : > { %s616_s1 = sshll.u32 %s3255_s20, 4  ;;  %s3792_s14 = sld [smem:[#allocation9 + %s586_s24]]  ;;  %s3790_s1 = int_to_ptr.vmem [resolvable:$true] %s616_s1 }
 0x1ec   : > { %s1758_s8 = sshll.u32 %s587_s21, 4  ;;  %s3256_s28 = smov [#allocation4 + $0x7]  }
 0x1ed   : > { %s591_s5 = scalar_lea.hbm %s4287_s3, %s1758_s8  ;;  %s631_s11 = sshll.u32 %s3256_s28, 4  ;;  %s3804_s11 = int_to_ptr.vmem [resolvable:$true] %s631_s11 }
 0x1ee   : > { %s2469_s29 = scalar_lea.hbm %s591_s5, 16  ;;  %p2472_p2 = scmp.lt.s32.totalorder %s591_s5, %s4287_s3 }
 0x1ef   : > { %p2470_p1 = scmp.ne.s32.totalorder %s591_s5, %s2469_s29  ;;  %p2473_p3 = scmp.lt.s32.totalorder %s3446_s18, %s2469_s29 }
 0x1f1   : > { %p2474_p4 = por %p2473_p3, %p2472_p2 }
 0x1f3   : > { %p2475_p5 = pnand %p2474_p4, %p2470_p1 }
 0x1f5   : > { %2478 = shalt.err (!%p2475_p5)  }
 0x1f6   : > { %s2479_s9 = scalar_lea.vmem %s602_s15, 16  ;;  %p2484_p7 = scmp.lt.s32.totalorder %s602_s15, %s3431_s16 }
 0x1f7   : > { %p2480_p6 = scmp.ne.s32.totalorder %s602_s15, %s2479_s9  ;;  %p2485_p8 = scmp.lt.s32.totalorder %s3455_s2, %s2479_s9 }
 0x1f9   : > { %p2486_p9 = por %p2485_p8, %p2484_p7 }
 0x1fb   : > { %p2487_p12 = pnand %p2486_p9, %p2480_p6 }
 0x1fd   : > { %2490 = shalt.err (!%p2487_p12)  }
 0x1fe   : > { %604 = dma.hbm_to_vmem [thread:$0]  %s591_s5, 16, %s602_s15, [#allocation5 + $0x7] }
 0x1ff   : > { %s1759_s24 = sshll.u32 %s3788_s10, 4  ;;  %s3810_s17 = sadd.s32 8, %s3421_s23 }
 0x200   : > { %s606_s8 = scalar_lea.hbm %s4287_s3, %s1759_s24 }
 0x201   : > { %s2491_s27 = scalar_lea.hbm %s606_s8, 16  ;;  %p2494_p13 = scmp.lt.s32.totalorder %s606_s8, %s4287_s3 }
 0x202   : > { %p2492_p11 = scmp.ne.s32.totalorder %s606_s8, %s2491_s27  ;;  %p2495_p0 = scmp.lt.s32.totalorder %s3446_s18, %s2491_s27 }
 0x204   : > { %p2496_p1 = por %p2495_p0, %p2494_p13 }
 0x206   : > { %p2497_p2 = pnand %p2496_p1, %p2492_p11 }
 0x208   : > { %2500 = shalt.err (!%p2497_p2)  }
 0x209   : > { %s2501_s10 = scalar_lea.vmem %s3790_s1, 16  ;;  %p2506_p4 = scmp.lt.s32.totalorder %s3790_s1, %s3436_s19 }
 0x20a   : > { %p2502_p3 = scmp.ne.s32.totalorder %s3790_s1, %s2501_s10  ;;  %p2507_p5 = scmp.lt.s32.totalorder %s3476_s26, %s2501_s10 }
 0x20c   : > { %p2508_p6 = por %p2507_p5, %p2506_p4 }
 0x20e   : > { %p2509_p7 = pnand %p2508_p6, %p2502_p3 }
 0x210   : > { %2512 = shalt.err (!%p2509_p7)  }
 0x211   : > { %619 = dma.hbm_to_vmem [thread:$0]  %s606_s8, 16, %s3790_s1, [#allocation5 + $0x17] }
 0x212   : > { %s1760_s15 = sshll.u32 %s3792_s14, 4  ;;  %s636_s5 = sld [smem:[#allocation7 + %s3810_s17]] }
 0x213   : > { %s621_s9 = scalar_lea.hbm %s4288_s4, %s1760_s15 }
 0x214   : > { %s2513_s24 = scalar_lea.hbm %s621_s9, 16  ;;  %p2516_p9 = scmp.lt.s32.totalorder %s621_s9, %s4288_s4 }
 0x215   : > { %p2514_p8 = scmp.ne.s32.totalorder %s621_s9, %s2513_s24  ;;  %p2517_p12 = scmp.lt.s32.totalorder %s3489_s12, %s2513_s24 }
 0x217   : > { %p2518_p11 = por %p2517_p12, %p2516_p9 }
 0x219   : > { %p2519_p13 = pnand %p2518_p11, %p2514_p8 }
 0x21b   : > { %2522 = shalt.err (!%p2519_p13)  }
 0x21c   : > { %s2523_s1 = scalar_lea.vmem %s3804_s11, 16  ;;  %p2528_p1 = scmp.lt.s32.totalorder %s3804_s11, %s3441_s30 }
 0x21d   : > { %p2524_p0 = scmp.ne.s32.totalorder %s3804_s11, %s2523_s1  ;;  %p2529_p2 = scmp.lt.s32.totalorder %s3498_s13, %s2523_s1 }
 0x21f   : > { %p2530_p3 = por %p2529_p2, %p2528_p1 }
 0x221   : > { %p2531_p4 = pnand %p2530_p3, %p2524_p0 }
 0x223   : > { %2534 = shalt.err (!%p2531_p4)  }
 0x224   : > { %634 = dma.hbm_to_vmem [thread:$0]  %s621_s9, 16, %s3804_s11, [#allocation5 + $0x27] }
 0x225   : > { %s3257_s14 = smov [#allocation2 + $0x8]   ;;  %s637_s27 = sld [smem:[#allocation8 + %s3810_s17]] }
 0x226   : > { %s650_s8 = sshll.u32 %s3257_s14, 4  ;;  %s3258_s28 = smov [#allocation3 + $0x8]   ;;  %s651_s8 = int_to_ptr.vmem [resolvable:$true] %s650_s8 }
 0x227   : > { %s665_s29 = sshll.u32 %s3258_s28, 4  ;;  %s3839_s10 = sld [smem:[#allocation9 + %s3810_s17]]  ;;  %s3841_s29 = int_to_ptr.vmem [resolvable:$true] %s665_s29 }
 0x228   : > { %s1761_s15 = sshll.u32 %s636_s5, 4 }
 0x229   : > { %s640_s24 = scalar_lea.hbm %s4287_s3, %s1761_s15 }
 0x22a   : > { %s2535_s21 = scalar_lea.hbm %s640_s24, 16  ;;  %p2538_p6 = scmp.lt.s32.totalorder %s640_s24, %s4287_s3 }
 0x22b   : > { %p2536_p5 = scmp.ne.s32.totalorder %s640_s24, %s2535_s21  ;;  %p2539_p7 = scmp.lt.s32.totalorder %s3446_s18, %s2535_s21 }
 0x22d   : > { %p2540_p8 = por %p2539_p7, %p2538_p6 }
 0x22f   : > { %p2541_p9 = pnand %p2540_p8, %p2536_p5 }
 0x231   : > { %2544 = shalt.err (!%p2541_p9)  }
 0x232   : > { %s2545_s11 = scalar_lea.vmem %s651_s8, 16  ;;  %p2550_p11 = scmp.lt.s32.totalorder %s651_s8, %s3431_s16 }
 0x233   : > { %p2546_p12 = scmp.ne.s32.totalorder %s651_s8, %s2545_s11  ;;  %p2551_p13 = scmp.lt.s32.totalorder %s3455_s2, %s2545_s11 }
 0x235   : > { %p2552_p0 = por %p2551_p13, %p2550_p11 }
 0x237   : > { %p2553_p1 = pnand %p2552_p0, %p2546_p12 }
 0x239   : > { %2556 = shalt.err (!%p2553_p1)  }
 0x23a   : > { %653 = dma.hbm_to_vmem [thread:$0]  %s640_s24, 16, %s651_s8, [#allocation5 + $0x8] }
 0x23b   : > { %s1762_s17 = sshll.u32 %s637_s27, 4  ;;  %s3259_s5 = smov [#allocation4 + $0x8]  }
 0x23c   : > { %s680_s9 = sshll.u32 %s3259_s5, 4  ;;  %s655_s15 = scalar_lea.hbm %s4287_s3, %s1762_s17  ;;  %s3855_s9 = int_to_ptr.vmem [resolvable:$true] %s680_s9 }
 0x23d   : > { %s2557_s6 = scalar_lea.hbm %s655_s15, 16  ;;  %p2560_p3 = scmp.lt.s32.totalorder %s655_s15, %s4287_s3 }
 0x23e   : > { %p2558_p2 = scmp.ne.s32.totalorder %s655_s15, %s2557_s6  ;;  %p2561_p4 = scmp.lt.s32.totalorder %s3446_s18, %s2557_s6 }
 0x240   : > { %p2562_p5 = por %p2561_p4, %p2560_p3 }
 0x242   : > { %p2563_p6 = pnand %p2562_p5, %p2558_p2 }
 0x244   : > { %2566 = shalt.err (!%p2563_p6)  }
 0x245   : > { %s2567_s8 = scalar_lea.vmem %s3841_s29, 16  ;;  %p2572_p8 = scmp.lt.s32.totalorder %s3841_s29, %s3436_s19 }
 0x246   : > { %p2568_p7 = scmp.ne.s32.totalorder %s3841_s29, %s2567_s8  ;;  %p2573_p9 = scmp.lt.s32.totalorder %s3476_s26, %s2567_s8 }
 0x248   : > { %p2574_p12 = por %p2573_p9, %p2572_p8 }
 0x24a   : > { %p2575_p11 = pnand %p2574_p12, %p2568_p7 }
 0x24c   : > { %2578 = shalt.err (!%p2575_p11)  }
 0x24d   : > { %668 = dma.hbm_to_vmem [thread:$0]  %s655_s15, 16, %s3841_s29, [#allocation5 + $0x18] }
 0x24e   : > { %s1763_s27 = sshll.u32 %s3839_s10, 4  ;;  %s684_s24 = sadd.s32 9, %s3421_s23 }
 0x24f   : > { %s670_s11 = scalar_lea.hbm %s4288_s4, %s1763_s27  ;;  %s685_s17 = sld [smem:[#allocation7 + %s684_s24]] }
 0x250   : > { %s2579_s5 = scalar_lea.hbm %s670_s11, 16  ;;  %p2582_p0 = scmp.lt.s32.totalorder %s670_s11, %s4288_s4 }
 0x251   : > { %p2580_p13 = scmp.ne.s32.totalorder %s670_s11, %s2579_s5  ;;  %p2583_p1 = scmp.lt.s32.totalorder %s3489_s12, %s2579_s5 }
 0x253   : > { %p2584_p2 = por %p2583_p1, %p2582_p0 }
 0x255   : > { %p2585_p3 = pnand %p2584_p2, %p2580_p13 }
 0x257   : > { %2588 = shalt.err (!%p2585_p3)  }
 0x258   : > { %s2589_s29 = scalar_lea.vmem %s3855_s9, 16  ;;  %p2594_p5 = scmp.lt.s32.totalorder %s3855_s9, %s3441_s30 }
 0x259   : > { %p2590_p4 = scmp.ne.s32.totalorder %s3855_s9, %s2589_s29  ;;  %p2595_p6 = scmp.lt.s32.totalorder %s3498_s13, %s2589_s29 }
 0x25b   : > { %p2596_p7 = por %p2595_p6, %p2594_p5 }
 0x25d   : > { %p2597_p8 = pnand %p2596_p7, %p2590_p4 }
 0x25f   : > { %2600 = shalt.err (!%p2597_p8)  }
 0x260   : > { %683 = dma.hbm_to_vmem [thread:$0]  %s670_s11, 16, %s3855_s9, [#allocation5 + $0x28]  ;;  %v1786_v1 = vld [vmem:[%s4291_s7] ss:$0 sm:$0xff]  ;;  %v1787_v2 = vld [vmem:[%s4291_s7 + $0x1] ss:$0 sm:$0xff]  ;;  %v1036_v3 = vpop.permute.xlu0 %1035 }
 0x261   : > { %s3882_s10 = sld [smem:[#allocation8 + %s684_s24]]  ;;  %s3260_s15 = smov [#allocation2 + $0x9]   ;;  %v1027_v4 = vld [vmem:[#allocation10] sm:$0xff] }
 0x262   : > { %s699_s6 = sshll.u32 %s3260_s15, 4  ;;  %s3261_s0 = smov [#allocation3 + $0x9]   ;;  %s700_s6 = int_to_ptr.vmem [resolvable:$true] %s699_s6 }
 0x263   : > { %s714_s21 = sshll.u32 %s3261_s0, 4  ;;  %s3886_s8 = sld [smem:[#allocation9 + %s684_s24]]  ;;  %s3884_s21 = int_to_ptr.vmem [resolvable:$true] %s714_s21 }
 0x264   : > { %s1764_s27 = sshll.u32 %s685_s17, 4  ;;  %s3262_s29 = smov [#allocation4 + $0x9]  }
 0x265   : > { %s689_s28 = scalar_lea.hbm %s4287_s3, %s1764_s27  ;;  %s729_s15 = sshll.u32 %s3262_s29, 4  ;;  %s3904_s15 = int_to_ptr.vmem [resolvable:$true] %s729_s15 }
 0x266   : > { %s2601_s0 = scalar_lea.hbm %s689_s28, 16  ;;  %p2604_p12 = scmp.lt.s32.totalorder %s689_s28, %s4287_s3 }
 0x267   : > { %p2602_p9 = scmp.ne.s32.totalorder %s689_s28, %s2601_s0  ;;  %p2605_p11 = scmp.lt.s32.totalorder %s3446_s18, %s2601_s0 }
 0x269   : > { %p2606_p13 = por %p2605_p11, %p2604_p12 }
 0x26b   : > { %p2607_p0 = pnand %p2606_p13, %p2602_p9 }
 0x26d   : > { %2610 = shalt.err (!%p2607_p0)  }
 0x26e   : > { %s2611_s20 = scalar_lea.vmem %s700_s6, 16  ;;  %p2616_p2 = scmp.lt.s32.totalorder %s700_s6, %s3431_s16 }
 0x26f   : > { %p2612_p1 = scmp.ne.s32.totalorder %s700_s6, %s2611_s20  ;;  %p2617_p3 = scmp.lt.s32.totalorder %s3455_s2, %s2611_s20 }
 0x271   : > { %p2618_p4 = por %p2617_p3, %p2616_p2 }
 0x273   : > { %p2619_p5 = pnand %p2618_p4, %p2612_p1 }
 0x275   : > { %2622 = shalt.err (!%p2619_p5)  }
 0x276   : > { %702 = dma.hbm_to_vmem [thread:$0]  %s689_s28, 16, %s700_s6, [#allocation5 + $0x9]  ;;  %vm1047_vm0 = vcmp.eq.s32.totalorder %v1036_v3, 1 }
 0x277   : > { %s1765_s27 = sshll.u32 %s3882_s10, 4  ;;  %v1057_v5 = vsel %vm1047_vm0, %v1787_v2, %v1786_v1  ;;  %s3910_s9 = sadd.s32 10, %s3421_s23 }
 0x278   : > { %s704_s14 = scalar_lea.hbm %s4287_s3, %s1765_s27  ;;  %v3912_v6 = vadd.f32 %v1057_v5, %v1027_v4 }
 0x279   : > { %s2623_s11 = scalar_lea.hbm %s704_s14, 16  ;;  %p2626_p7 = scmp.lt.s32.totalorder %s704_s14, %s4287_s3 }
 0x27a   : > { %p2624_p6 = scmp.ne.s32.totalorder %s704_s14, %s2623_s11  ;;  %p2627_p8 = scmp.lt.s32.totalorder %s3446_s18, %s2623_s11 }
 0x27c   : > { %p2628_p9 = por %p2627_p8, %p2626_p7 }
 0x27e   : > { %p2629_p12 = pnand %p2628_p9, %p2624_p6 }
 0x280   : > { %2632 = shalt.err (!%p2629_p12)  }
 0x281   : > { %s2633_s10 = scalar_lea.vmem %s3884_s21, 16  ;;  %p2638_p13 = scmp.lt.s32.totalorder %s3884_s21, %s3436_s19 }
 0x282   : > { %p2634_p11 = scmp.ne.s32.totalorder %s3884_s21, %s2633_s10  ;;  %p2639_p0 = scmp.lt.s32.totalorder %s3476_s26, %s2633_s10 }
 0x284   : > { %p2640_p1 = por %p2639_p0, %p2638_p13 }
 0x286   : > { %p2641_p2 = pnand %p2640_p1, %p2634_p11 }
 0x288   : > { %2644 = shalt.err (!%p2641_p2)  }
 0x289   : > { %717 = dma.hbm_to_vmem [thread:$0]  %s704_s14, 16, %s3884_s21, [#allocation5 + $0x19]  ;;  %v1040_v7 = vpop.permute.xlu0 %1039  ;;  %v1028_v8 = vld [vmem:[#allocation10 + $0x8] sm:$0xff] }
 0x28a   : > { %s1766_s28 = sshll.u32 %s3886_s8, 4  ;;  %s3926_s0 = sld [smem:[#allocation7 + %s3910_s9]]  ;;  %vm1048_vm1 = vcmp.eq.s32.totalorder %v1040_v7, 1 }
 0x28b   : > { %s719_s20 = scalar_lea.hbm %s4288_s4, %s1766_s28  ;;  %v1058_v9 = vsel %vm1048_vm1, %v1787_v2, %v1786_v1 }
 0x28c   : > { %s2645_s27 = scalar_lea.hbm %s719_s20, 16  ;;  %p2648_p4 = scmp.lt.s32.totalorder %s719_s20, %s4288_s4 }
 0x28d   : > { %p2646_p3 = scmp.ne.s32.totalorder %s719_s20, %s2645_s27  ;;  %p2649_p5 = scmp.lt.s32.totalorder %s3489_s12, %s2645_s27 }
 0x28f   : > { %p2650_p6 = por %p2649_p5, %p2648_p4 }
 0x291   : > { %p2651_p7 = pnand %p2650_p6, %p2646_p3 }
 0x293   : > { %2654 = shalt.err (!%p2651_p7)  }
 0x294   : > { %s2655_s21 = scalar_lea.vmem %s3904_s15, 16  ;;  %p2660_p9 = scmp.lt.s32.totalorder %s3904_s15, %s3441_s30 }
 0x295   : > { %p2656_p8 = scmp.ne.s32.totalorder %s3904_s15, %s2655_s21  ;;  %p2661_p12 = scmp.lt.s32.totalorder %s3498_s13, %s2655_s21 }
 0x297   : > { %p2662_p11 = por %p2661_p12, %p2660_p9 }
 0x299   : > { %p2663_p13 = pnand %p2662_p11, %p2656_p8 }
 0x29b   : > { %2666 = shalt.err (!%p2663_p13)  }
 0x29c   : > { %732 = dma.hbm_to_vmem [thread:$0]  %s719_s20, 16, %s3904_s15, [#allocation5 + $0x29]  ;;  %v3941_v10 = vadd.f32 %v1058_v9, %v1028_v8 }
 0x29d   : > { %s3263_s8 = smov [#allocation2 + $0xa]   ;;  %s735_s11 = sld [smem:[#allocation8 + %s3910_s9]] }
 0x29e   : > { %s748_s14 = sshll.u32 %s3263_s8, 4  ;;  %s3264_s29 = smov [#allocation3 + $0xa]   ;;  %s749_s14 = int_to_ptr.vmem [resolvable:$true] %s748_s14 }
 0x29f   : > { %s763_s6 = sshll.u32 %s3264_s29, 4  ;;  %s3945_s10 = sld [smem:[#allocation9 + %s3910_s9]]  ;;  %s3948_s6 = int_to_ptr.vmem [resolvable:$true] %s763_s6 }
 0x2a0   : > { %s1767_s28 = sshll.u32 %s3926_s0, 4 }
 0x2a1   : > { %s738_s27 = scalar_lea.hbm %s4287_s3, %s1767_s28 }
 0x2a2   : > { %s2667_s1 = scalar_lea.hbm %s738_s27, 16  ;;  %p2670_p1 = scmp.lt.s32.totalorder %s738_s27, %s4287_s3 }
 0x2a3   : > { %p2668_p0 = scmp.ne.s32.totalorder %s738_s27, %s2667_s1  ;;  %p2671_p2 = scmp.lt.s32.totalorder %s3446_s18, %s2667_s1 }
 0x2a5   : > { %p2672_p3 = por %p2671_p2, %p2670_p1 }
 0x2a7   : > { %p2673_p4 = pnand %p2672_p3, %p2668_p0 }
 0x2a9   : > { %2676 = shalt.err (!%p2673_p4)  }
 0x2aa   : > { %s2677_s5 = scalar_lea.vmem %s749_s14, 16  ;;  %p2682_p6 = scmp.lt.s32.totalorder %s749_s14, %s3431_s16 }
 0x2ab   : > { %p2678_p5 = scmp.ne.s32.totalorder %s749_s14, %s2677_s5  ;;  %p2683_p7 = scmp.lt.s32.totalorder %s3455_s2, %s2677_s5 }
 0x2ad   : > { %p2684_p8 = por %p2683_p7, %p2682_p6 }
 0x2af   : > { %p2685_p9 = pnand %p2684_p8, %p2678_p5 }
 0x2b1   : > { %2688 = shalt.err (!%p2685_p9)  }
 0x2b2   : > { %751 = dma.hbm_to_vmem [thread:$0]  %s738_s27, 16, %s749_s14, [#allocation5 + $0xa] }
 0x2b3   : > { %s1768_s9 = sshll.u32 %s735_s11, 4  ;;  %s3265_s0 = smov [#allocation4 + $0xa]  }
 0x2b4   : > { %s778_s21 = sshll.u32 %s3265_s0, 4  ;;  %s753_s28 = scalar_lea.hbm %s4287_s3, %s1768_s9  ;;  %s3962_s21 = int_to_ptr.vmem [resolvable:$true] %s778_s21 }
 0x2b5   : > { %s2689_s24 = scalar_lea.hbm %s753_s28, 16  ;;  %p2692_p11 = scmp.lt.s32.totalorder %s753_s28, %s4287_s3 }
 0x2b6   : > { %p2690_p12 = scmp.ne.s32.totalorder %s753_s28, %s2689_s24  ;;  %p2693_p13 = scmp.lt.s32.totalorder %s3446_s18, %s2689_s24 }
 0x2b8   : > { %p2694_p0 = por %p2693_p13, %p2692_p11 }
 0x2ba   : > { %p2695_p1 = pnand %p2694_p0, %p2690_p12 }
 0x2bc   : > { %2698 = shalt.err (!%p2695_p1)  }
 0x2bd   : > { %s2699_s14 = scalar_lea.vmem %s3948_s6, 16  ;;  %p2704_p3 = scmp.lt.s32.totalorder %s3948_s6, %s3436_s19 }
 0x2be   : > { %p2700_p2 = scmp.ne.s32.totalorder %s3948_s6, %s2699_s14  ;;  %p2705_p4 = scmp.lt.s32.totalorder %s3476_s26, %s2699_s14 }
 0x2c0   : > { %p2706_p5 = por %p2705_p4, %p2704_p3 }
 0x2c2   : > { %p2707_p6 = pnand %p2706_p5, %p2700_p2 }
 0x2c4   : > { %2710 = shalt.err (!%p2707_p6)  }
 0x2c5   : > { %766 = dma.hbm_to_vmem [thread:$0]  %s753_s28, 16, %s3948_s6, [#allocation5 + $0x1a] }
 0x2c6   : > { %s1769_s11 = sshll.u32 %s3945_s10, 4  ;;  %s782_s27 = sadd.s32 11, %s3421_s23 }
 0x2c7   : > { %s768_s5 = scalar_lea.hbm %s4288_s4, %s1769_s11  ;;  %s783_s9 = sld [smem:[#allocation7 + %s782_s27]] }
 0x2c8   : > { %s2711_s0 = scalar_lea.hbm %s768_s5, 16  ;;  %p2714_p8 = scmp.lt.s32.totalorder %s768_s5, %s4288_s4 }
 0x2c9   : > { %p2712_p7 = scmp.ne.s32.totalorder %s768_s5, %s2711_s0  ;;  %p2715_p9 = scmp.lt.s32.totalorder %s3489_s12, %s2711_s0 }
 0x2cb   : > { %p2716_p12 = por %p2715_p9, %p2714_p8 }
 0x2cd   : > { %p2717_p11 = pnand %p2716_p12, %p2712_p7 }
 0x2cf   : > { %2720 = shalt.err (!%p2717_p11)  }
 0x2d0   : > { %s2721_s6 = scalar_lea.vmem %s3962_s21, 16  ;;  %p2726_p0 = scmp.lt.s32.totalorder %s3962_s21, %s3441_s30 }
 0x2d1   : > { %p2722_p13 = scmp.ne.s32.totalorder %s3962_s21, %s2721_s6  ;;  %p2727_p1 = scmp.lt.s32.totalorder %s3498_s13, %s2721_s6 }
 0x2d3   : > { %p2728_p2 = por %p2727_p1, %p2726_p0 }
 0x2d5   : > { %p2729_p3 = pnand %p2728_p2, %p2722_p13 }
 0x2d7   : > { %2732 = shalt.err (!%p2729_p3)  }
 0x2d8   : > { %781 = dma.hbm_to_vmem [thread:$0]  %s768_s5, 16, %s3962_s21, [#allocation5 + $0x2a] }
 0x2d9   : > { %s3989_s10 = sld [smem:[#allocation8 + %s782_s27]]  ;;  %s3266_s28 = smov [#allocation2 + $0xb]  }
 0x2da   : > { %s797_s24 = sshll.u32 %s3266_s28, 4  ;;  %s3267_s17 = smov [#allocation3 + $0xb]   ;;  %s798_s24 = int_to_ptr.vmem [resolvable:$true] %s797_s24 }
 0x2db   : > { %s812_s1 = sshll.u32 %s3267_s17, 4  ;;  %s3993_s14 = sld [smem:[#allocation9 + %s782_s27]]  ;;  %s3991_s1 = int_to_ptr.vmem [resolvable:$true] %s812_s1 }
 0x2dc   : > { %s1770_s11 = sshll.u32 %s783_s9, 4  ;;  %s3268_s8 = smov [#allocation4 + $0xb]  }
 0x2dd   : > { %s787_s0 = scalar_lea.hbm %s4287_s3, %s1770_s11  ;;  %s827_s29 = sshll.u32 %s3268_s8, 4  ;;  %s4005_s29 = int_to_ptr.vmem [resolvable:$true] %s827_s29 }
 0x2de   : > { %s2733_s21 = scalar_lea.hbm %s787_s0, 16  ;;  %p2736_p5 = scmp.lt.s32.totalorder %s787_s0, %s4287_s3 }
 0x2df   : > { %p2734_p4 = scmp.ne.s32.totalorder %s787_s0, %s2733_s21  ;;  %p2737_p6 = scmp.lt.s32.totalorder %s3446_s18, %s2733_s21 }
 0x2e1   : > { %p2738_p7 = por %p2737_p6, %p2736_p5 }
 0x2e3   : > { %p2739_p8 = pnand %p2738_p7, %p2734_p4 }
 0x2e5   : > { %2742 = shalt.err (!%p2739_p8)  }
 0x2e6   : > { %s2743_s28 = scalar_lea.vmem %s798_s24, 16  ;;  %p2748_p12 = scmp.lt.s32.totalorder %s798_s24, %s3431_s16 }
 0x2e7   : > { %p2744_p9 = scmp.ne.s32.totalorder %s798_s24, %s2743_s28  ;;  %p2749_p11 = scmp.lt.s32.totalorder %s3455_s2, %s2743_s28 }
 0x2e9   : > { %p2750_p13 = por %p2749_p11, %p2748_p12 }
 0x2eb   : > { %p2751_p0 = pnand %p2750_p13, %p2744_p9 }
 0x2ed   : > { %2754 = shalt.err (!%p2751_p0)  }
 0x2ee   : > { %800 = dma.hbm_to_vmem [thread:$0]  %s787_s0, 16, %s798_s24, [#allocation5 + $0xb] }
 0x2ef   : > { %s1771_s27 = sshll.u32 %s3989_s10, 4  ;;  %s4011_s15 = sadd.s32 12, %s3421_s23 }
 0x2f0   : > { %s802_s11 = scalar_lea.hbm %s4287_s3, %s1771_s27 }
 0x2f1   : > { %s2755_s20 = scalar_lea.hbm %s802_s11, 16  ;;  %p2758_p2 = scmp.lt.s32.totalorder %s802_s11, %s4287_s3 }
 0x2f2   : > { %p2756_p1 = scmp.ne.s32.totalorder %s802_s11, %s2755_s20  ;;  %p2759_p3 = scmp.lt.s32.totalorder %s3446_s18, %s2755_s20 }
 0x2f4   : > { %p2760_p4 = por %p2759_p3, %p2758_p2 }
 0x2f6   : > { %p2761_p5 = pnand %p2760_p4, %p2756_p1 }
 0x2f8   : > { %2764 = shalt.err (!%p2761_p5)  }
 0x2f9   : > { %s2765_s10 = scalar_lea.vmem %s3991_s1, 16  ;;  %p2770_p7 = scmp.lt.s32.totalorder %s3991_s1, %s3436_s19 }
 0x2fa   : > { %p2766_p6 = scmp.ne.s32.totalorder %s3991_s1, %s2765_s10  ;;  %p2771_p8 = scmp.lt.s32.totalorder %s3476_s26, %s2765_s10 }
 0x2fc   : > { %p2772_p9 = por %p2771_p8, %p2770_p7 }
 0x2fe   : > { %p2773_p12 = pnand %p2772_p9, %p2766_p6 }
 0x300   : > { %2776 = shalt.err (!%p2773_p12)  }
 0x301   : > { %815 = dma.hbm_to_vmem [thread:$0]  %s802_s11, 16, %s3991_s1, [#allocation5 + $0x1b] }
 0x302   : > { %s1772_s24 = sshll.u32 %s3993_s14, 4  ;;  %s832_s0 = sld [smem:[#allocation7 + %s4011_s15]] }
 0x303   : > { %s817_s28 = scalar_lea.hbm %s4288_s4, %s1772_s24 }
 0x304   : > { %s2777_s27 = scalar_lea.hbm %s817_s28, 16  ;;  %p2780_p13 = scmp.lt.s32.totalorder %s817_s28, %s4288_s4 }
 0x305   : > { %p2778_p11 = scmp.ne.s32.totalorder %s817_s28, %s2777_s27  ;;  %p2781_p0 = scmp.lt.s32.totalorder %s3489_s12, %s2777_s27 }
 0x307   : > { %p2782_p1 = por %p2781_p0, %p2780_p13 }
 0x309   : > { %p2783_p2 = pnand %p2782_p1, %p2778_p11 }
 0x30b   : > { %2786 = shalt.err (!%p2783_p2)  }
 0x30c   : > { %s2787_s1 = scalar_lea.vmem %s4005_s29, 16  ;;  %p2792_p4 = scmp.lt.s32.totalorder %s4005_s29, %s3441_s30 }
 0x30d   : > { %p2788_p3 = scmp.ne.s32.totalorder %s4005_s29, %s2787_s1  ;;  %p2793_p5 = scmp.lt.s32.totalorder %s3498_s13, %s2787_s1 }
 0x30f   : > { %p2794_p6 = por %p2793_p5, %p2792_p4 }
 0x311   : > { %p2795_p7 = pnand %p2794_p6, %p2788_p3 }
 0x313   : > { %2798 = shalt.err (!%p2795_p7)  }
 0x314   : > { %830 = dma.hbm_to_vmem [thread:$0]  %s817_s28, 16, %s4005_s29, [#allocation5 + $0x2b] }
 0x315   : > { %s3269_s14 = smov [#allocation2 + $0xc]   ;;  %s833_s20 = sld [smem:[#allocation8 + %s4011_s15]] }
 0x316   : > { %s846_s11 = sshll.u32 %s3269_s14, 4  ;;  %s3270_s8 = smov [#allocation3 + $0xc]   ;;  %s847_s11 = int_to_ptr.vmem [resolvable:$true] %s846_s11 }
 0x317   : > { %s861_s21 = sshll.u32 %s3270_s8, 4  ;;  %s4040_s10 = sld [smem:[#allocation9 + %s4011_s15]]  ;;  %s4042_s21 = int_to_ptr.vmem [resolvable:$true] %s861_s21 }
 0x318   : > { %s1773_s24 = sshll.u32 %s832_s0, 4 }
 0x319   : > { %s836_s27 = scalar_lea.hbm %s4287_s3, %s1773_s24 }
 0x31a   : > { %s2799_s9 = scalar_lea.hbm %s836_s27, 16  ;;  %p2802_p9 = scmp.lt.s32.totalorder %s836_s27, %s4287_s3 }
 0x31b   : > { %p2800_p8 = scmp.ne.s32.totalorder %s836_s27, %s2799_s9  ;;  %p2803_p12 = scmp.lt.s32.totalorder %s3446_s18, %s2799_s9 }
 0x31d   : > { %p2804_p11 = por %p2803_p12, %p2802_p9 }
 0x31f   : > { %p2805_p13 = pnand %p2804_p11, %p2800_p8 }
 0x321   : > { %2808 = shalt.err (!%p2805_p13)  }
 0x322   : > { %s2809_s29 = scalar_lea.vmem %s847_s11, 16  ;;  %p2814_p1 = scmp.lt.s32.totalorder %s847_s11, %s3431_s16 }
 0x323   : > { %p2810_p0 = scmp.ne.s32.totalorder %s847_s11, %s2809_s29  ;;  %p2815_p2 = scmp.lt.s32.totalorder %s3455_s2, %s2809_s29 }
 0x325   : > { %p2816_p3 = por %p2815_p2, %p2814_p1 }
 0x327   : > { %p2817_p4 = pnand %p2816_p3, %p2810_p0 }
 0x329   : > { %2820 = shalt.err (!%p2817_p4)  }
 0x32a   : > { %849 = dma.hbm_to_vmem [thread:$0]  %s836_s27, 16, %s847_s11, [#allocation5 + $0xc] }
 0x32b   : > { %s1774_s15 = sshll.u32 %s833_s20, 4  ;;  %s3271_s0 = smov [#allocation4 + $0xc]  }
 0x32c   : > { %s876_s28 = sshll.u32 %s3271_s0, 4  ;;  %s851_s24 = scalar_lea.hbm %s4287_s3, %s1774_s15  ;;  %s4056_s28 = int_to_ptr.vmem [resolvable:$true] %s876_s28 }
 0x32d   : > { %s2821_s5 = scalar_lea.hbm %s851_s24, 16  ;;  %p2824_p6 = scmp.lt.s32.totalorder %s851_s24, %s4287_s3 }
 0x32e   : > { %p2822_p5 = scmp.ne.s32.totalorder %s851_s24, %s2821_s5  ;;  %p2825_p7 = scmp.lt.s32.totalorder %s3446_s18, %s2821_s5 }
 0x330   : > { %p2826_p8 = por %p2825_p7, %p2824_p6 }
 0x332   : > { %p2827_p9 = pnand %p2826_p8, %p2822_p5 }
 0x334   : > { %2830 = shalt.err (!%p2827_p9)  }
 0x335   : > { %s2831_s11 = scalar_lea.vmem %s4042_s21, 16  ;;  %p2836_p11 = scmp.lt.s32.totalorder %s4042_s21, %s3436_s19 }
 0x336   : > { %p2832_p12 = scmp.ne.s32.totalorder %s4042_s21, %s2831_s11  ;;  %p2837_p13 = scmp.lt.s32.totalorder %s3476_s26, %s2831_s11 }
 0x338   : > { %p2838_p0 = por %p2837_p13, %p2836_p11 }
 0x33a   : > { %p2839_p1 = pnand %p2838_p0, %p2832_p12 }
 0x33c   : > { %2842 = shalt.err (!%p2839_p1)  }
 0x33d   : > { %864 = dma.hbm_to_vmem [thread:$0]  %s851_s24, 16, %s4042_s21, [#allocation5 + $0x1c] }
 0x33e   : > { %s1775_s20 = sshll.u32 %s4040_s10, 4  ;;  %s880_s27 = sadd.s32 13, %s3421_s23 }
 0x33f   : > { %s866_s29 = scalar_lea.hbm %s4288_s4, %s1775_s20  ;;  %s881_s15 = sld [smem:[#allocation7 + %s880_s27]] }
 0x340   : > { %s2843_s0 = scalar_lea.hbm %s866_s29, 16  ;;  %p2846_p3 = scmp.lt.s32.totalorder %s866_s29, %s4288_s4 }
 0x341   : > { %p2844_p2 = scmp.ne.s32.totalorder %s866_s29, %s2843_s0  ;;  %p2847_p4 = scmp.lt.s32.totalorder %s3489_s12, %s2843_s0 }
 0x343   : > { %p2848_p5 = por %p2847_p4, %p2846_p3 }
 0x345   : > { %p2849_p6 = pnand %p2848_p5, %p2844_p2 }
 0x347   : > { %2852 = shalt.err (!%p2849_p6)  }
 0x348   : > { %s2853_s21 = scalar_lea.vmem %s4056_s28, 16  ;;  %p2858_p8 = scmp.lt.s32.totalorder %s4056_s28, %s3441_s30 }
 0x349   : > { %p2854_p7 = scmp.ne.s32.totalorder %s4056_s28, %s2853_s21  ;;  %p2859_p9 = scmp.lt.s32.totalorder %s3498_s13, %s2853_s21 }
 0x34b   : > { %p2860_p12 = por %p2859_p9, %p2858_p8 }
 0x34d   : > { %p2861_p11 = pnand %p2860_p12, %p2854_p7 }
 0x34f   : > { %2864 = shalt.err (!%p2861_p11)  }
 0x350   : > { %879 = dma.hbm_to_vmem [thread:$0]  %s866_s29, 16, %s4056_s28, [#allocation5 + $0x2c] }
 0x351   : > { %s4083_s10 = sld [smem:[#allocation8 + %s880_s27]]  ;;  %s3272_s24 = smov [#allocation2 + $0xd]  }
 0x352   : > { %s895_s5 = sshll.u32 %s3272_s24, 4  ;;  %s3273_s6 = smov [#allocation3 + $0xd]   ;;  %s896_s5 = int_to_ptr.vmem [resolvable:$true] %s895_s5 }
 0x353   : > { %s910_s9 = sshll.u32 %s3273_s6, 4  ;;  %s4087_s11 = sld [smem:[#allocation9 + %s880_s27]]  ;;  %s4085_s9 = int_to_ptr.vmem [resolvable:$true] %s910_s9 }
 0x354   : > { %s1776_s20 = sshll.u32 %s881_s15, 4  ;;  %s3274_s14 = smov [#allocation4 + $0xd]  }
 0x355   : > { %s885_s0 = scalar_lea.hbm %s4287_s3, %s1776_s20  ;;  %s925_s8 = sshll.u32 %s3274_s14, 4  ;;  %s4099_s8 = int_to_ptr.vmem [resolvable:$true] %s925_s8 }
 0x356   : > { %s2865_s28 = scalar_lea.hbm %s885_s0, 16  ;;  %p2868_p0 = scmp.lt.s32.totalorder %s885_s0, %s4287_s3 }
 0x357   : > { %p2866_p13 = scmp.ne.s32.totalorder %s885_s0, %s2865_s28  ;;  %p2869_p1 = scmp.lt.s32.totalorder %s3446_s18, %s2865_s28 }
 0x359   : > { %p2870_p2 = por %p2869_p1, %p2868_p0 }
 0x35b   : > { %p2871_p3 = pnand %p2870_p2, %p2866_p13 }
 0x35d   : > { %2874 = shalt.err (!%p2871_p3)  }
 0x35e   : > { %s2875_s24 = scalar_lea.vmem %s896_s5, 16  ;;  %p2880_p5 = scmp.lt.s32.totalorder %s896_s5, %s3431_s16 }
 0x35f   : > { %p2876_p4 = scmp.ne.s32.totalorder %s896_s5, %s2875_s24  ;;  %p2881_p6 = scmp.lt.s32.totalorder %s3455_s2, %s2875_s24 }
 0x361   : > { %p2882_p7 = por %p2881_p6, %p2880_p5 }
 0x363   : > { %p2883_p8 = pnand %p2882_p7, %p2876_p4 }
 0x365   : > { %2886 = shalt.err (!%p2883_p8)  }
 0x366   : > { %898 = dma.hbm_to_vmem [thread:$0]  %s885_s0, 16, %s896_s5, [#allocation5 + $0xd] }
 0x367   : > { %s1777_s27 = sshll.u32 %s4083_s10, 4  ;;  %s4105_s17 = sadd.s32 14, %s3421_s23 }
 0x368   : > { %s900_s20 = scalar_lea.hbm %s4287_s3, %s1777_s27 }
 0x369   : > { %s2887_s1 = scalar_lea.hbm %s900_s20, 16  ;;  %p2890_p12 = scmp.lt.s32.totalorder %s900_s20, %s4287_s3 }
 0x36a   : > { %p2888_p9 = scmp.ne.s32.totalorder %s900_s20, %s2887_s1  ;;  %p2891_p11 = scmp.lt.s32.totalorder %s3446_s18, %s2887_s1 }
 0x36c   : > { %p2892_p13 = por %p2891_p11, %p2890_p12 }
 0x36e   : > { %p2893_p0 = pnand %p2892_p13, %p2888_p9 }
 0x370   : > { %2896 = shalt.err (!%p2893_p0)  }
 0x371   : > { %s2897_s10 = scalar_lea.vmem %s4085_s9, 16  ;;  %p2902_p2 = scmp.lt.s32.totalorder %s4085_s9, %s3436_s19 }
 0x372   : > { %p2898_p1 = scmp.ne.s32.totalorder %s4085_s9, %s2897_s10  ;;  %p2903_p3 = scmp.lt.s32.totalorder %s3476_s26, %s2897_s10 }
 0x374   : > { %p2904_p4 = por %p2903_p3, %p2902_p2 }
 0x376   : > { %p2905_p5 = pnand %p2904_p4, %p2898_p1 }
 0x378   : > { %2908 = shalt.err (!%p2905_p5)  }
 0x379   : > { %913 = dma.hbm_to_vmem [thread:$0]  %s900_s20, 16, %s4085_s9, [#allocation5 + $0x1d] }
 0x37a   : > { %s1778_s5 = sshll.u32 %s4087_s11, 4  ;;  %s930_s0 = sld [smem:[#allocation7 + %s4105_s17]] }
 0x37b   : > { %s915_s24 = scalar_lea.hbm %s4288_s4, %s1778_s5 }
 0x37c   : > { %s2909_s27 = scalar_lea.hbm %s915_s24, 16  ;;  %p2912_p7 = scmp.lt.s32.totalorder %s915_s24, %s4288_s4 }
 0x37d   : > { %p2910_p6 = scmp.ne.s32.totalorder %s915_s24, %s2909_s27  ;;  %p2913_p8 = scmp.lt.s32.totalorder %s3489_s12, %s2909_s27 }
 0x37f   : > { %p2914_p9 = por %p2913_p8, %p2912_p7 }
 0x381   : > { %p2915_p12 = pnand %p2914_p9, %p2910_p6 }
 0x383   : > { %2918 = shalt.err (!%p2915_p12)  }
 0x384   : > { %s2919_s9 = scalar_lea.vmem %s4099_s8, 16  ;;  %p2924_p13 = scmp.lt.s32.totalorder %s4099_s8, %s3441_s30 }
 0x385   : > { %p2920_p11 = scmp.ne.s32.totalorder %s4099_s8, %s2919_s9  ;;  %p2925_p0 = scmp.lt.s32.totalorder %s3498_s13, %s2919_s9 }
 0x387   : > { %p2926_p1 = por %p2925_p0, %p2924_p13 }
 0x389   : > { %p2927_p2 = pnand %p2926_p1, %p2920_p11 }
 0x38b   : > { %2930 = shalt.err (!%p2927_p2)  }
 0x38c   : > { %928 = dma.hbm_to_vmem [thread:$0]  %s915_s24, 16, %s4099_s8, [#allocation5 + $0x2d] }
 0x38d   : > { %s3275_s11 = smov [#allocation2 + $0xe]   ;;  %s931_s1 = sld [smem:[#allocation8 + %s4105_s17]] }
 0x38e   : > { %s944_s20 = sshll.u32 %s3275_s11, 4  ;;  %s3276_s14 = smov [#allocation3 + $0xe]   ;;  %s945_s20 = int_to_ptr.vmem [resolvable:$true] %s944_s20 }
 0x38f   : > { %s959_s28 = sshll.u32 %s3276_s14, 4  ;;  %s4134_s10 = sld [smem:[#allocation9 + %s4105_s17]]  ;;  %s4136_s28 = int_to_ptr.vmem [resolvable:$true] %s959_s28 }
 0x390   : > { %s1779_s5 = sshll.u32 %s930_s0, 4 }
 0x391   : > { %s934_s27 = scalar_lea.hbm %s4287_s3, %s1779_s5 }
 0x392   : > { %s2931_s15 = scalar_lea.hbm %s934_s27, 16  ;;  %p2934_p4 = scmp.lt.s32.totalorder %s934_s27, %s4287_s3 }
 0x393   : > { %p2932_p3 = scmp.ne.s32.totalorder %s934_s27, %s2931_s15  ;;  %p2935_p5 = scmp.lt.s32.totalorder %s3446_s18, %s2931_s15 }
 0x395   : > { %p2936_p6 = por %p2935_p5, %p2934_p4 }
 0x397   : > { %p2937_p7 = pnand %p2936_p6, %p2932_p3 }
 0x399   : > { %2940 = shalt.err (!%p2937_p7)  }
 0x39a   : > { %s2941_s8 = scalar_lea.vmem %s945_s20, 16  ;;  %p2946_p9 = scmp.lt.s32.totalorder %s945_s20, %s3431_s16 }
 0x39b   : > { %p2942_p8 = scmp.ne.s32.totalorder %s945_s20, %s2941_s8  ;;  %p2947_p12 = scmp.lt.s32.totalorder %s3455_s2, %s2941_s8 }
 0x39d   : > { %p2948_p11 = por %p2947_p12, %p2946_p9 }
 0x39f   : > { %p2949_p13 = pnand %p2948_p11, %p2942_p8 }
 0x3a1   : > { %2952 = shalt.err (!%p2949_p13)  }
 0x3a2   : > { %947 = dma.hbm_to_vmem [thread:$0]  %s934_s27, 16, %s945_s20, [#allocation5 + $0xe] }
 0x3a3   : > { %s1780_s17 = sshll.u32 %s931_s1, 4  ;;  %s3277_s0 = smov [#allocation4 + $0xe]  }
 0x3a4   : > { %s974_s24 = sshll.u32 %s3277_s0, 4  ;;  %s949_s5 = scalar_lea.hbm %s4287_s3, %s1780_s17  ;;  %s4150_s24 = int_to_ptr.vmem [resolvable:$true] %s974_s24 }
 0x3a5   : > { %s2953_s29 = scalar_lea.hbm %s949_s5, 16  ;;  %p2956_p1 = scmp.lt.s32.totalorder %s949_s5, %s4287_s3 }
 0x3a6   : > { %p2954_p0 = scmp.ne.s32.totalorder %s949_s5, %s2953_s29  ;;  %p2957_p2 = scmp.lt.s32.totalorder %s3446_s18, %s2953_s29 }
 0x3a8   : > { %p2958_p3 = por %p2957_p2, %p2956_p1 }
 0x3aa   : > { %p2959_p4 = pnand %p2958_p3, %p2954_p0 }
 0x3ac   : > { %2962 = shalt.err (!%p2959_p4)  }
 0x3ad   : > { %s2963_s20 = scalar_lea.vmem %s4136_s28, 16  ;;  %p2968_p6 = scmp.lt.s32.totalorder %s4136_s28, %s3436_s19 }
 0x3ae   : > { %p2964_p5 = scmp.ne.s32.totalorder %s4136_s28, %s2963_s20  ;;  %p2969_p7 = scmp.lt.s32.totalorder %s3476_s26, %s2963_s20 }
 0x3b0   : > { %p2970_p8 = por %p2969_p7, %p2968_p6 }
 0x3b2   : > { %p2971_p9 = pnand %p2970_p8, %p2964_p5 }
 0x3b4   : > { %2974 = shalt.err (!%p2971_p9)  }
 0x3b5   : > { %962 = dma.hbm_to_vmem [thread:$0]  %s949_s5, 16, %s4136_s28, [#allocation5 + $0x1e] }
 0x3b6   : > { %s1781_s1 = sshll.u32 %s4134_s10, 4  ;;  %s978_s27 = sadd.s32 15, %s3421_s23 }
 0x3b7   : > { %s964_s8 = scalar_lea.hbm %s4288_s4, %s1781_s1  ;;  %s979_s17 = sld [smem:[#allocation7 + %s978_s27]] }
 0x3b8   : > { %s2975_s0 = scalar_lea.hbm %s964_s8, 16  ;;  %p2978_p11 = scmp.lt.s32.totalorder %s964_s8, %s4288_s4 }
 0x3b9   : > { %p2976_p12 = scmp.ne.s32.totalorder %s964_s8, %s2975_s0  ;;  %p2979_p13 = scmp.lt.s32.totalorder %s3489_s12, %s2975_s0 }
 0x3bb   : > { %p2980_p0 = por %p2979_p13, %p2978_p11 }
 0x3bd   : > { %p2981_p1 = pnand %p2980_p0, %p2976_p12 }
 0x3bf   : > { %2984 = shalt.err (!%p2981_p1)  }
 0x3c0   : > { %s2985_s23 = scalar_lea.vmem %s4150_s24, 16  ;;  %p2990_p3 = scmp.lt.s32.totalorder %s4150_s24, %s3441_s30 }
 0x3c1   : > { %p2986_p2 = scmp.ne.s32.totalorder %s4150_s24, %s2985_s23  ;;  %p2991_p4 = scmp.lt.s32.totalorder %s3498_s13, %s2985_s23 }
 0x3c3   : > { %p2992_p5 = por %p2991_p4, %p2990_p3 }
 0x3c5   : > { %p2993_p6 = pnand %p2992_p5, %p2986_p2 }
 0x3c7   : > { %2996 = shalt.err (!%p2993_p6)  }
 0x3c8   : > { %977 = dma.hbm_to_vmem [thread:$0]  %s964_s8, 16, %s4150_s24, [#allocation5 + $0x2e] }
 0x3c9   : > { %s4177_s28 = sld [smem:[#allocation8 + %s978_s27]]  ;;  %s3278_s10 = smov [#allocation2 + $0xf]  }
 0x3ca   : > { %s993_s5 = sshll.u32 %s3278_s10, 4  ;;  %s3279_s29 = smov [#allocation3 + $0xf]   ;;  %s994_s5 = int_to_ptr.vmem [resolvable:$true] %s993_s5 }
 0x3cb   : > { %s1008_s21 = sshll.u32 %s3279_s29, 4  ;;  %s4181_s15 = sld [smem:[#allocation9 + %s978_s27]]  ;;  %s4179_s21 = int_to_ptr.vmem [resolvable:$true] %s1008_s21 }
 0x3cc   : > { %s1782_s20 = sshll.u32 %s979_s17, 4  ;;  %s3280_s0 = smov [#allocation4 + $0xf]  }
 0x3cd   : > { %s983_s9 = scalar_lea.hbm %s4287_s3, %s1782_s20  ;;  %s1023_s11 = sshll.u32 %s3280_s0, 4  ;;  %s4196_s11 = int_to_ptr.vmem [resolvable:$true] %s1023_s11 }
 0x3ce   : > { %s2997_s24 = scalar_lea.hbm %s983_s9, 16  ;;  %p3000_p8 = scmp.lt.s32.totalorder %s983_s9, %s4287_s3 }
 0x3cf   : > { %p2998_p7 = scmp.ne.s32.totalorder %s983_s9, %s2997_s24  ;;  %p3001_p9 = scmp.lt.s32.totalorder %s3446_s18, %s2997_s24 }
 0x3d1   : > { %p3002_p12 = por %p3001_p9, %p3000_p8 }
 0x3d3   : > { %p3003_p11 = pnand %p3002_p12, %p2998_p7 }
 0x3d5   : > { %3006 = shalt.err (!%p3003_p11)  }
 0x3d6   : > { %s3007_s23 = scalar_lea.vmem %s994_s5, 16  ;;  %p3012_p0 = scmp.lt.s32.totalorder %s994_s5, %s3431_s16 }
 0x3d7   : > { %p3008_p13 = scmp.ne.s32.totalorder %s994_s5, %s3007_s23  ;;  %p3013_p1 = scmp.lt.s32.totalorder %s3455_s2, %s3007_s23 }
 0x3d9   : > { %p3014_p2 = por %p3013_p1, %p3012_p0 }
 0x3db   : > { %p3015_p3 = pnand %p3014_p2, %p3008_p13 }
 0x3dd   : > { %3018 = shalt.err (!%p3015_p3)  }
 0x3de   : > { %996 = dma.hbm_to_vmem [thread:$0]  %s983_s9, 16, %s994_s5, [#allocation5 + $0xf] }
 0x3df   : > { %s1783_s27 = sshll.u32 %s4177_s28, 4 }
 0x3e0   : > { %s998_s29 = scalar_lea.hbm %s4287_s3, %s1783_s27 }
 0x3e1   : > { %s3019_s20 = scalar_lea.hbm %s998_s29, 16  ;;  %p3022_p5 = scmp.lt.s32.totalorder %s998_s29, %s4287_s3 }
 0x3e2   : > { %p3020_p4 = scmp.ne.s32.totalorder %s998_s29, %s3019_s20  ;;  %p3023_p6 = scmp.lt.s32.totalorder %s3446_s18, %s3019_s20 }
 0x3e4   : > { %p3024_p7 = por %p3023_p6, %p3022_p5 }
 0x3e6   : > { %p3025_p8 = pnand %p3024_p7, %p3020_p4 }
 0x3e8   : > { %3028 = shalt.err (!%p3025_p8)  }
 0x3e9   : > { %s3029_s16 = scalar_lea.vmem %s4179_s21, 16  ;;  %p3034_p12 = scmp.lt.s32.totalorder %s4179_s21, %s3436_s19 }
 0x3ea   : > { %p3030_p9 = scmp.ne.s32.totalorder %s4179_s21, %s3029_s16  ;;  %p3035_p11 = scmp.lt.s32.totalorder %s3476_s26, %s3029_s16 }
 0x3ec   : > { %p3036_p13 = por %p3035_p11, %p3034_p12 }
 0x3ee   : > { %p3037_p0 = pnand %p3036_p13, %p3030_p9 }
 0x3f0   : > { %3040 = shalt.err (!%p3037_p0)  }
 0x3f1   : > { %1011 = dma.hbm_to_vmem [thread:$0]  %s998_s29, 16, %s4179_s21, [#allocation5 + $0x1f] }
 0x3f2   : > { %s1784_s18 = sshll.u32 %s4181_s15, 4 }
 0x3f3   : > { %s1013_s5 = scalar_lea.hbm %s4288_s4, %s1784_s18 }
 0x3f4   : > { %s3041_s9 = scalar_lea.hbm %s1013_s5, 16  ;;  %p3044_p2 = scmp.lt.s32.totalorder %s1013_s5, %s4288_s4 }
 0x3f5   : > { %p3042_p1 = scmp.ne.s32.totalorder %s1013_s5, %s3041_s9  ;;  %p3045_p3 = scmp.lt.s32.totalorder %s3489_s12, %s3041_s9 }
 0x3f7   : > { %p3046_p4 = por %p3045_p3, %p3044_p2 }
 0x3f9   : > { %p3047_p5 = pnand %p3046_p4, %p3042_p1 }
 0x3fb   : > { %3050 = shalt.err (!%p3047_p5)  }
 0x3fc   : > { %s3051_s19 = scalar_lea.vmem %s4196_s11, 16  ;;  %p3056_p7 = scmp.lt.s32.totalorder %s4196_s11, %s3441_s30 }
 0x3fd   : > { %p3052_p6 = scmp.ne.s32.totalorder %s4196_s11, %s3051_s19  ;;  %p3057_p8 = scmp.lt.s32.totalorder %s3498_s13, %s3051_s19 }
 0x3ff   : > { %p3058_p9 = por %p3057_p8, %p3056_p7 }
 0x401   : > { %p3059_p12 = pnand %p3058_p9, %p3052_p6 }
 0x403   : > { %3062 = shalt.err (!%p3059_p12)  }
 0x404   : > { %1026 = dma.hbm_to_vmem [thread:$0]  %s1013_s5, 16, %s4196_s11, [#allocation5 + $0x2f] }
 0x405   : > { %s4223_s26 = scalar_lea.vmem [#allocation13], %s3418_s22 }
 0x406   : > { %3111 = dma.done.wait [#allocation5], 16 }
 0x407   : > { %3112 = vsyncadd [#allocation5], 4294967280 }
 0x408   : > { %3113 = dma.done.wait [#allocation5 + $0x10], 16 }
 0x409   : > { %3114 = vsyncadd [#allocation5 + $0x10], 4294967280 }
 0x40a   : > { %3115 = dma.done.wait [#allocation5 + $0x20], 16 }
 0x40b   : > { %3116 = vsyncadd [#allocation5 + $0x20], 4294967280 }
 0x40c   : > { %3117 = dma.done.wait [#allocation5 + $0x1], 16 }
 0x40d   : > { %3118 = vsyncadd [#allocation5 + $0x1], 4294967280 }
 0x40e   : > { %3119 = dma.done.wait [#allocation5 + $0x11], 16 }
 0x40f   : > { %3120 = vsyncadd [#allocation5 + $0x11], 4294967280 }
 0x410   : > { %3121 = dma.done.wait [#allocation5 + $0x21], 16 }
 0x411   : > { %3122 = vsyncadd [#allocation5 + $0x21], 4294967280 }
 0x412   : > { %3123 = dma.done.wait [#allocation5 + $0x2], 16 }
 0x413   : > { %3124 = vsyncadd [#allocation5 + $0x2], 4294967280 }
 0x414   : > { %3125 = dma.done.wait [#allocation5 + $0x12], 16 }
 0x415   : > { %3126 = vsyncadd [#allocation5 + $0x12], 4294967280 }
 0x416   : > { %3127 = dma.done.wait [#allocation5 + $0x22], 16 }
 0x417   : > { %3128 = vsyncadd [#allocation5 + $0x22], 4294967280 }
 0x418   : > { %3129 = dma.done.wait [#allocation5 + $0x3], 16 }
 0x419   : > { %3130 = vsyncadd [#allocation5 + $0x3], 4294967280 }
 0x41a   : > { %3131 = dma.done.wait [#allocation5 + $0x13], 16 }
 0x41b   : > { %3132 = vsyncadd [#allocation5 + $0x13], 4294967280 }
 0x41c   : > { %3133 = dma.done.wait [#allocation5 + $0x23], 16 }
 0x41d   : > { %3134 = vsyncadd [#allocation5 + $0x23], 4294967280 }
 0x41e   : > { %3135 = dma.done.wait [#allocation5 + $0x4], 16 }
 0x41f   : > { %3136 = vsyncadd [#allocation5 + $0x4], 4294967280 }
 0x420   : > { %3137 = dma.done.wait [#allocation5 + $0x14], 16 }
 0x421   : > { %3138 = vsyncadd [#allocation5 + $0x14], 4294967280 }
 0x422   : > { %3139 = dma.done.wait [#allocation5 + $0x24], 16 }
 0x423   : > { %3140 = vsyncadd [#allocation5 + $0x24], 4294967280 }
 0x424   : > { %3141 = dma.done.wait [#allocation5 + $0x5], 16 }
 0x425   : > { %3142 = vsyncadd [#allocation5 + $0x5], 4294967280 }
 0x426   : > { %3143 = dma.done.wait [#allocation5 + $0x15], 16 }
 0x427   : > { %3144 = vsyncadd [#allocation5 + $0x15], 4294967280 }
 0x428   : > { %3145 = dma.done.wait [#allocation5 + $0x25], 16 }
 0x429   : > { %3146 = vsyncadd [#allocation5 + $0x25], 4294967280 }
 0x42a   : > { %3147 = dma.done.wait [#allocation5 + $0x6], 16 }
 0x42b   : > { %3148 = vsyncadd [#allocation5 + $0x6], 4294967280 }
 0x42c   : > { %3149 = dma.done.wait [#allocation5 + $0x16], 16 }
 0x42d   : > { %3150 = vsyncadd [#allocation5 + $0x16], 4294967280 }
 0x42e   : > { %3151 = dma.done.wait [#allocation5 + $0x26], 16 }
 0x42f   : > { %3152 = vsyncadd [#allocation5 + $0x26], 4294967280 }
 0x430   : > { %3153 = dma.done.wait [#allocation5 + $0x7], 16 }
 0x431   : > { %3154 = vsyncadd [#allocation5 + $0x7], 4294967280 }
 0x432   : > { %3155 = dma.done.wait [#allocation5 + $0x17], 16 }
 0x433   : > { %3156 = vsyncadd [#allocation5 + $0x17], 4294967280 }
 0x434   : > { %3157 = dma.done.wait [#allocation5 + $0x27], 16 }
 0x435   : > { %3158 = vsyncadd [#allocation5 + $0x27], 4294967280 }
 0x436   : > { %3159 = dma.done.wait [#allocation5 + $0x8], 16 }
 0x437   : > { %3160 = vsyncadd [#allocation5 + $0x8], 4294967280 }
 0x438   : > { %3161 = dma.done.wait [#allocation5 + $0x18], 16 }
 0x439   : > { %3162 = vsyncadd [#allocation5 + $0x18], 4294967280 }
 0x43a   : > { %3163 = dma.done.wait [#allocation5 + $0x28], 16 }
 0x43b   : > { %3164 = vsyncadd [#allocation5 + $0x28], 4294967280 }
 0x43c   : > { %3165 = dma.done.wait [#allocation5 + $0x9], 16 }
 0x43d   : > { %3166 = vsyncadd [#allocation5 + $0x9], 4294967280 }
 0x43e   : > { %3167 = dma.done.wait [#allocation5 + $0x19], 16 }
 0x43f   : > { %3168 = vsyncadd [#allocation5 + $0x19], 4294967280 }
 0x440   : > { %3169 = dma.done.wait [#allocation5 + $0x29], 16 }
 0x441   : > { %3170 = vsyncadd [#allocation5 + $0x29], 4294967280 }
 0x442   : > { %3171 = dma.done.wait [#allocation5 + $0xa], 16 }
 0x443   : > { %3172 = vsyncadd [#allocation5 + $0xa], 4294967280 }
 0x444   : > { %3173 = dma.done.wait [#allocation5 + $0x1a], 16 }
 0x445   : > { %3174 = vsyncadd [#allocation5 + $0x1a], 4294967280 }
 0x446   : > { %3175 = dma.done.wait [#allocation5 + $0x2a], 16 }
 0x447   : > { %3176 = vsyncadd [#allocation5 + $0x2a], 4294967280 }
 0x448   : > { %3177 = dma.done.wait [#allocation5 + $0xb], 16 }
 0x449   : > { %3178 = vsyncadd [#allocation5 + $0xb], 4294967280 }
 0x44a   : > { %3179 = dma.done.wait [#allocation5 + $0x1b], 16 }
 0x44b   : > { %3180 = vsyncadd [#allocation5 + $0x1b], 4294967280 }
 0x44c   : > { %3181 = dma.done.wait [#allocation5 + $0x2b], 16 }
 0x44d   : > { %3182 = vsyncadd [#allocation5 + $0x2b], 4294967280 }
 0x44e   : > { %3183 = dma.done.wait [#allocation5 + $0xc], 16 }
 0x44f   : > { %3184 = vsyncadd [#allocation5 + $0xc], 4294967280 }
 0x450   : > { %3185 = dma.done.wait [#allocation5 + $0x1c], 16 }
 0x451   : > { %3186 = vsyncadd [#allocation5 + $0x1c], 4294967280 }
 0x452   : > { %3187 = dma.done.wait [#allocation5 + $0x2c], 16 }
 0x453   : > { %3188 = vsyncadd [#allocation5 + $0x2c], 4294967280 }
 0x454   : > { %3189 = dma.done.wait [#allocation5 + $0xd], 16 }
 0x455   : > { %3190 = vsyncadd [#allocation5 + $0xd], 4294967280 }
 0x456   : > { %3191 = dma.done.wait [#allocation5 + $0x1d], 16 }
 0x457   : > { %3192 = vsyncadd [#allocation5 + $0x1d], 4294967280 }
 0x458   : > { %3193 = dma.done.wait [#allocation5 + $0x2d], 16 }
 0x459   : > { %3194 = vsyncadd [#allocation5 + $0x2d], 4294967280 }
 0x45a   : > { %3195 = dma.done.wait [#allocation5 + $0xe], 16 }
 0x45b   : > { %3196 = vsyncadd [#allocation5 + $0xe], 4294967280 }
 0x45c   : > { %3197 = dma.done.wait [#allocation5 + $0x1e], 16 }
 0x45d   : > { %3198 = vsyncadd [#allocation5 + $0x1e], 4294967280 }
 0x45e   : > { %3199 = dma.done.wait [#allocation5 + $0x2e], 16 }
 0x45f   : > { %3200 = vsyncadd [#allocation5 + $0x2e], 4294967280 }
 0x460   : > { %3201 = dma.done.wait [#allocation5 + $0xf], 16 }
 0x461   : > { %3202 = vsyncadd [#allocation5 + $0xf], 4294967280 }
 0x462   : > { %3203 = dma.done.wait [#allocation5 + $0x1f], 16 }
 0x463   : > { %3204 = vsyncadd [#allocation5 + $0x1f], 4294967280 }
 0x464   : > { %3205 = dma.done.wait [#allocation5 + $0x2f], 16 }
 0x465   : > { %3206 = vsyncadd [#allocation5 + $0x2f], 4294967280  ;;  %v1158_v11 = vld [vmem:[#allocation2] sm:$0xff]  ;;  %v1162_v12 = vld [vmem:[#allocation3] sm:$0xff]  ;;  %s4326_s22 = sld [smem:[#allocation173_spill]]  ;;  %s1843_s14 = sshll.u32 %s3369_s25, 8 }
 0x466   : > { %v1160_v13 = vadd.f32 %v1158_v11, %v3912_v6  ;;  %v1159_v14 = vld [vmem:[#allocation2 + $0x8] sm:$0xff]  ;;  %v1163_v15 = vld [vmem:[#allocation3 + $0x8] sm:$0xff]  ;;  %v1166_v16 = vld [vmem:[#allocation4] sm:$0xff]  ;;  %s4327_s13 = sld [smem:[#allocation164_spill]]  ;;  %s1227_s23 = sshll.u32 %s4223_s26, 4  ;;  %s4241_s23 = int_to_ptr.vmem [resolvable:$true] %s1227_s23 }
 0x467   : > { %v1161_v17 = vadd.f32 %v1159_v14, %v3941_v10  ;;  %v1167_v20 = vld [vmem:[#allocation4 + $0x8] sm:$0xff]  ;;  %s4328_s11 = sld [smem:[#allocation174_spill]]  ;;  %s3063_s6 = scalar_lea.vmem %s4241_s23, 256 }
 0x468   : > { %v1164_v18 = vadd.f32 %v1162_v12, %v1160_v13  ;;  %s4330_s10 = sld [smem:[#allocation175_spill]]  ;;  %p3064_p11 = scmp.ne.s32.totalorder %s4241_s23, %s3063_s6 }
 0x469   : > { %v1165_v19 = vadd.f32 %v1163_v15, %v1161_v17  ;;  %s3281_s25 = smov [#allocation13]  }
 0x46a   : > { %v1168_v21 = vadd.f32 %v1166_v16, %v1164_v18  ;;  %p3065_p13 = pnand %p3064_p11, %p3386_p10  ;;  %s3067_s16 = sshll.u32 %s3281_s25, 4  ;;  %s3068_s16 = int_to_ptr.vmem [resolvable:$false] %s3067_s16 }
 0x46b   : > { %v1169_v22 = vadd.f32 %v1167_v20, %v1165_v19  ;;  %v1788_v38 = vld [vmem:[%s4326_s22] ss:$0 sm:$0xff]  ;;  %s3069_s18 = scalar_lea.vmem %s3068_s16, 512  ;;  %p3070_p1 = scmp.lt.s32.totalorder %s4241_s23, %s3068_s16 }
 0x46c   : > { %1170 = vadd.xlane.f32.xlu0 %v1168_v21  ;;  %s4331_s20 = sand.u32 1, %s4327_s13   ;;  %p3066_p0 = pneg %p3065_p13 }
 0x46d   : > { %v1789_v40 = vld [vmem:[%s4328_s11] ss:$0 sm:$0xff]  ;;  %s4246_s1 = scalar_lea.sflag [#allocation12], %s4331_s20  ;;  %p3071_p2 = scmp.lt.s32.totalorder %s3069_s18, %s3063_s6 }
 0x46e   : > { %s4239_s29 = scalar_lea.hbm %s4330_s10, %s1843_s14 }
 0x46f   : > { %p3072_p3 = por %p3071_p2, %p3070_p1 }
 0x470   : > { %1172 = vadd.xlane.f32.xlu0 %v1169_v22 }
 0x471   : > { %p3073_p4 = pnand %p3072_p3, %p3066_p0 }
 0x4f5   : > { %v1171_v23 = vpop.xlane.xlu0 %1170 }
 0x4f6   : > { %v1175_v24 = vmul.f32 0.0078125, %v1171_v23 }
 0x4f8   : > { %v1177_v25 = vsub.f32 %v1168_v21, %v1175_v24 }
 0x4f9   : > { %v1173_v26 = vpop.xlane.xlu0 %1172 }
 0x4fa   : > { %v1176_v27 = vmul.f32 0.0078125, %v1173_v26  ;;  %v1179_v28 = vmul.f32 %v1177_v25, %v1177_v25 }
 0x4fc   : > { %v1178_v29 = vsub.f32 %v1169_v22, %v1176_v27  ;;  %1181 = vadd.xlane.f32.xlu1 %v1179_v28 }
 0x4fe   : > { %v1180_v30 = vmul.f32 %v1178_v29, %v1178_v29 }
 0x500   : > { %1183 = vadd.xlane.f32.xlu1 %v1180_v30 }
 0x585   : > { %v1182_v31 = vpop.xlane.xlu1 %1181 }
 0x586   : > { %v1185_v32 = vmul.f32 0.0078125, %v1182_v31 }
 0x588   : > { %v1187_v33 = vadd.f32 1e-12, %v1185_v32 }
 0x589   : > { %v1184_v34 = vpop.xlane.xlu1 %1183 }
 0x58a   : > { %1949 = vrsqrt.f32 %v1187_v33  ;;  %v1186_v35 = vmul.f32 0.0078125, %v1184_v34 }
 0x58c   : > { %v1188_v36 = vadd.f32 1e-12, %v1186_v35 }
 0x58e   : > { %1951 = vrsqrt.f32 %v1188_v36 }
 0x597   : > { %v1950_v37 = vpop.eup %1949 }
 0x598   : > { %v1191_v39 = vmul.f32 %v1950_v37, %v1177_v25 }
 0x59a   : > { %v1200_v41 = vmul.f32 %v1788_v38, %v1191_v39 }
 0x59b   : > { %v1952_v42 = vpop.eup %1951 }
 0x59c   : > { %v1192_v43 = vmul.f32 %v1952_v42, %v1178_v29  ;;  %v1209_v44 = vadd.f32 %v1789_v40, %v1200_v41 }
 0x59e   : > { %v1201_v45 = vmul.f32 %v1788_v38, %v1192_v43  ;;  %1211 = vst [vmem:[%s4223_s26] sm:$0xff] %v1209_v44 }
 0x5a0   : > { %v1210_v46 = vadd.f32 %v1789_v40, %v1201_v45 }
 0x5a2   : > { %1212 = vst [vmem:[%s4223_s26 + $0x8] sm:$0xff] %v1210_v46 }
 0x5a3   : > { %3076 = shalt.err (!%p3073_p4)
}
 0x5a4   : > { %s3077_s2 = scalar_lea.hbm %s4239_s29, 256  ;;  %s3081_s9 = scalar_lea.hbm %s4330_s10, 512 }
 0x5a5   : > { %p3078_p5 = scmp.ne.s32.totalorder %s4239_s29, %s3077_s2  ;;  %p3082_p8 = scmp.lt.s32.totalorder %s4239_s29, %s4330_s10 }
 0x5a6   : > { %p3083_p9 = scmp.lt.s32.totalorder %s3081_s9, %s3077_s2 }
 0x5a7   : > { %p3079_p6 = pnand %p3078_p5, %p3386_p10 }
 0x5a8   : > { %p3084_p12 = por %p3083_p9, %p3082_p8 }
 0x5a9   : > { %p3080_p7 = pneg %p3079_p6 }
 0x5ab   : > { %p3085_p11 = pnand %p3084_p12, %p3080_p7 }
 0x5ad   : > { %3088 = shalt.err (!%p3085_p11)
}
 0x5ae   : > { %s3282_s19 = smov 128   ;;  %s3283_s26 = smov 8  }
 0x5af   : > { %1848 = dma.vmem_to_hbm [thread:$0]  (%p3386_p10), %s4241_s23, 256, %s4239_s29, %s4246_s1, %s3282_s19, %s3282_s19, %s3283_s26  }
 0x5b0 PF: > { %s4332_s30 = sld [smem:[#allocation166_spill]] }
 0x5b1   : > { %s4333_s12 = sld [smem:[#allocation163_spill]] }
 0x5b2   : > { %s4334_s22 = sld [smem:[#allocation170_spill]] }
 0x5b6   : > { %p1860_p13 = scmp.ge.s32.totalorder %s4332_s30, 2 }
 0x5b7   : > { %s1242_s13 = sand.u32 1, %s4333_s12  }
 0x5b8   : > { %p4335_p0 = scmp.ne.s32.totalorder %s4334_s22, 0  ;;  %s1243_s21 = scalar_lea.sflag [#allocation12], %s1242_s13 }
 0x5ba   : > { %p1855_p1 = pnand %p1860_p13, %p4335_p0 }
 0x5bc   : > { %p1856_p2 = pneg %p1855_p1 }
 0x5be   : > { %3208 = dma.done.wait (%p1856_p2), %s1243_s21, 256  }
 0x5bf   : > { %3210 = vsyncadd (%p1856_p2), %s1243_s21, 4294967040  ;;  %s4336_s24 = sld [smem:[#allocation167_spill]] }
 0x5c0   : > { %s4337_s0 = sld [smem:[#allocation164_spill]] }
 0x5c1   : > { %s4338_s1 = sld [smem:[#allocation165_spill]] }
 0x5c2   : > { %s4339_s2 = sld [smem:[#allocation168_spill]] }
 0x5c5   : > { %p31_p3 = scmp.ge.s32.totalorder %s4336_s24, 4  }
 0x5c7   :  { %33 = sbr.rel (!%p31_p3) target bundleno = 22 (0x16), region = 459 }
 0x5cc   :  { %1248 = vsyncpa [#allocation11], 1 }
 0x5cd   :  { %1250 = vsyncpa [#allocation11 + $0x1], 1 }
 0x5ce   :  { %1251 = vsyncpa [#allocation12], 1 }
 0x5cf   :  { %1253 = vsyncpa [#allocation12 + $0x1], 1 }
 0x5d0   :  { %1254 = vsyncmov [#allocation5] }
 0x5d3   :  { %s1255_s15 = vpop.sfrf %1254 }
 0x5d4   :  { %p1795_p10 = scmp.ne.s32.totalorder %s1255_s15, 0 }
 0x5d6   :  { %1259 = shalt.err (%p1795_p10)  }
 0x5d7   :  { %1261 = vsyncmov [#allocation5 + $0x1] }
 0x5da   :  { %s1262_s11 = vpop.sfrf %1261 }
 0x5db   :  { %p1796_p4 = scmp.ne.s32.totalorder %s1262_s11, 0 }
 0x5dd   :  { %1266 = shalt.err (%p1796_p4)  }
 0x5de   :  { %1268 = vsyncmov [#allocation5 + $0x2] }
 0x5e1   :  { %s1269_s8 = vpop.sfrf %1268 }
 0x5e2   :  { %p1797_p5 = scmp.ne.s32.totalorder %s1269_s8, 0 }
 0x5e4   :  { %1273 = shalt.err (%p1797_p5)  }
 0x5e5   :  { %1275 = vsyncmov [#allocation5 + $0x3] }
 0x5e8   :  { %s1276_s14 = vpop.sfrf %1275 }
 0x5e9   :  { %p1798_p6 = scmp.ne.s32.totalorder %s1276_s14, 0 }
 0x5eb   :  { %1280 = shalt.err (%p1798_p6)  }
 0x5ec   :  { %1282 = vsyncmov [#allocation5 + $0x4] }
 0x5ef   :  { %s1283_s3 = vpop.sfrf %1282 }
 0x5f0   :  { %p1799_p7 = scmp.ne.s32.totalorder %s1283_s3, 0 }
 0x5f2   :  { %1287 = shalt.err (%p1799_p7)  }
 0x5f3   :  { %1289 = vsyncmov [#allocation5 + $0x5] }
 0x5f6   :  { %s1290_s4 = vpop.sfrf %1289 }
 0x5f7   :  { %p1800_p8 = scmp.ne.s32.totalorder %s1290_s4, 0 }
 0x5f9   :  { %1294 = shalt.err (%p1800_p8)  }
 0x5fa   :  { %1296 = vsyncmov [#allocation5 + $0x6] }
 0x5fd   :  { %s1297_s7 = vpop.sfrf %1296 }
 0x5fe   :  { %p1801_p9 = scmp.ne.s32.totalorder %s1297_s7, 0 }
 0x600   :  { %1301 = shalt.err (%p1801_p9)  }
 0x601   :  { %1303 = vsyncmov [#allocation5 + $0x7] }
 0x604   :  { %s1304_s23 = vpop.sfrf %1303 }
 0x605   :  { %p1802_p12 = scmp.ne.s32.totalorder %s1304_s23, 0 }
 0x607   :  { %1308 = shalt.err (%p1802_p12)  }
 0x608   :  { %1310 = vsyncmov [#allocation5 + $0x8] }
 0x60b   :  { %s1311_s27 = vpop.sfrf %1310 }
 0x60c   :  { %p1803_p11 = scmp.ne.s32.totalorder %s1311_s27, 0 }
 0x60e   :  { %1315 = shalt.err (%p1803_p11)  }
 0x60f   :  { %1317 = vsyncmov [#allocation5 + $0x9] }
 0x612   :  { %s1318_s17 = vpop.sfrf %1317 }
 0x613   :  { %p1804_p13 = scmp.ne.s32.totalorder %s1318_s17, 0 }
 0x615   :  { %1322 = shalt.err (%p1804_p13)  }
 0x616   :  { %1324 = vsyncmov [#allocation5 + $0xa] }
 0x619   :  { %s1325_s10 = vpop.sfrf %1324 }
 0x61a   :  { %p1805_p0 = scmp.ne.s32.totalorder %s1325_s10, 0 }
 0x61c   :  { %1329 = shalt.err (%p1805_p0)  }
 0x61d   :  { %1331 = vsyncmov [#allocation5 + $0xb] }
 0x620   :  { %s1332_s29 = vpop.sfrf %1331 }
 0x621   :  { %p1806_p1 = scmp.ne.s32.totalorder %s1332_s29, 0 }
 0x623   :  { %1336 = shalt.err (%p1806_p1)  }
 0x624   :  { %1338 = vsyncmov [#allocation5 + $0xc] }
 0x627   :  { %s1339_s20 = vpop.sfrf %1338 }
 0x628   :  { %p1807_p2 = scmp.ne.s32.totalorder %s1339_s20, 0 }
 0x62a   :  { %1343 = shalt.err (%p1807_p2)  }
 0x62b   :  { %1345 = vsyncmov [#allocation5 + $0xd] }
 0x62e   :  { %s1346_s1 = vpop.sfrf %1345 }
 0x62f   :  { %p1808_p3 = scmp.ne.s32.totalorder %s1346_s1, 0 }
 0x631   :  { %1350 = shalt.err (%p1808_p3)  }
 0x632   :  { %1352 = vsyncmov [#allocation5 + $0xe] }
 0x635   :  { %s1353_s6 = vpop.sfrf %1352 }
 0x636   :  { %p1809_p10 = scmp.ne.s32.totalorder %s1353_s6, 0 }
 0x638   :  { %1357 = shalt.err (%p1809_p10)  }
 0x639   :  { %1359 = vsyncmov [#allocation5 + $0xf] }
 0x63c   :  { %s1360_s25 = vpop.sfrf %1359 }
 0x63d   :  { %p1810_p4 = scmp.ne.s32.totalorder %s1360_s25, 0 }
 0x63f   :  { %1364 = shalt.err (%p1810_p4)  }
 0x640   :  { %1366 = vsyncmov [#allocation5 + $0x10] }
 0x643   :  { %s1367_s16 = vpop.sfrf %1366 }
 0x644   :  { %p1811_p5 = scmp.ne.s32.totalorder %s1367_s16, 0 }
 0x646   :  { %1371 = shalt.err (%p1811_p5)  }
 0x647   :  { %1373 = vsyncmov [#allocation5 + $0x11] }
 0x64a   :  { %s1374_s18 = vpop.sfrf %1373 }
 0x64b   :  { %p1812_p6 = scmp.ne.s32.totalorder %s1374_s18, 0 }
 0x64d   :  { %1378 = shalt.err (%p1812_p6)  }
 0x64e   :  { %1380 = vsyncmov [#allocation5 + $0x12] }
 0x651   :  { %s1381_s2 = vpop.sfrf %1380 }
 0x652   :  { %p1813_p7 = scmp.ne.s32.totalorder %s1381_s2, 0 }
 0x654   :  { %1385 = shalt.err (%p1813_p7)  }
 0x655   :  { %1387 = vsyncmov [#allocation5 + $0x13] }
 0x658   :  { %s1388_s28 = vpop.sfrf %1387 }
 0x659   :  { %p1814_p8 = scmp.ne.s32.totalorder %s1388_s28, 0 }
 0x65b   :  { %1392 = shalt.err (%p1814_p8)  }
 0x65c   :  { %1394 = vsyncmov [#allocation5 + $0x14] }
 0x65f   :  { %s1395_s5 = vpop.sfrf %1394 }
 0x660   :  { %p1815_p9 = scmp.ne.s32.totalorder %s1395_s5, 0 }
 0x662   :  { %1399 = shalt.err (%p1815_p9)  }
 0x663   :  { %1401 = vsyncmov [#allocation5 + $0x15] }
 0x666   :  { %s1402_s9 = vpop.sfrf %1401 }
 0x667   :  { %p1816_p12 = scmp.ne.s32.totalorder %s1402_s9, 0 }
 0x669   :  { %1406 = shalt.err (%p1816_p12)  }
 0x66a   :  { %1408 = vsyncmov [#allocation5 + $0x16] }
 0x66d   :  { %s1409_s0 = vpop.sfrf %1408 }
 0x66e   :  { %p1817_p11 = scmp.ne.s32.totalorder %s1409_s0, 0 }
 0x670   :  { %1413 = shalt.err (%p1817_p11)  }
 0x671   :  { %1415 = vsyncmov [#allocation5 + $0x17] }
 0x674   :  { %s1416_s24 = vpop.sfrf %1415 }
 0x675   :  { %p1818_p13 = scmp.ne.s32.totalorder %s1416_s24, 0 }
 0x677   :  { %1420 = shalt.err (%p1818_p13)  }
 0x678   :  { %1422 = vsyncmov [#allocation5 + $0x18] }
 0x67b   :  { %s1423_s19 = vpop.sfrf %1422 }
 0x67c   :  { %p1819_p0 = scmp.ne.s32.totalorder %s1423_s19, 0 }
 0x67e   :  { %1427 = shalt.err (%p1819_p0)  }
 0x67f   :  { %1429 = vsyncmov [#allocation5 + $0x19] }
 0x682   :  { %s1430_s26 = vpop.sfrf %1429 }
 0x683   :  { %p1820_p1 = scmp.ne.s32.totalorder %s1430_s26, 0 }
 0x685   :  { %1434 = shalt.err (%p1820_p1)  }
 0x686   :  { %1436 = vsyncmov [#allocation5 + $0x1a] }
 0x689   :  { %s1437_s30 = vpop.sfrf %1436 }
 0x68a   :  { %p1821_p2 = scmp.ne.s32.totalorder %s1437_s30, 0 }
 0x68c   :  { %1441 = shalt.err (%p1821_p2)  }
 0x68d   :  { %1443 = vsyncmov [#allocation5 + $0x1b] }
 0x690   :  { %s1444_s12 = vpop.sfrf %1443 }
 0x691   :  { %p1822_p3 = scmp.ne.s32.totalorder %s1444_s12, 0 }
 0x693   :  { %1448 = shalt.err (%p1822_p3)  }
 0x694   :  { %1450 = vsyncmov [#allocation5 + $0x1c] }
 0x697   :  { %s1451_s22 = vpop.sfrf %1450 }
 0x698   :  { %p1823_p10 = scmp.ne.s32.totalorder %s1451_s22, 0 }
 0x69a   :  { %1455 = shalt.err (%p1823_p10)  }
 0x69b   :  { %1457 = vsyncmov [#allocation5 + $0x1d] }
 0x69e   :  { %s1458_s13 = vpop.sfrf %1457 }
 0x69f   :  { %p1824_p4 = scmp.ne.s32.totalorder %s1458_s13, 0 }
 0x6a1   :  { %1462 = shalt.err (%p1824_p4)  }
 0x6a2   :  { %1464 = vsyncmov [#allocation5 + $0x1e] }
 0x6a5   :  { %s1465_s21 = vpop.sfrf %1464 }
 0x6a6   :  { %p1825_p5 = scmp.ne.s32.totalorder %s1465_s21, 0 }
 0x6a8   :  { %1469 = shalt.err (%p1825_p5)  }
 0x6a9   :  { %1471 = vsyncmov [#allocation5 + $0x1f] }
 0x6ac   :  { %s1472_s15 = vpop.sfrf %1471 }
 0x6ad   :  { %p1826_p6 = scmp.ne.s32.totalorder %s1472_s15, 0 }
 0x6af   :  { %1476 = shalt.err (%p1826_p6)  }
 0x6b0   :  { %1478 = vsyncmov [#allocation5 + $0x20] }
 0x6b3   :  { %s1479_s11 = vpop.sfrf %1478 }
 0x6b4   :  { %p1827_p7 = scmp.ne.s32.totalorder %s1479_s11, 0 }
 0x6b6   :  { %1483 = shalt.err (%p1827_p7)  }
 0x6b7   :  { %1485 = vsyncmov [#allocation5 + $0x21] }
 0x6ba   :  { %s1486_s8 = vpop.sfrf %1485 }
 0x6bb   :  { %p1828_p8 = scmp.ne.s32.totalorder %s1486_s8, 0 }
 0x6bd   :  { %1490 = shalt.err (%p1828_p8)  }
 0x6be   :  { %1492 = vsyncmov [#allocation5 + $0x22] }
 0x6c1   :  { %s1493_s14 = vpop.sfrf %1492 }
 0x6c2   :  { %p1829_p9 = scmp.ne.s32.totalorder %s1493_s14, 0 }
 0x6c4   :  { %1497 = shalt.err (%p1829_p9)  }
 0x6c5   :  { %1499 = vsyncmov [#allocation5 + $0x23] }
 0x6c8   :  { %s1500_s3 = vpop.sfrf %1499 }
 0x6c9   :  { %p1830_p12 = scmp.ne.s32.totalorder %s1500_s3, 0 }
 0x6cb   :  { %1504 = shalt.err (%p1830_p12)  }
 0x6cc   :  { %1506 = vsyncmov [#allocation5 + $0x24] }
 0x6cf   :  { %s1507_s4 = vpop.sfrf %1506 }
 0x6d0   :  { %p1831_p11 = scmp.ne.s32.totalorder %s1507_s4, 0 }
 0x6d2   :  { %1511 = shalt.err (%p1831_p11)  }
 0x6d3   :  { %1513 = vsyncmov [#allocation5 + $0x25] }
 0x6d6   :  { %s1514_s7 = vpop.sfrf %1513 }
 0x6d7   :  { %p1832_p13 = scmp.ne.s32.totalorder %s1514_s7, 0 }
 0x6d9   :  { %1518 = shalt.err (%p1832_p13)  }
 0x6da   :  { %1520 = vsyncmov [#allocation5 + $0x26] }
 0x6dd   :  { %s1521_s23 = vpop.sfrf %1520 }
 0x6de   :  { %p1833_p0 = scmp.ne.s32.totalorder %s1521_s23, 0 }
 0x6e0   :  { %1525 = shalt.err (%p1833_p0)  }
 0x6e1   :  { %1527 = vsyncmov [#allocation5 + $0x27] }
 0x6e4   :  { %s1528_s27 = vpop.sfrf %1527 }
 0x6e5   :  { %p1834_p1 = scmp.ne.s32.totalorder %s1528_s27, 0 }
 0x6e7   :  { %1532 = shalt.err (%p1834_p1)  }
 0x6e8   :  { %1534 = vsyncmov [#allocation5 + $0x28] }
 0x6eb   :  { %s1535_s17 = vpop.sfrf %1534 }
 0x6ec   :  { %p1835_p2 = scmp.ne.s32.totalorder %s1535_s17, 0 }
 0x6ee   :  { %1539 = shalt.err (%p1835_p2)  }
 0x6ef   :  { %1541 = vsyncmov [#allocation5 + $0x29] }
 0x6f2   :  { %s1542_s10 = vpop.sfrf %1541 }
 0x6f3   :  { %p1836_p3 = scmp.ne.s32.totalorder %s1542_s10, 0 }
 0x6f5   :  { %1546 = shalt.err (%p1836_p3)  }
 0x6f6   :  { %1548 = vsyncmov [#allocation5 + $0x2a] }
 0x6f9   :  { %s1549_s29 = vpop.sfrf %1548 }
 0x6fa   :  { %p1837_p10 = scmp.ne.s32.totalorder %s1549_s29, 0 }
 0x6fc   :  { %1553 = shalt.err (%p1837_p10)  }
 0x6fd   :  { %1555 = vsyncmov [#allocation5 + $0x2b] }
 0x700   :  { %s1556_s20 = vpop.sfrf %1555 }
 0x701   :  { %p1838_p4 = scmp.ne.s32.totalorder %s1556_s20, 0 }
 0x703   :  { %1560 = shalt.err (%p1838_p4)  }
 0x704   :  { %1562 = vsyncmov [#allocation5 + $0x2c] }
 0x707   :  { %s1563_s1 = vpop.sfrf %1562 }
 0x708   :  { %p1839_p5 = scmp.ne.s32.totalorder %s1563_s1, 0 }
 0x70a   :  { %1567 = shalt.err (%p1839_p5)  }
 0x70b   :  { %1569 = vsyncmov [#allocation5 + $0x2d] }
 0x70e   :  { %s1570_s6 = vpop.sfrf %1569 }
 0x70f   :  { %p1840_p6 = scmp.ne.s32.totalorder %s1570_s6, 0 }
 0x711   :  { %1574 = shalt.err (%p1840_p6)  }
 0x712   :  { %1576 = vsyncmov [#allocation5 + $0x2e] }
 0x715   :  { %s1577_s25 = vpop.sfrf %1576 }
 0x716   :  { %p1841_p7 = scmp.ne.s32.totalorder %s1577_s25, 0 }
 0x718   :  { %1581 = shalt.err (%p1841_p7)  }
 0x719   :  { %1583 = vsyncmov [#allocation5 + $0x2f] }
 0x71c   :  { %s1584_s16 = vpop.sfrf %1583 }
 0x71d   :  { %p1842_p8 = scmp.ne.s32.totalorder %s1584_s16, 0 }
 0x71f   :  { %1588 = shalt.err (%p1842_p8)  }

</bundles_post_ra>
